<compile_context>
chip_gen: v5e
topology: v5e:2x2
jax: 0.10.0
libtpu: 0.0.40
codegen_flags: <defaults>
</compile_context>

<pallas_src>
import functools

import jax
import jax.numpy as jnp
from jax.experimental import pallas as pl
from jax.experimental.pallas import tpu as pltpu


def _round_up(x, m):
    return (x + m - 1) // m * m


def _textcnn_kernel(x_ref, wconv_ref, bconv_ref, wfc1_ref, bfc1_ref,
                    wfc2_ref, bfc2_ref, out_ref, *, max_len, c_pad,
                    kernel_sizes):
    """One batch tile (everything after the embedding gather / im2col unfold).

    x_ref    : (lw, bb, k_pad)    bf16 im2col'ed embeddings (time-major, zero-padded)
    wconv_ref: (k_pad, 3*c_pad)   bf16 fused, BN-folded, zero-padded conv weights
    bconv_ref: (1, 3*c_pad)       f32 fused conv bias (BN folded)
    wfc1_ref : (3*c_pad, c_pad)   bf16 fc1 weight (BN1 folded, zero-padded)
    bfc1_ref : (1, c_pad)         f32
    wfc2_ref : (c_pad, u_pad)     bf16
    bfc2_ref : (1, u_pad)         f32
    out_ref  : (bb, u_pad)        f32 logits (lane-dense)
    """
    lw, bb, k_pad = x_ref.shape
    n_fused = wconv_ref.shape[1]

    # Single im2col matmul: batch folded into M (lw*bb), all branches fused in N,
    # full contraction depth K = k_pad (multiple of 128).
    x = x_ref[...].reshape(lw * bb, k_pad)
    acc = jnp.dot(x, wconv_ref[...], preferred_element_type=jnp.float32)
    acc = acc.reshape(lw, bb, n_fused)

    # Per-branch max-pool over ONLY that branch's valid time rows, THEN bias + ReLU
    # (max(relu(x + b)) == relu(max(x) + b) for a per-channel constant b).
    pooled = []
    for i, k in enumerate(kernel_sizes):
        l_out = max_len - k + 1
        lo, hi = i * c_pad, (i + 1) * c_pad           # lane-aligned (c_pad % 128 == 0)
        p = jnp.max(acc[:l_out, :, lo:hi], axis=0)    # (bb, c_pad) leading-axis reduce
        pooled.append(jnp.maximum(p + bconv_ref[:, lo:hi], 0.0))
    flat = jnp.concatenate(pooled, axis=-1)           # (bb, 3*c_pad) lane-tile concat

    # fc1 (+ folded BN1) and fc2 as single matmuls.
    h = jnp.dot(flat.astype(jnp.bfloat16), wfc1_ref[...],
                preferred_element_type=jnp.float32) + bfc1_ref[...]
    logits = jnp.dot(h.astype(jnp.bfloat16), wfc2_ref[...],
                     preferred_element_type=jnp.float32) + bfc2_ref[...]
    out_ref[...] = logits


def text_cnn_forward(x_tokens, prepared, *, batch_block=128):
    """x_tokens: (B, max_len) int32 token ids.  Returns (B, user_num) f32 logits."""
    emb_tab = prepared["emb_table"]                  # (V, E) bf16
    kernel_sizes = prepared["kernel_sizes"]
    c_pad = prepared["c_pad"]
    user_num = prepared["user_num"]

    B, L = x_tokens.shape
    E = emb_tab.shape[1]
    k_max = max(kernel_sizes)
    k_min = min(kernel_sizes)
    if L < k_max:
        raise ValueError(f"max_len={L} must be >= the largest conv kernel ({k_max})")

    k_pad = prepared["wconv"].shape[0]               # padded contraction depth
    u_pad = prepared["wfc2"].shape[1]

    lw = L - k_min + 1                               # conv rows some branch pools
    lt = lw + k_max - 1                              # emb rows needed for all shifts

    # Batch tile: multiple of 16, capped at 256 (v7x 64 MiB VMEM per TC).
    bb = max(16, min(_round_up(batch_block, 16), 256))
    bb = min(bb, _round_up(B, 16))
    b_pad = _round_up(B, bb)

    # Glue (plain JAX): time-major gather, zero-pad, im2col unfold, K pad to k_pad.
    emb = emb_tab[x_tokens.T]                                    # (L, B, E) bf16
    emb = jnp.pad(emb, ((0, lt - L), (0, b_pad - B), (0, 0)))    # (lt, b_pad, E)
    x_im = jnp.concatenate([emb[j:j + lw] for j in range(k_max)], axis=-1)
    x_im = jnp.pad(x_im, ((0, 0), (0, 0), (0, k_pad - k_max * E)))  # (lw, b_pad, k_pad)

    kernel = functools.partial(_textcnn_kernel, max_len=L, c_pad=c_pad,
                               kernel_sizes=kernel_sizes)

    out = pl.pallas_call(
        kernel,
        out_shape=jax.ShapeDtypeStruct((b_pad, u_pad), jnp.float32),
        grid=(b_pad // bb,),
        in_specs=[
            pl.BlockSpec((lw, bb, k_pad), lambda i: (0, i, 0)),          # im2col (tiled)
            pl.BlockSpec(prepared["wconv"].shape, lambda i: (0, 0)),     # fused conv w
            pl.BlockSpec(prepared["bconv"].shape, lambda i: (0, 0)),     # fused conv b
            pl.BlockSpec(prepared["wfc1"].shape, lambda i: (0, 0)),      # fc1 w
            pl.BlockSpec(prepared["bfc1"].shape, lambda i: (0, 0)),      # fc1 b
            pl.BlockSpec(prepared["wfc2"].shape, lambda i: (0, 0)),      # fc2 w
            pl.BlockSpec(prepared["bfc2"].shape, lambda i: (0, 0)),      # fc2 b
        ],
        out_specs=pl.BlockSpec((bb, u_pad), lambda i: (i, 0)),           # lane-dense out
        compiler_params=pltpu.CompilerParams(
            dimension_semantics=("parallel",),       # shard batch tiles over v7x's 2 TCs
            vmem_limit_bytes=48 * 1024 * 1024),      # v6e/v5e: can raise to ~96 MiB
    )(x_im, prepared["wconv"], prepared["bconv"], prepared["wfc1"],
      prepared["bfc1"], prepared["wfc2"], prepared["bfc2"])

    return out[:B, :user_num]


def fold_and_pad_params(params, *, eps=1e-5):
    """Fold eval-mode BatchNorm into conv / fc1 weights, fuse the three conv branches
    into one zero-padded im2col weight matrix (k_pad, 3*c_pad), pad channel dims to
    multiples of 128, and cast matmul operands to bf16 (biases stay f32)."""
    kernel_sizes = (3, 5, 7)
    k_max = max(kernel_sizes)
    E = params["ngram_embeds"].shape[1]
    C = params["conv1_b"].shape[0]
    U = params["fc2_b"].shape[0]
    c_pad = _round_up(C, 128)
    u_pad = _round_up(U, 128)
    nb = len(kernel_sizes)
    k_pad = _round_up(k_max * E, 128)        # 7*32 = 224 -> 256 (2 clean MXU passes)

    # Shared BatchNorm2d folded into the conv weights/biases (eval mode).
    s_bn = params["bn_gamma"] / jnp.sqrt(params["bn_var"] + eps)          # (C,)
    wconv = jnp.zeros((k_pad, nb * c_pad), jnp.float32)
    bconv = jnp.zeros((1, nb * c_pad), jnp.float32)
    for i, k in enumerate(kernel_sizes):
        w = params[f"conv{i + 1}_w"] * s_bn                               # (k, E, C)
        b = s_bn * (params[f"conv{i + 1}_b"] - params["bn_mean"]) + params["bn_beta"]
        wconv = wconv.at[:k * E, i * c_pad:i * c_pad + C].set(w.reshape(k * E, C))
        bconv = bconv.at[0, i * c_pad:i * c_pad + C].set(b)

    # BatchNorm1d folded into fc1; rows re-blocked to match the padded lane groups.
    s_bn1 = params["bn1_gamma"] / jnp.sqrt(params["bn1_var"] + eps)       # (C,)
    w1 = params["fc1_w"] * s_bn1                                          # (3C, C)
    b1 = s_bn1 * (params["fc1_b"] - params["bn1_mean"]) + params["bn1_beta"]
    wfc1 = jnp.zeros((nb * c_pad, c_pad), jnp.float32)
    for i in range(nb):
        wfc1 = wfc1.at[i * c_pad:i * c_pad + C, :C].set(w1[i * C:(i + 1) * C, :])
    bfc1 = jnp.zeros((1, c_pad), jnp.float32).at[0, :C].set(b1)

    wfc2 = jnp.zeros((c_pad, u_pad), jnp.float32).at[:C, :U].set(params["fc2_w"])
    bfc2 = jnp.zeros((1, u_pad), jnp.float32).at[0, :U].set(params["fc2_b"])

    return {
        "emb_table": params["ngram_embeds"].astype(jnp.bfloat16),
        "wconv": wconv.astype(jnp.bfloat16),
        "bconv": bconv,
        "wfc1": wfc1.astype(jnp.bfloat16),
        "bfc1": bfc1,
        "wfc2": wfc2.astype(jnp.bfloat16),
        "bfc2": bfc2,
        "c_pad": c_pad,
        "user_num": U,
        "kernel_sizes": kernel_sizes,
    }


def make_params(key, *, vocab_size, embedding_dim, n_filters, user_num):
    """Random parameters mirroring the PyTorch module.  Conv weights are stored as
    (K, E, C_out) (torch: (C_out, 1, K, E)); linear weights as (in, out)."""
    ks = jax.random.split(key, 20)
    s = 0.1
    C = n_filters
    f32 = jnp.float32
    return {
        "ngram_embeds": s * jax.random.normal(ks[0], (vocab_size, embedding_dim), f32),
        "conv1_w": s * jax.random.normal(ks[1], (3, embedding_dim, C), f32),
        "conv1_b": s * jax.random.normal(ks[2], (C,), f32),
        "conv2_w": s * jax.random.normal(ks[3], (5, embedding_dim, C), f32),
        "conv2_b": s * jax.random.normal(ks[4], (C,), f32),
        "conv3_w": s * jax.random.normal(ks[5], (7, embedding_dim, C), f32),
        "conv3_b": s * jax.random.normal(ks[6], (C,), f32),
        # shared BatchNorm2d(C): eval-mode running stats + affine
        "bn_gamma": 1.0 + 0.1 * jax.random.normal(ks[7], (C,), f32),
        "bn_beta": 0.1 * jax.random.normal(ks[8], (C,), f32),
        "bn_mean": 0.1 * jax.random.normal(ks[9], (C,), f32),
        "bn_var": 1.0 + 0.2 * jax.random.uniform(ks[10], (C,), f32),
        # fc1: Linear(3C, C); BatchNorm1d(C); fc2: Linear(C, user_num)
        "fc1_w": s * jax.random.normal(ks[11], (3 * C, C), f32),
        "fc1_b": s * jax.random.normal(ks[12], (C,), f32),
        "bn1_gamma": 1.0 + 0.1 * jax.random.normal(ks[13], (C,), f32),
        "bn1_beta": 0.1 * jax.random.normal(ks[14], (C,), f32),
        "bn1_mean": 0.1 * jax.random.normal(ks[15], (C,), f32),
        "bn1_var": 1.0 + 0.2 * jax.random.uniform(ks[16], (C,), f32),
        "fc2_w": s * jax.random.normal(ks[17], (C, user_num), f32),
        "fc2_b": s * jax.random.normal(ks[18], (user_num,), f32),
    }


def reference_forward(x_tokens, params, *, eps=1e-5):
    """Pure-JAX f32 reference matching the PyTorch forward in inference mode
    (BatchNorm with running stats, dropout = identity)."""
    hi = jax.lax.Precision.HIGHEST
    emb = params["ngram_embeds"].astype(jnp.float32)[x_tokens]     # (B, L, E)
    L = emb.shape[1]
    s_bn = params["bn_gamma"] / jnp.sqrt(params["bn_var"] + eps)
    feats = []
    for i, k in enumerate((3, 5, 7)):
        w = params[f"conv{i + 1}_w"]
        b = params[f"conv{i + 1}_b"]
        l_out = L - k + 1
        windows = jnp.stack([emb[:, j:j + l_out, :] for j in range(k)], axis=0)
        conv = jnp.einsum("kble,kec->blc", windows, w, precision=hi) + b
        bn = s_bn * (conv - params["bn_mean"]) + params["bn_beta"]
        feats.append(jnp.max(jax.nn.relu(bn), axis=1))             # (B, C)
    flat = jnp.concatenate(feats, axis=1)                          # (B, 3C)
    h = jnp.dot(flat, params["fc1_w"], precision=hi) + params["fc1_b"]
    s_bn1 = params["bn1_gamma"] / jnp.sqrt(params["bn1_var"] + eps)
    h = s_bn1 * (h - params["bn1_mean"]) + params["bn1_beta"]
    return jnp.dot(h, params["fc2_w"], precision=hi) + params["fc2_b"]


if __name__ == "__main__":
    B = 4
    MAX_LEN = 16
    EMBEDDING_DIM = 32
    VOCAB_SIZE = 50
    USER_NUM = 8
    N_FILTERS = 300   # hard-coded by the module (fc1 expects 3*300 inputs)

    key = jax.random.PRNGKey(0)
    pkey, xkey = jax.random.split(key)
    params = make_params(pkey, vocab_size=VOCAB_SIZE, embedding_dim=EMBEDDING_DIM,
                         n_filters=N_FILTERS, user_num=USER_NUM)
    x_tokens = jax.random.randint(xkey, (B, MAX_LEN), 0, VOCAB_SIZE, jnp.int32)

    prepared = fold_and_pad_params(params)
    out = text_cnn_forward(x_tokens, prepared, batch_block=128)
    out = jax.block_until_ready(out)

    ref = jax.block_until_ready(reference_forward(x_tokens, params))
    assert out.shape == (B, USER_NUM), out.shape
    # Kernel uses bf16 matmul operands with f32 accumulation; compare against the
    # pure-f32 reference with a tolerance that covers the bf16 rounding.
    assert jnp.allclose(out, ref, atol=1e-1, rtol=5e-2), \
        float(jnp.max(jnp.abs(out - ref)))
    print("KERNEL_OK")
</pallas_src>

<mosaic_0001>
module attributes {stable_mosaic.version = 11 : i64} {
  func.func @_textcnn_kernel(%arg0: i32, %arg1: memref<14x16x256xbf16, #tpu.memory_space<vmem>>, %arg2: memref<256x1152xbf16, #tpu.memory_space<vmem>>, %arg3: memref<1x1152xf32, #tpu.memory_space<vmem>>, %arg4: memref<1152x384xbf16, #tpu.memory_space<vmem>>, %arg5: memref<1x384xf32, #tpu.memory_space<vmem>>, %arg6: memref<384x128xbf16, #tpu.memory_space<vmem>>, %arg7: memref<1x128xf32, #tpu.memory_space<vmem>>, %arg8: memref<16x128xf32, #tpu.memory_space<vmem>>) attributes {dimension_semantics = [#tpu.dimension_semantics<parallel>], iteration_bounds = array<i64: 1>, scalar_prefetch = 0 : i64, scratch_operands = 0 : i64, tpu.core_type = #tpu.core_type<tc>, window_params = [{transform_indices = @transform_0, window_bounds = array<i64: 14, 16, 256>}, {pipeline_mode = #tpu.pipeline_mode<synchronous>, transform_indices = @transform_1, window_bounds = array<i64: 256, 1152>}, {pipeline_mode = #tpu.pipeline_mode<synchronous>, transform_indices = @transform_2, window_bounds = array<i64: 1, 1152>}, {pipeline_mode = #tpu.pipeline_mode<synchronous>, transform_indices = @transform_3, window_bounds = array<i64: 1152, 384>}, {pipeline_mode = #tpu.pipeline_mode<synchronous>, transform_indices = @transform_4, window_bounds = array<i64: 1, 384>}, {pipeline_mode = #tpu.pipeline_mode<synchronous>, transform_indices = @transform_5, window_bounds = array<i64: 384, 128>}, {pipeline_mode = #tpu.pipeline_mode<synchronous>, transform_indices = @transform_6, window_bounds = array<i64: 1, 128>}, {transform_indices = @transform_7, window_bounds = array<i64: 16, 128>}]} {
    %c0 = arith.constant 0 : index
    %c0_0 = arith.constant 0 : index
    %c0_1 = arith.constant 0 : index
    %0 = vector.load %arg1[%c0, %c0_0, %c0_1] : memref<14x16x256xbf16, #tpu.memory_space<vmem>>, vector<14x16x256xbf16>
    %1 = vector.shape_cast %0 : vector<14x16x256xbf16> to vector<224x256xbf16>
    %c0_2 = arith.constant 0 : index
    %c0_3 = arith.constant 0 : index
    %2 = vector.load %arg2[%c0_2, %c0_3] : memref<256x1152xbf16, #tpu.memory_space<vmem>>, vector<256x1152xbf16>
    %cst = arith.constant dense<0.000000e+00> : vector<224x1152xf32>
    %3 = tpu.matmul %1, %2, %cst {dimension_numbers = #tpu.dot_dimension_numbers<[1], [0], [0], [1], [0, 0, 1, 1], [], []>} : vector<224x256xbf16>, vector<256x1152xbf16>, vector<224x1152xf32> -> vector<224x1152xf32>
    %4 = vector.shape_cast %3 : vector<224x1152xf32> to vector<14x16x1152xf32>
    %5 = vector.extract_strided_slice %4 {offsets = [0, 0, 0], sizes = [14, 16, 384], strides = [1, 1, 1]} : vector<14x16x1152xf32> to vector<14x16x384xf32>
    %cst_4 = arith.constant dense<0xFF800000> : vector<16x384xf32>
    %6 = vector.multi_reduction <maximumf>, %5, %cst_4 [0] : vector<14x16x384xf32> to vector<16x384xf32>
    %c0_5 = arith.constant 0 : index
    %c0_6 = arith.constant 0 : index
    %7 = vector.load %arg3[%c0_5, %c0_6] : memref<1x1152xf32, #tpu.memory_space<vmem>>, vector<1x384xf32>
    %8 = vector.broadcast %7 : vector<1x384xf32> to vector<16x384xf32>
    %9 = arith.addf %6, %8 : vector<16x384xf32>
    %cst_7 = arith.constant 0.000000e+00 : f32
    %10 = vector.broadcast %cst_7 : f32 to vector<16x384xf32>
    %11 = arith.maximumf %9, %10 : vector<16x384xf32>
    %12 = vector.extract_strided_slice %4 {offsets = [0, 0, 384], sizes = [12, 16, 384], strides = [1, 1, 1]} : vector<14x16x1152xf32> to vector<12x16x384xf32>
    %cst_8 = arith.constant dense<0xFF800000> : vector<16x384xf32>
    %13 = vector.multi_reduction <maximumf>, %12, %cst_8 [0] : vector<12x16x384xf32> to vector<16x384xf32>
    %c0_9 = arith.constant 0 : index
    %c384 = arith.constant 384 : index
    %14 = vector.load %arg3[%c0_9, %c384] : memref<1x1152xf32, #tpu.memory_space<vmem>>, vector<1x384xf32>
    %15 = vector.broadcast %14 : vector<1x384xf32> to vector<16x384xf32>
    %16 = arith.addf %13, %15 : vector<16x384xf32>
    %cst_10 = arith.constant 0.000000e+00 : f32
    %17 = vector.broadcast %cst_10 : f32 to vector<16x384xf32>
    %18 = arith.maximumf %16, %17 : vector<16x384xf32>
    %19 = vector.extract_strided_slice %4 {offsets = [0, 0, 768], sizes = [10, 16, 384], strides = [1, 1, 1]} : vector<14x16x1152xf32> to vector<10x16x384xf32>
    %cst_11 = arith.constant dense<0xFF800000> : vector<16x384xf32>
    %20 = vector.multi_reduction <maximumf>, %19, %cst_11 [0] : vector<10x16x384xf32> to vector<16x384xf32>
    %c0_12 = arith.constant 0 : index
    %c768 = arith.constant 768 : index
    %21 = vector.load %arg3[%c0_12, %c768] : memref<1x1152xf32, #tpu.memory_space<vmem>>, vector<1x384xf32>
    %22 = vector.broadcast %21 : vector<1x384xf32> to vector<16x384xf32>
    %23 = arith.addf %20, %22 : vector<16x384xf32>
    %cst_13 = arith.constant 0.000000e+00 : f32
    %24 = vector.broadcast %cst_13 : f32 to vector<16x384xf32>
    %25 = arith.maximumf %23, %24 : vector<16x384xf32>
    %26 = tpu.concatenate %11, %18, %25 in 1 : vector<16x384xf32>, vector<16x384xf32>, vector<16x384xf32> -> vector<16x1152xf32>
    %27 = arith.truncf %26 : vector<16x1152xf32> to vector<16x1152xbf16>
    %c0_14 = arith.constant 0 : index
    %c0_15 = arith.constant 0 : index
    %28 = vector.load %arg4[%c0_14, %c0_15] : memref<1152x384xbf16, #tpu.memory_space<vmem>>, vector<1152x384xbf16>
    %cst_16 = arith.constant dense<0.000000e+00> : vector<16x384xf32>
    %29 = tpu.matmul %27, %28, %cst_16 {dimension_numbers = #tpu.dot_dimension_numbers<[1], [0], [0], [1], [0, 0, 1, 1], [], []>} : vector<16x1152xbf16>, vector<1152x384xbf16>, vector<16x384xf32> -> vector<16x384xf32>
    %c0_17 = arith.constant 0 : index
    %c0_18 = arith.constant 0 : index
    %30 = vector.load %arg5[%c0_17, %c0_18] : memref<1x384xf32, #tpu.memory_space<vmem>>, vector<1x384xf32>
    %31 = vector.broadcast %30 : vector<1x384xf32> to vector<16x384xf32>
    %32 = arith.addf %29, %31 : vector<16x384xf32>
    %33 = arith.truncf %32 : vector<16x384xf32> to vector<16x384xbf16>
    %c0_19 = arith.constant 0 : index
    %c0_20 = arith.constant 0 : index
    %34 = vector.load %arg6[%c0_19, %c0_20] : memref<384x128xbf16, #tpu.memory_space<vmem>>, vector<384x128xbf16>
    %cst_21 = arith.constant dense<0.000000e+00> : vector<16x128xf32>
    %35 = tpu.matmul %33, %34, %cst_21 {dimension_numbers = #tpu.dot_dimension_numbers<[1], [0], [0], [1], [0, 0, 1, 1], [], []>} : vector<16x384xbf16>, vector<384x128xbf16>, vector<16x128xf32> -> vector<16x128xf32>
    %c0_22 = arith.constant 0 : index
    %c0_23 = arith.constant 0 : index
    %36 = vector.load %arg7[%c0_22, %c0_23] : memref<1x128xf32, #tpu.memory_space<vmem>>, vector<1x128xf32>
    %37 = vector.broadcast %36 : vector<1x128xf32> to vector<16x128xf32>
    %38 = arith.addf %35, %37 : vector<16x128xf32>
    %c0_24 = arith.constant 0 : index
    %c0_25 = arith.constant 0 : index
    %39 = vector.load %arg8[%c0_24, %c0_25] : memref<16x128xf32, #tpu.memory_space<vmem>>, vector<16x128xf32>
    tpu.vector_store %arg8[%c0_24, %c0_25], %38 {strides = array<i32>} : memref<16x128xf32, #tpu.memory_space<vmem>>, vector<16x128xf32>,
    return
  }
  func.func @transform_0(%arg0: i32) -> (i32, i32, i32) {
    %c0_i32 = arith.constant 0 : i32
    %c0_i32_0 = arith.constant 0 : i32
    %c0_i32_1 = arith.constant 0 : i32
    return %c0_i32, %arg0, %c0_i32_0 : i32, i32, i32
  }
  func.func @transform_1(%arg0: i32) -> (i32, i32) {
    %c0_i32 = arith.constant 0 : i32
    %c0_i32_0 = arith.constant 0 : i32
    %c0_i32_1 = arith.constant 0 : i32
    return %c0_i32, %c0_i32_0 : i32, i32
  }
  func.func @transform_2(%arg0: i32) -> (i32, i32) {
    %c0_i32 = arith.constant 0 : i32
    %c0_i32_0 = arith.constant 0 : i32
    %c0_i32_1 = arith.constant 0 : i32
    return %c0_i32, %c0_i32_0 : i32, i32
  }
  func.func @transform_3(%arg0: i32) -> (i32, i32) {
    %c0_i32 = arith.constant 0 : i32
    %c0_i32_0 = arith.constant 0 : i32
    %c0_i32_1 = arith.constant 0 : i32
    return %c0_i32, %c0_i32_0 : i32, i32
  }
  func.func @transform_4(%arg0: i32) -> (i32, i32) {
    %c0_i32 = arith.constant 0 : i32
    %c0_i32_0 = arith.constant 0 : i32
    %c0_i32_1 = arith.constant 0 : i32
    return %c0_i32, %c0_i32_0 : i32, i32
  }
  func.func @transform_5(%arg0: i32) -> (i32, i32) {
    %c0_i32 = arith.constant 0 : i32
    %c0_i32_0 = arith.constant 0 : i32
    %c0_i32_1 = arith.constant 0 : i32
    return %c0_i32, %c0_i32_0 : i32, i32
  }
  func.func @transform_6(%arg0: i32) -> (i32, i32) {
    %c0_i32 = arith.constant 0 : i32
    %c0_i32_0 = arith.constant 0 : i32
    %c0_i32_1 = arith.constant 0 : i32
    return %c0_i32, %c0_i32_0 : i32, i32
  }
  func.func @transform_7(%arg0: i32) -> (i32, i32) {
    %c0_i32 = arith.constant 0 : i32
    %c0_i32_0 = arith.constant 0 : i32
    return %arg0, %c0_i32 : i32, i32
  }
}

</mosaic_0001>

<bundles_post_ra>
// kernel: tpu_custom_call.1
= control target key start
LH: loop header
LB: loop body
LE: loop exit
PB: predicated region body
PF: predicated region fallthrough
CT: control target
= control target key end

     0   :  { %12 = vsyncpa [#allocation3], 0  ;;  %s7835_s0 = inlined_call_operand.hbm [shape: bf16[14,16,256], index: 0, kind: input, shape index: {}]   ;;  %s7836_s1 = inlined_call_operand.hbm [shape: bf16[256,1152], index: 1, kind: input, shape index: {}]   ;;  %s7837_s2 = inlined_call_operand.hbm [shape: f32[1,1152], index: 2, kind: input, shape index: {}]   ;;  %s7838_s3 = inlined_call_operand.hbm [shape: bf16[1152,384], index: 3, kind: input, shape index: {}]   ;;  %s7839_s4 = inlined_call_operand.vmem [shape: f32[1,384], index: 4, kind: input, shape index: {}]   ;;  %s7840_s5 = inlined_call_operand.hbm [shape: bf16[384,128], index: 5, kind: input, shape index: {}]   ;;  %s7841_s6 = inlined_call_operand.vmem [shape: f32[1,128], index: 6, kind: input, shape index: {}]   ;;  %s7842_s7 = inlined_call_operand.hbm [shape: f32[16,128], index: 7, kind: output, shape index: {}]  }
   0x1   :  { %13 = vsyncpa [#allocation6], 0 }
   0x2   :  { %14 = vsyncpa [#allocation9], 0  ;;  %s33_s26 = sshll.u32 %s7836_s1, 4  ;;  %s34_s26 = int_to_ptr.hbm [resolvable:$true] %s33_s26 }
   0x3   :  { %15 = vsyncpa [#allocation4], 0  ;;  %s7102_s27 = smov [#allocation5]   ;;  %s57_s8 = sshll.u32 %s7838_s3, 4  ;;  %s58_s8 = int_to_ptr.hbm [resolvable:$true] %s57_s8 }
   0x4   :  { %s35_s28 = sshll.u32 %s7102_s27, 4  ;;  %s7103_s9 = smov 576   ;;  %s36_s28 = int_to_ptr.vmem [resolvable:$true] %s35_s28 }
   0x5   :  { %s7104_s10 = smov 36   ;;  %s7105_s11 = smov [#allocation8]  }
   0x6   :  { %41 = dma.hbm_to_vmem [thread:$0]  %s34_s26, 18432, %s36_s28, [#allocation6], %s7103_s9, %s7103_s9, %s7104_s10  }
   0x7   :  { %s59_s12 = sshll.u32 %s7105_s11, 4  ;;  %s7106_s13 = smov 192   ;;  %s60_s12 = int_to_ptr.vmem [resolvable:$true] %s59_s12 }
   0x8   :  { %s7107_s14 = smov 12   ;;  %s20_s16 = sshll.u32 %s7835_s0, 4  ;;  %s21_s16 = int_to_ptr.hbm [resolvable:$true] %s20_s16 }
   0x9   :  { %65 = dma.hbm_to_vmem [thread:$0]  %s58_s8, 27648, %s60_s12, [#allocation9], %s7106_s13, %s7106_s13, %s7107_s14  }
   0xa   :  { %s7108_s17 = smov [#allocation2]   ;;  %s47_s20 = sshll.u32 %s7837_s2, 4  ;;  %s48_s20 = int_to_ptr.hbm [resolvable:$true] %s47_s20 }
   0xb   :  { %s22_s18 = sshll.u32 %s7108_s17, 4  ;;  %s7109_s21 = smov 128   ;;  %s23_s18 = int_to_ptr.vmem [resolvable:$true] %s22_s18 }
   0xc   :  { %s7110_s22 = smov 8   ;;  %s7111_s23 = smov [#allocation7]  }
   0xd   :  { %28 = dma.hbm_to_vmem [thread:$0]  %s21_s16, 3584, %s23_s18, [#allocation3], %s7109_s21, %s7109_s21, %s7110_s22  }
   0xe   :  { %s49_s24 = sshll.u32 %s7111_s23, 4  ;;  %s72_s0 = sshll.u32 %s7840_s5, 4  ;;  %s50_s24 = int_to_ptr.vmem [resolvable:$true] %s49_s24  ;;  %s73_s0 = int_to_ptr.hbm [resolvable:$true] %s72_s0 }
   0xf   :  { %52 = dma.hbm_to_vmem [thread:$0]  %s48_s20, 144, %s50_s24, [#allocation6]  }
  0x10   :  { %s7112_s27 = smov [#allocation10]   ;;  %s7113_s2 = smov 64  }
  0x11   :  { %s74_s28 = sshll.u32 %s7112_s27, 4  ;;  %s7114_s29 = smov 4   ;;  %s75_s28 = int_to_ptr.vmem [resolvable:$true] %s74_s28 }
  0x12   :  { %80 = dma.hbm_to_vmem [thread:$0]  %s73_s0, 3072, %s75_s28, [#allocation9], %s7113_s2, %s7113_s2, %s7114_s29  }
  0x13   :  { %7094 = dma.done.wait [#allocation3], 3584  }
  0x14   :  { %7095 = vsyncadd [#allocation3], 4294963712 }
  0x15   :  { %7096 = dma.done.wait [#allocation6], 18576  }
  0x16   :  { %7097 = vsyncadd [#allocation6], 4294948720 }
  0x17   :  { %7098 = dma.done.wait [#allocation9], 30720  }
  0x18   :  { %7099 = vsyncadd [#allocation9], 4294936576  ;;  %v5240_v0 = vld [vmem:[#allocation5 + $0x1f8] sm:$0xf]  ;;  %v6617_v1 = vld [vmem:[#allocation5 + $0x218] sm:$0xf0] }
  0x19   :  { %v5528_v2 = vld [vmem:[#allocation5 + $0x438] sm:$0xf]  ;;  %v5241_v3 = vor.u32 %v6617_v1, %v5240_v0  ;;  %v6689_v4 = vld [vmem:[#allocation5 + $0x458] sm:$0xf0]  ;;  %v5242_v6 = vld [vmem:[#allocation5 + $0x21c] sm:$0xf0] }
  0x1a   :  { %v6613_v5 = vld [vmem:[#allocation5 + $0x1fc] sm:$0xf]  ;;  %v5529_v7 = vor.u32 %v6689_v4, %v5528_v2  ;;  %v5530_v10 = vld [vmem:[#allocation5 + $0x45c] sm:$0xf0]  ;;  %v5204_v11 = vld [vmem:[#allocation5 + $0x1b0] sm:$0xf] }
  0x1b   :  { %v5245_v8 = vor.u32 %v6613_v5, %v5242_v6  ;;  %v6685_v9 = vld [vmem:[#allocation5 + $0x43c] sm:$0xf]  ;;  %1167 = vmatpush.bf16.msra.mxu0 %v5241_v3  ;;  %v6608_v13 = vld [vmem:[#allocation5 + $0x1d0] sm:$0xf0]  ;;  %v5492_v14 = vld [vmem:[#allocation5 + $0x3f0] sm:$0xf] }
  0x1c   :  { %v5533_v12 = vor.u32 %v6685_v9, %v5530_v10  ;;  %v6680_v15 = vld [vmem:[#allocation5 + $0x410] sm:$0xf0]  ;;  %1246 = vmatpush.bf16.msra.mxu1 %v5529_v7  ;;  %v5205_v16 = vor.u32 %v6608_v13, %v5204_v11  ;;  %v5206_v19 = vld [vmem:[#allocation5 + $0x1d4] sm:$0xf0]  ;;  %v5168_v23 = vld [vmem:[#allocation5 + $0x168] sm:$0xf] }
  0x1d   :  { %1325 = vmatpush.bf16.msra.mxu2 %v5245_v8  ;;  %v5493_v17 = vor.u32 %v6680_v15, %v5492_v14  ;;  %v6604_v18 = vld [vmem:[#allocation5 + $0x1b4] sm:$0xf]  ;;  %v5494_v22 = vld [vmem:[#allocation5 + $0x414] sm:$0xf0]  ;;  %v6599_v24 = vld [vmem:[#allocation5 + $0x188] sm:$0xf0] }
  0x1e   :  { %v6676_v20 = vld [vmem:[#allocation5 + $0x3f4] sm:$0xf]  ;;  %1404 = vmatpush.bf16.msra.mxu3 %v5533_v12  ;;  %v5209_v21 = vor.u32 %v6604_v18, %v5206_v19  ;;  %v5456_v26 = vld [vmem:[#allocation5 + $0x3a8] sm:$0xf]  ;;  %v6671_v27 = vld [vmem:[#allocation5 + $0x3c8] sm:$0xf0]  ;;  %v5169_v29 = vor.u32 %v6599_v24, %v5168_v23 }
  0x1f   :  { %v5497_v25 = vor.u32 %v6676_v20, %v5494_v22  ;;  %v6595_v28 = vld [vmem:[#allocation5 + $0x16c] sm:$0xf]  ;;  %1168 = vmatpush.bf16.msra.mxu0 %v5205_v16  ;;  %v5170_v30 = vld [vmem:[#allocation5 + $0x18c] sm:$0xf0]  ;;  %v5457_v33 = vor.u32 %v6671_v27, %v5456_v26  ;;  %v5132_v35 = vld [vmem:[#allocation5 + $0x120] sm:$0xf] }
  0x20   :  { %v6667_v31 = vld [vmem:[#allocation5 + $0x3ac] sm:$0xf]  ;;  %v5458_v32 = vld [vmem:[#allocation5 + $0x3cc] sm:$0xf0]  ;;  %1247 = vmatpush.bf16.msra.mxu1 %v5493_v17  ;;  %v5173_v34 = vor.u32 %v6595_v28, %v5170_v30  ;;  %v6590_v36 = vld [vmem:[#allocation5 + $0x140] sm:$0xf0] }
  0x21   :  { %1326 = vmatpush.bf16.msra.mxu2 %v5209_v21  ;;  %v5420_v37 = vld [vmem:[#allocation5 + $0x360] sm:$0xf]  ;;  %v5461_v38 = vor.u32 %v6667_v31, %v5458_v32  ;;  %v6662_v39 = vld [vmem:[#allocation5 + $0x380] sm:$0xf0]  ;;  %v5134_v41 = vld [vmem:[#allocation5 + $0x144] sm:$0xf0]  ;;  %v5133_v44 = vor.u32 %v6590_v36, %v5132_v35 }
  0x22   :  { %1405 = vmatpush.bf16.msra.mxu3 %v5497_v25  ;;  %v6586_v40 = vld [vmem:[#allocation5 + $0x124] sm:$0xf]  ;;  %v5422_v43 = vld [vmem:[#allocation5 + $0x384] sm:$0xf0]  ;;  %v5421_v45 = vor.u32 %v6662_v39, %v5420_v37  ;;  %v5096_v47 = vld [vmem:[#allocation5 + $0xd8] sm:$0xf] }
  0x23   :  { %v6658_v42 = vld [vmem:[#allocation5 + $0x364] sm:$0xf]  ;;  %1169 = vmatpush.bf16.msra.mxu0 %v5169_v29  ;;  %v5137_v46 = vor.u32 %v6586_v40, %v5134_v41  ;;  %v6581_v48 = vld [vmem:[#allocation5 + $0xf8] sm:$0xf0]  ;;  %v5384_v49 = vld [vmem:[#allocation5 + $0x318] sm:$0xf] }
  0x24   :  { %1248 = vmatpush.bf16.msra.mxu1 %v5457_v33  ;;  %v5425_v50 = vor.u32 %v6658_v42, %v5422_v43  ;;  %v6653_v51 = vld [vmem:[#allocation5 + $0x338] sm:$0xf0]  ;;  %v5098_v53 = vld [vmem:[#allocation5 + $0xfc] sm:$0xf0]  ;;  %v5097_v56 = vor.u32 %v6581_v48, %v5096_v47  ;;  %v5060_v59 = vld [vmem:[#allocation5 + $0x90] sm:$0xf] }
  0x25   :  { %1327 = vmatpush.bf16.msra.mxu2 %v5173_v34  ;;  %v6577_v52 = vld [vmem:[#allocation5 + $0xdc] sm:$0xf]  ;;  %v5386_v55 = vld [vmem:[#allocation5 + $0x33c] sm:$0xf0]  ;;  %v5385_v57 = vor.u32 %v6653_v51, %v5384_v49  ;;  %v6572_v60 = vld [vmem:[#allocation5 + $0xb0] sm:$0xf0] }
  0x26   :  { %1406 = vmatpush.bf16.msra.mxu3 %v5461_v38  ;;  %v6649_v54 = vld [vmem:[#allocation5 + $0x31c] sm:$0xf]  ;;  %v5101_v58 = vor.u32 %v6577_v52, %v5098_v53  ;;  %v5348_v61 = vld [vmem:[#allocation5 + $0x2d0] sm:$0xf]  ;;  %v6644_v63 = vld [vmem:[#allocation5 + $0x2f0] sm:$0xf0]  ;;  %v5061_v4 = vor.u32 %v6572_v60, %v5060_v59 }
  0x27   :  { %1170 = vmatpush.bf16.msra.mxu0 %v5133_v44  ;;  %v5389_v62 = vor.u32 %v6649_v54, %v5386_v55  ;;  %v6568_v0 = vld [vmem:[#allocation5 + $0x94] sm:$0xf]  ;;  %v5062_v1 = vld [vmem:[#allocation5 + $0xb4] sm:$0xf0]  ;;  %v5349_v5 = vor.u32 %v6644_v63, %v5348_v61  ;;  %v5024_v7 = vld [vmem:[#allocation5 + $0x48] sm:$0xf] }
  0x28   :  { %1249 = vmatpush.bf16.msra.mxu1 %v5421_v45  ;;  %v6640_v2 = vld [vmem:[#allocation5 + $0x2d4] sm:$0xf]  ;;  %v5350_v3 = vld [vmem:[#allocation5 + $0x2f4] sm:$0xf0]  ;;  %v5065_v6 = vor.u32 %v6568_v0, %v5062_v1  ;;  %v6563_v8 = vld [vmem:[#allocation5 + $0x68] sm:$0xf0] }
  0x29   :  { %1328 = vmatpush.bf16.msra.mxu2 %v5137_v46  ;;  %v5312_v9 = vld [vmem:[#allocation5 + $0x288] sm:$0xf]  ;;  %v5353_v10 = vor.u32 %v6640_v2, %v5350_v3  ;;  %v6635_v11 = vld [vmem:[#allocation5 + $0x2a8] sm:$0xf0]  ;;  %v5026_v13 = vld [vmem:[#allocation5 + $0x6c] sm:$0xf0]  ;;  %v5025_v16 = vor.u32 %v6563_v8, %v5024_v7 }
  0x2a   :  { %1407 = vmatpush.bf16.msra.mxu3 %v5425_v50  ;;  %v6559_v12 = vld [vmem:[#allocation5 + $0x4c] sm:$0xf]  ;;  %v5314_v15 = vld [vmem:[#allocation5 + $0x2ac] sm:$0xf0]  ;;  %v4988_v17 = vld [vmem:[#allocation5] sm:$0xf]  ;;  %v5313_v18 = vor.u32 %v6635_v11, %v5312_v9 }
  0x2b   :  { %1171 = vmatpush.bf16.msra.mxu0 %v5097_v56  ;;  %v6631_v14 = vld [vmem:[#allocation5 + $0x28c] sm:$0xf]  ;;  %v5029_v19 = vor.u32 %v6559_v12, %v5026_v13  ;;  %v6554_v20 = vld [vmem:[#allocation5 + $0x20] sm:$0xf0]  ;;  %v5276_v21 = vld [vmem:[#allocation5 + $0x240] sm:$0xf] }
  0x2c   :  { %1250 = vmatpush.bf16.msra.mxu1 %v5385_v57  ;;  %v5317_v22 = vor.u32 %v6631_v14, %v5314_v15  ;;  %v6626_v23 = vld [vmem:[#allocation5 + $0x260] sm:$0xf0]  ;;  %v4990_v25 = vld [vmem:[#allocation5 + $0x24] sm:$0xf0]  ;;  %v4989_v28 = vor.u32 %v6554_v20, %v4988_v17  ;;  %v4876_v29 = vld [vmem:[#allocation2] sm:$0xf] }
  0x2d   :  { %1329 = vmatpush.bf16.msra.mxu2 %v5101_v58  ;;  %v6550_v24 = vld [vmem:[#allocation5 + $0x4] sm:$0xf]  ;;  %v5278_v27 = vld [vmem:[#allocation5 + $0x264] sm:$0xf0]  ;;  %v5277_v31 = vor.u32 %v6626_v23, %v5276_v21  ;;  %v4878_v34 = vld [vmem:[#allocation2 + $0x8] sm:$0xf0] }
  0x2e   :  { %1408 = vmatpush.bf16.msra.mxu3 %v5389_v62  ;;  %v6622_v26 = vld [vmem:[#allocation5 + $0x244] sm:$0xf]  ;;  %v6523_v30 = vld [vmem:[#allocation2 + $0x4] sm:$0xf0]  ;;  %v4993_v32 = vor.u32 %v6550_v24, %v4990_v25  ;;  %v5248_v38 = vld [vmem:[#allocation5 + $0x200] sm:$0xf] }
  0x2f   :  { %1172 = vmatpush.bf16.msra.mxu0 %v5061_v4  ;;  %v6522_v33 = vld [vmem:[#allocation2 + $0x4] sm:$0xf]  ;;  %v5281_v35 = vor.u32 %v6622_v26, %v5278_v27  ;;  %v7174_v36 = vor.u32 %v6523_v30, %v4876_v29  ;;  %v5536_v40 = vld [vmem:[#allocation5 + $0x440] sm:$0xf]  ;;  %v4884_v44 = vld [vmem:[#allocation2 + $0x10] sm:$0xf] }
  0x30   :  { %1251 = vmatpush.bf16.msra.mxu1 %v5349_v5  ;;  %v7176_v37 = vor.u32 %v6522_v33, %v4878_v34  ;;  %v6618_v39 = vld [vmem:[#allocation5 + $0x220] sm:$0xf0]  ;;  %v6525_v45 = vld [vmem:[#allocation2 + $0x14] sm:$0xf0]  ;;  %v6524_v46 = vld [vmem:[#allocation2 + $0x14] sm:$0xf] }
  0x31   :  { %1330 = vmatpush.bf16.msra.mxu2 %v5065_v6  ;;  %v5249_v41 = vor.u32 %v6618_v39, %v5248_v38  ;;  %v6690_v42 = vld [vmem:[#allocation5 + $0x460] sm:$0xf0]  ;;  %v4886_v47 = vld [vmem:[#allocation2 + $0x18] sm:$0xf0]  ;;  %v7182_v48 = vor.u32 %v6525_v45, %v4884_v44  ;;  %v4892_v50 = vld [vmem:[#allocation2 + $0x20] sm:$0xf] }
  0x32   :  { %1409 = vmatpush.bf16.msra.mxu3 %v5353_v10  ;;  %v5537_v43 = vor.u32 %v6690_v42, %v5536_v40  ;;  %v7184_v49 = vor.u32 %v6524_v46, %v4886_v47  ;;  %v6527_v51 = vld [vmem:[#allocation2 + $0x24] sm:$0xf0]  ;;  %v6526_v52 = vld [vmem:[#allocation2 + $0x24] sm:$0xf]  ;;  %v4894_v53 = vld [vmem:[#allocation2 + $0x28] sm:$0xf0] }
  0x33   :  { %1173 = vmatpush.bf16.msra.mxu0 %v5025_v16  ;;  %v7190_v54 = vor.u32 %v6527_v51, %v4892_v50  ;;  %v7192_v55 = vor.u32 %v6526_v52, %v4894_v53  ;;  %v5212_v56 = vld [vmem:[#allocation5 + $0x1b8] sm:$0xf]  ;;  %v6609_v57 = vld [vmem:[#allocation5 + $0x1d8] sm:$0xf0]  ;;  %v4900_v62 = vld [vmem:[#allocation2 + $0x30] sm:$0xf] }
  0x34   :  { %1252 = vmatpush.bf16.msra.mxu1 %v5313_v18  ;;  %v5500_v58 = vld [vmem:[#allocation5 + $0x3f8] sm:$0xf]  ;;  %v5213_v59 = vor.u32 %v6609_v57, %v5212_v56  ;;  %v6681_v60 = vld [vmem:[#allocation5 + $0x418] sm:$0xf0]  ;;  %v6528_v0 = vld [vmem:[#allocation2 + $0x34] sm:$0xf] }
  0x35   :  { %1331 = vmatpush.bf16.msra.mxu2 %v5029_v19  ;;  %v5501_v61 = vor.u32 %v6681_v60, %v5500_v58  ;;  %v6529_v63 = vld [vmem:[#allocation2 + $0x34] sm:$0xf0]  ;;  %v4902_v1 = vld [vmem:[#allocation2 + $0x38] sm:$0xf0]  ;;  %v5176_v4 = vld [vmem:[#allocation5 + $0x170] sm:$0xf] }
  0x36   :  { %1410 = vmatpush.bf16.msra.mxu3 %v5317_v22  ;;  %v7198_v2 = vor.u32 %v6529_v63, %v4900_v62  ;;  %v7200_v3 = vor.u32 %v6528_v0, %v4902_v1  ;;  %v6600_v5 = vld [vmem:[#allocation5 + $0x190] sm:$0xf0]  ;;  %v5464_v6 = vld [vmem:[#allocation5 + $0x3b0] sm:$0xf]  ;;  %v4908_v10 = vld [vmem:[#allocation2 + $0x40] sm:$0xf] }
  0x37   :  { %1174 = vmatpush.bf16.msra.mxu0 %v4989_v28  ;;  %v5177_v7 = vor.u32 %v6600_v5, %v5176_v4  ;;  %v6672_v8 = vld [vmem:[#allocation5 + $0x3d0] sm:$0xf0]  ;;  %v6531_v11 = vld [vmem:[#allocation2 + $0x44] sm:$0xf0]  ;;  %v6530_v12 = vld [vmem:[#allocation2 + $0x44] sm:$0xf] }
  0x38   :  { %1253 = vmatpush.bf16.msra.mxu1 %v5277_v31  ;;  %v5465_v9 = vor.u32 %v6672_v8, %v5464_v6  ;;  %v4910_v13 = vld [vmem:[#allocation2 + $0x48] sm:$0xf0]  ;;  %v7206_v14 = vor.u32 %v6531_v11, %v4908_v10  ;;  %v4916_v16 = vld [vmem:[#allocation2 + $0x50] sm:$0xf]  ;;  %v6533_v17 = vld [vmem:[#allocation2 + $0x54] sm:$0xf0] }
  0x39   :  { %1332 = vmatpush.bf16.msra.mxu2 %v4993_v32  ;;  %v7208_v15 = vor.u32 %v6530_v12, %v4910_v13  ;;  %v6532_v18 = vld [vmem:[#allocation2 + $0x54] sm:$0xf]  ;;  %v4918_v19 = vld [vmem:[#allocation2 + $0x58] sm:$0xf0]  ;;  %v7214_v20 = vor.u32 %v6533_v17, %v4916_v16  ;;  %v5140_v22 = vld [vmem:[#allocation5 + $0x128] sm:$0xf] }
  0x3a   :  { %1411 = vmatpush.bf16.msra.mxu3 %v5281_v35  ;;  %1175 = vmatmul.bf16.vlgmr.msra.gmra.mxu0 %v7174_v36  ;;  %v7216_v21 = vor.u32 %v6532_v18, %v4918_v19  ;;  %v6591_v23 = vld [vmem:[#allocation5 + $0x148] sm:$0xf0]  ;;  %v5428_v24 = vld [vmem:[#allocation5 + $0x368] sm:$0xf]  ;;  %v4924_v28 = vld [vmem:[#allocation2 + $0x60] sm:$0xf] }
  0x3b   :  { %1254 = vmatmul.bf16.vlgmr.msra.gmra.mxu1 %v7176_v37  ;;  %1483 = vmatpush.bf16.msrb.mxu0 %v5249_v41  ;;  %v5141_v25 = vor.u32 %v6591_v23, %v5140_v22  ;;  %v6663_v26 = vld [vmem:[#allocation5 + $0x388] sm:$0xf0]  ;;  %v6535_v29 = vld [vmem:[#allocation2 + $0x64] sm:$0xf0]  ;;  %v6534_v30 = vld [vmem:[#allocation2 + $0x64] sm:$0xf] }
  0x3c   :  { %1333 = vmatmul.bf16.vlgmr.msra.gmra.mxu2 %v7174_v36  ;;  %1562 = vmatpush.bf16.msrb.mxu1 %v5537_v43  ;;  %v5429_v27 = vor.u32 %v6663_v26, %v5428_v24  ;;  %v4926_v31 = vld [vmem:[#allocation2 + $0x68] sm:$0xf0]  ;;  %v7222_v32 = vor.u32 %v6535_v29, %v4924_v28  ;;  %v4932_v34 = vld [vmem:[#allocation2 + $0x70] sm:$0xf]  ;;  %v6537_v35 = vld [vmem:[#allocation2 + $0x74] sm:$0xf0] }
  0x3d   :  { %1412 = vmatmul.bf16.vlgmr.msra.gmra.mxu3 %v7176_v37  ;;  %v7224_v33 = vor.u32 %v6534_v30, %v4926_v31  ;;  %v6536_v38 = vld [vmem:[#allocation2 + $0x74] sm:$0xf]  ;;  %v4934_v39 = vld [vmem:[#allocation2 + $0x78] sm:$0xf0]  ;;  %v7230_v40 = vor.u32 %v6537_v35, %v4932_v34  ;;  %v4940_v42 = vld [vmem:[#allocation2 + $0x80] sm:$0xf] }
  0x3e   :  { %v7232_v41 = vor.u32 %v6536_v38, %v4934_v39  ;;  %v6539_v43 = vld [vmem:[#allocation2 + $0x84] sm:$0xf0]  ;;  %v5104_v44 = vld [vmem:[#allocation5 + $0xe0] sm:$0xf]  ;;  %v6582_v45 = vld [vmem:[#allocation5 + $0x100] sm:$0xf0] }
  0x3f   :  { %1484 = vmatpush.bf16.msrb.mxu0 %v5213_v59  ;;  %v5392_v46 = vld [vmem:[#allocation5 + $0x320] sm:$0xf]  ;;  %v6538_v47 = vld [vmem:[#allocation2 + $0x84] sm:$0xf]  ;;  %v4942_v50 = vld [vmem:[#allocation2 + $0x88] sm:$0xf0]  ;;  %v5105_v51 = vor.u32 %v6582_v45, %v5104_v44  ;;  %v7238_v56 = vor.u32 %v6539_v43, %v4940_v42 }
  0x40   :  { %1563 = vmatpush.bf16.msrb.mxu1 %v5501_v61  ;;  %v6654_v52 = vld [vmem:[#allocation5 + $0x340] sm:$0xf0]  ;;  %v7240_v58 = vor.u32 %v6538_v47, %v4942_v50  ;;  %v4948_v5 = vld [vmem:[#allocation2 + $0x90] sm:$0xf]  ;;  %v6541_v6 = vld [vmem:[#allocation2 + $0x94] sm:$0xf0] }
  0x41   :  { %v5393_v53 = vor.u32 %v6654_v52, %v5392_v46  ;;  %v4950_v8 = vld [vmem:[#allocation2 + $0x98] sm:$0xf0]  ;;  %v7250_v10 = vor.u32 %v6541_v6, %v4948_v5  ;;  %v5068_v22 = vld [vmem:[#allocation5 + $0x98] sm:$0xf]  ;;  %v4956_v42 = vld [vmem:[#allocation2 + $0xa0] sm:$0xf] }
  0x42   :  { %7860 = vst [vmem:[#allocation16_spill] sm:$0xff] %v7240_v58  ;;  %v6573_v23 = vld [vmem:[#allocation5 + $0xb8] sm:$0xf0]  ;;  %v5356_v24 = vld [vmem:[#allocation5 + $0x2d8] sm:$0xf]  ;;  %s7115_s9 = smov [#allocation11]  }
  0x43   :  { %1485 = vmatpush.bf16.msrb.mxu0 %v5177_v7  ;;  %v6540_v7 = vld [vmem:[#allocation2 + $0x94] sm:$0xf]  ;;  %7861 = vst [vmem:[#allocation17_spill] sm:$0xff] %v7250_v10  ;;  %v6645_v26 = vld [vmem:[#allocation5 + $0x2f8] sm:$0xf0]  ;;  %s4857_s10 = sshll.u32 %s7115_s9, 4  ;;  %s4858_s10 = int_to_ptr.vmem [resolvable:$true] %s4857_s10 }
  0x44   :  { %1564 = vmatpush.bf16.msrb.mxu1 %v5465_v9  ;;  %v7252_v13 = vor.u32 %v6540_v7, %v4950_v8  ;;  %v5357_v28 = vor.u32 %v6645_v26, %v5356_v24  ;;  %v6543_v43 = vld [vmem:[#allocation2 + $0xa4] sm:$0xf0]  ;;  %v6542_v44 = vld [vmem:[#allocation2 + $0xa4] sm:$0xf]  ;;  %v4958_v45 = vld [vmem:[#allocation2 + $0xa8] sm:$0xf0] }
  0x45   :  { %v7262_v47 = vor.u32 %v6543_v43, %v4956_v42  ;;  %v7264_v52 = vor.u32 %v6542_v44, %v4958_v45  ;;  %v6605_v7 = vld [vmem:[#allocation5 + $0x1bc] sm:$0xf]  ;;  %v5214_v8 = vld [vmem:[#allocation5 + $0x1dc] sm:$0xf0]  ;;  %v5178_v26 = vld [vmem:[#allocation5 + $0x194] sm:$0xf0] }
  0x46   :  { %7862 = vst [vmem:[#allocation18_spill] sm:$0xff] %v7252_v13  ;;  %v4966_v42 = vld [vmem:[#allocation2 + $0xb8] sm:$0xf0]  ;;  %s4859_s13 = sshll.u32 %s7842_s7, 4  ;;  %s4860_s13 = int_to_ptr.hbm [resolvable:$true] %s4859_s13 }
  0x47   :  { %1486 = vmatpush.bf16.msrb.mxu0 %v5141_v25  ;;  %v5069_v25 = vor.u32 %v6573_v23, %v5068_v22  ;;  %7863 = vst [vmem:[#allocation19_spill] sm:$0xff] %v7262_v47 }
  0x48   :  { %1565 = vmatpush.bf16.msrb.mxu1 %v5429_v27  ;;  %7864 = vst [vmem:[#allocation20_spill] sm:$0xff] %v7264_v52 }
  0x4a   :  { %1180 = vmatmul.bf16.gmra.mxu0 %v7182_v48 }
  0x4b   :  { %1259 = vmatmul.bf16.gmra.mxu1 %v7184_v49  ;;  %1487 = vmatpush.bf16.msrb.mxu0 %v5105_v51 }
  0x4c   :  { %1338 = vmatmul.bf16.gmra.mxu2 %v7182_v48  ;;  %1566 = vmatpush.bf16.msrb.mxu1 %v5393_v53 }
  0x4d   :  { %1417 = vmatmul.bf16.gmra.mxu3 %v7184_v49 }
  0x4f   :  { %1488 = vmatpush.bf16.msrb.mxu0 %v5069_v25  ;;  %v6596_v25 = vld [vmem:[#allocation5 + $0x174] sm:$0xf] }
  0x50   :  { %1567 = vmatpush.bf16.msrb.mxu1 %v5357_v28 }
  0x5a   :  { %1185 = vmatmul.bf16.gmra.mxu0 %v7190_v54 }
  0x5b   :  { %1264 = vmatmul.bf16.gmra.mxu1 %v7192_v55 }
  0x5c   :  { %1343 = vmatmul.bf16.gmra.mxu2 %v7190_v54 }
  0x5d   :  { %1422 = vmatmul.bf16.gmra.mxu3 %v7192_v55 }
  0x6a   :  { %1190 = vmatmul.bf16.gmra.mxu0 %v7198_v2 }
  0x6b   :  { %1269 = vmatmul.bf16.gmra.mxu1 %v7200_v3 }
  0x6c   :  { %1348 = vmatmul.bf16.gmra.mxu2 %v7198_v2 }
  0x6d   :  { %1427 = vmatmul.bf16.gmra.mxu3 %v7200_v3 }
  0x7a   :  { %1195 = vmatmul.bf16.gmra.mxu0 %v7206_v14 }
  0x7b   :  { %1274 = vmatmul.bf16.gmra.mxu1 %v7208_v15 }
  0x7c   :  { %1353 = vmatmul.bf16.gmra.mxu2 %v7206_v14 }
  0x7d   :  { %1432 = vmatmul.bf16.gmra.mxu3 %v7208_v15 }
  0x8a   :  { %1200 = vmatmul.bf16.gmra.mxu0 %v7214_v20 }
  0x8b   :  { %1279 = vmatmul.bf16.gmra.mxu1 %v7216_v21 }
  0x8c   :  { %1358 = vmatmul.bf16.gmra.mxu2 %v7214_v20 }
  0x8d   :  { %1437 = vmatmul.bf16.gmra.mxu3 %v7216_v21 }
  0x9a   :  { %1205 = vmatmul.bf16.gmra.mxu0 %v7222_v32 }
  0x9b   :  { %1284 = vmatmul.bf16.gmra.mxu1 %v7224_v33 }
  0x9c   :  { %1363 = vmatmul.bf16.gmra.mxu2 %v7222_v32 }
  0x9d   :  { %1442 = vmatmul.bf16.gmra.mxu3 %v7224_v33 }
  0xaa   :  { %1210 = vmatmul.bf16.gmra.mxu0 %v7230_v40 }
  0xab   :  { %1289 = vmatmul.bf16.gmra.mxu1 %v7232_v41 }
  0xac   :  { %1368 = vmatmul.bf16.gmra.mxu2 %v7230_v40 }
  0xad   :  { %1447 = vmatmul.bf16.gmra.mxu3 %v7232_v41 }
  0xb7   :  { %v1176_v57 = vpop.f32.mrf.mxu0 }
  0xb8   :  { %v1255_v59 = vpop.f32.mrf.mxu1 }
  0xb9   :  { %v1256_v60 = vadd.f32 %v1255_v59, %v1176_v57 }
  0xba   :  { %1215 = vmatmul.bf16.gmra.mxu0 %v7238_v56 }
  0xbb   :  { %1294 = vmatmul.bf16.gmra.mxu1 %v7240_v58 }
  0xbc   :  { %1373 = vmatmul.bf16.gmra.mxu2 %v7238_v56 }
  0xbd   :  { %1452 = vmatmul.bf16.gmra.mxu3 %v7240_v58 }
  0xbf   :  { %v1334_v61 = vpop.f32.mrf.mxu2  ;;  %v1178_v63 = vpop.f32.mrf.mxu0 }
  0xc0   :  { %v1413_v62 = vpop.f32.mrf.mxu3  ;;  %v1257_v1 = vpop.f32.mrf.mxu1 }
  0xc1   :  { %v7246_v0 = vadd.f32 %v1413_v62, %v1334_v61  ;;  %v7248_v4 = vadd.f32 %v1257_v1, %v1178_v63  ;;  %v6614_v61 = vld [vmem:[#allocation5 + $0x204] sm:$0xf]  ;;  %v5250_v62 = vld [vmem:[#allocation5 + $0x224] sm:$0xf0] }
  0xc2   :  { %v6686_v1 = vld [vmem:[#allocation5 + $0x444] sm:$0xf] }
  0xc7   :  { %v1336_v9 = vpop.f32.mrf.mxu2  ;;  %v1181_v12 = vpop.f32.mrf.mxu0 }
  0xc8   :  { %v1415_v11 = vpop.f32.mrf.mxu3  ;;  %v1260_v17 = vpop.f32.mrf.mxu1 }
  0xc9   :  { %v7254_v16 = vadd.f32 %v1415_v11, %v1336_v9  ;;  %v1261_v18 = vadd.f32 %v1260_v17, %v1181_v12  ;;  %v6677_v9 = vld [vmem:[#allocation5 + $0x3fc] sm:$0xf]  ;;  %v5502_v17 = vld [vmem:[#allocation5 + $0x41c] sm:$0xf0] }
  0xca   :  { %1220 = vmatmul.bf16.gmra.mxu0 %v7250_v10  ;;  %v5505_v22 = vor.u32 %v6677_v9, %v5502_v17  ;;  %v6564_v9 = vld [vmem:[#allocation5 + $0x70] sm:$0xf0]  ;;  %v6650_v17 = vld [vmem:[#allocation5 + $0x324] sm:$0xf] }
  0xcb   :  { %v2517_v19 = vmax.f32 %v1256_v60, %v1261_v18  ;;  %1299 = vmatmul.bf16.gmra.mxu1 %v7252_v13 }
  0xcc   :  { %1378 = vmatmul.bf16.gmra.mxu2 %v7250_v10 }
  0xcd   :  { %1457 = vmatmul.bf16.gmra.mxu3 %v7252_v13 }
  0xcf   :  { %v1339_v27 = vpop.f32.mrf.mxu2  ;;  %v1183_v30 = vpop.f32.mrf.mxu0 }
  0xd0   :  { %v1418_v29 = vpop.f32.mrf.mxu3  ;;  %v1262_v34 = vpop.f32.mrf.mxu1 }
  0xd1   :  { %v1419_v31 = vadd.f32 %v1418_v29, %v1339_v27  ;;  %v1263_v35 = vadd.f32 %v1262_v34, %v1183_v30  ;;  %v6668_v27 = vld [vmem:[#allocation5 + $0x3b4] sm:$0xf]  ;;  %v4964_v29 = vld [vmem:[#allocation2 + $0xb0] sm:$0xf]  ;;  %v6545_v30 = vld [vmem:[#allocation2 + $0xb4] sm:$0xf0] }
  0xd2   :  { %v5466_v34 = vld [vmem:[#allocation5 + $0x3d4] sm:$0xf0]  ;;  %v7277_v45 = vor.u32 %v6545_v30, %v4964_v29 }
  0xd3   :  { %v2530_v38 = vmax.f32 %v7246_v0, %v1419_v31  ;;  %v2556_v39 = vmax.f32 %v7248_v4, %v1263_v35  ;;  %v5253_v0 = vor.u32 %v6614_v61, %v5250_v62  ;;  %v5538_v4 = vld [vmem:[#allocation5 + $0x464] sm:$0xf0]  ;;  %v5181_v31 = vor.u32 %v6596_v25, %v5178_v26  ;;  %v6544_v35 = vld [vmem:[#allocation2 + $0xb4] sm:$0xf]  ;;  %v6569_v25 = vld [vmem:[#allocation5 + $0x9c] sm:$0xf] }
  0xd4   :  { %v5541_v5 = vor.u32 %v6686_v1, %v5538_v4  ;;  %v5469_v43 = vor.u32 %v6668_v27, %v5466_v34  ;;  %7865 = vst [vmem:[#allocation21_spill] sm:$0xff] %v7277_v45  ;;  %v5070_v26 = vld [vmem:[#allocation5 + $0xbc] sm:$0xf0]  ;;  %v6641_v27 = vld [vmem:[#allocation5 + $0x2dc] sm:$0xf] }
  0xd5   :  { %1641 = vmatpush.bf16.msrb.mxu2 %v5253_v0  ;;  %v5358_v34 = vld [vmem:[#allocation5 + $0x2fc] sm:$0xf0] }
  0xd6   :  { %1716 = vmatpush.bf16.msrb.mxu3 %v5541_v5  ;;  %v6578_v5 = vld [vmem:[#allocation5 + $0xe4] sm:$0xf] }
  0xd7   :  { %v1341_v46 = vpop.f32.mrf.mxu2  ;;  %v1186_v51 = vpop.f32.mrf.mxu0 }
  0xd8   :  { %v1420_v50 = vpop.f32.mrf.mxu3  ;;  %v1265_v57 = vpop.f32.mrf.mxu1 }
  0xd9   :  { %v1421_v53 = vadd.f32 %v1420_v50, %v1341_v46  ;;  %v1266_v59 = vadd.f32 %v1265_v57, %v1186_v51  ;;  %v5142_v46 = vld [vmem:[#allocation5 + $0x14c] sm:$0xf0]  ;;  %v6659_v50 = vld [vmem:[#allocation5 + $0x36c] sm:$0xf]  ;;  %v7279_v57 = vor.u32 %v6544_v35, %v4966_v42 }
  0xda   :  { %1225 = vmatmul.bf16.gmra.mxu0 %v7262_v47  ;;  %1717 = vmatpush.bf16.msrb.mxu3 %v5505_v22 }
  0xdb   :  { %v2569_v60 = vmax.f32 %v7254_v16, %v1421_v53  ;;  %v7268_v63 = vmax.f32 %v2517_v19, %v1266_v59  ;;  %1304 = vmatmul.bf16.gmra.mxu1 %v7264_v52  ;;  %v5217_v16 = vor.u32 %v6605_v7, %v5214_v8  ;;  %7866 = vst [vmem:[#allocation22_spill] sm:$0xff] %v7279_v57  ;;  %v5430_v59 = vld [vmem:[#allocation5 + $0x38c] sm:$0xf0] }
  0xdc   :  { %1383 = vmatmul.bf16.gmra.mxu2 %v7262_v47  ;;  %v5433_v0 = vor.u32 %v6659_v50, %v5430_v59  ;;  %v5032_v8 = vld [vmem:[#allocation5 + $0x50] sm:$0xf]  ;;  %v5034_v50 = vld [vmem:[#allocation5 + $0x74] sm:$0xf0]  ;;  %v6547_v59 = vld [vmem:[#allocation2 + $0xc4] sm:$0xf0] }
  0xdd   :  { %1462 = vmatmul.bf16.gmra.mxu3 %v7264_v52  ;;  %1642 = vmatpush.bf16.msrb.mxu2 %v5217_v16  ;;  %v6636_v16 = vld [vmem:[#allocation5 + $0x2b0] sm:$0xf0] }
  0xde   :  { %1718 = vmatpush.bf16.msrb.mxu3 %v5469_v43  ;;  %v5361_v43 = vor.u32 %v6641_v27, %v5358_v34 }
  0xdf   :  { %v1344_v6 = vpop.f32.mrf.mxu2  ;;  %v1188_v12 = vpop.f32.mrf.mxu0 }
  0xe0   :  { %v1423_v11 = vpop.f32.mrf.mxu3  ;;  %v1267_v19 = vpop.f32.mrf.mxu1 }
  0xe1   :  { %v1424_v18 = vadd.f32 %v1423_v11, %v1344_v6  ;;  %v1268_v23 = vadd.f32 %v1267_v19, %v1188_v12  ;;  %1643 = vmatpush.bf16.msrb.mxu2 %v5181_v31  ;;  %v5106_v6 = vld [vmem:[#allocation5 + $0x104] sm:$0xf0]  ;;  %v5320_v11 = vld [vmem:[#allocation5 + $0x290] sm:$0xf]  ;;  %v5073_v31 = vor.u32 %v6569_v25, %v5070_v26 }
  0xe2   :  { %1719 = vmatpush.bf16.msrb.mxu3 %v5433_v0  ;;  %v5109_v12 = vor.u32 %v6578_v5, %v5106_v6  ;;  %v5321_v19 = vor.u32 %v6636_v16, %v5320_v11  ;;  %v6546_v0 = vld [vmem:[#allocation2 + $0xc4] sm:$0xf]  ;;  %v4974_v5 = vld [vmem:[#allocation2 + $0xc8] sm:$0xf0]  ;;  %v4996_v11 = vld [vmem:[#allocation5 + $0x8] sm:$0xf] }
  0xe3   :  { %v7273_v24 = vmax.f32 %v2530_v38, %v1424_v18  ;;  %v7275_v28 = vmax.f32 %v2556_v39, %v1268_v23  ;;  %v6587_v38 = vld [vmem:[#allocation5 + $0x12c] sm:$0xf]  ;;  %v5394_v18 = vld [vmem:[#allocation5 + $0x344] sm:$0xf0] }
  0xe4   :  { %v5145_v39 = vor.u32 %v6587_v38, %v5142_v46  ;;  %v5397_v22 = vor.u32 %v6650_v17, %v5394_v18  ;;  %1568 = vmatpush.bf16.msrb.mxu1 %v5321_v19  ;;  %v6560_v46 = vld [vmem:[#allocation5 + $0x54] sm:$0xf]  ;;  %v7295_v17 = vor.u32 %v6546_v0, %v4974_v5  ;;  %v6627_v18 = vld [vmem:[#allocation5 + $0x268] sm:$0xf0] }
  0xe5   :  { %v6551_v19 = vld [vmem:[#allocation5 + $0xc] sm:$0xf] }
  0xe6   :  { %1644 = vmatpush.bf16.msrb.mxu2 %v5145_v39  ;;  %1720 = vmatpush.bf16.msrb.mxu3 %v5397_v22  ;;  %v4972_v39 = vld [vmem:[#allocation2 + $0xc0] sm:$0xf]  ;;  %7868 = vst [vmem:[#allocation24_spill] sm:$0xff] %v7295_v17  ;;  %v4998_v22 = vld [vmem:[#allocation5 + $0x2c] sm:$0xf0] }
  0xe7   :  { %v1346_v44 = vpop.f32.mrf.mxu2  ;;  %v1191_v53 = vpop.f32.mrf.mxu0  ;;  %v5001_v27 = vor.u32 %v6551_v19, %v4998_v22 }
  0xe8   :  { %v1425_v51 = vpop.f32.mrf.mxu3  ;;  %v1270_v62 = vpop.f32.mrf.mxu1 }
  0xe9   :  { %v1426_v61 = vadd.f32 %v1425_v51, %v1346_v44  ;;  %v7281_v1 = vadd.f32 %v1270_v62, %v1191_v53  ;;  %v6632_v51 = vld [vmem:[#allocation5 + $0x294] sm:$0xf]  ;;  %v5322_v62 = vld [vmem:[#allocation5 + $0x2b4] sm:$0xf0] }
  0xea   :  { %1230 = vmatmul.bf16.gmra.mxu0 %v7277_v45  ;;  %1645 = vmatpush.bf16.msrb.mxu2 %v5109_v12  ;;  %v5325_v6 = vor.u32 %v6632_v51, %v5322_v62  ;;  %v6555_v12 = vld [vmem:[#allocation5 + $0x28] sm:$0xf0]  ;;  %v6549_v62 = vld [vmem:[#allocation2 + $0xd4] sm:$0xf0] }
  0xeb   :  { %v7283_v4 = vmax.f32 %v2569_v60, %v1426_v61  ;;  %v2519_v7 = vmax.f32 %v7268_v63, %v7281_v1  ;;  %1309 = vmatmul.bf16.gmra.mxu1 %v7279_v57  ;;  %v5033_v60 = vor.u32 %v6564_v9, %v5032_v8  ;;  %1721 = vmatpush.bf16.msrb.mxu3 %v5361_v43  ;;  %v6548_v63 = vld [vmem:[#allocation2 + $0xd4] sm:$0xf]  ;;  %v4982_v1 = vld [vmem:[#allocation2 + $0xd8] sm:$0xf0] }
  0xec   :  { %1388 = vmatmul.bf16.gmra.mxu2 %v7277_v45  ;;  %v5037_v61 = vor.u32 %v6560_v46, %v5034_v50  ;;  %v7293_v9 = vor.u32 %v6547_v59, %v4972_v39 }
  0xed   :  { %1467 = vmatmul.bf16.gmra.mxu3 %v7279_v57  ;;  %1489 = vmatpush.bf16.msrb.mxu0 %v5033_v60 }
  0xee   :  { %1646 = vmatpush.bf16.msrb.mxu2 %v5073_v31  ;;  %7867 = vst [vmem:[#allocation23_spill] sm:$0xff] %v7293_v9 }
  0xef   :  { %v1349_v23 = vpop.f32.mrf.mxu2  ;;  %v1193_v30 = vpop.f32.mrf.mxu0  ;;  %1722 = vmatpush.bf16.msrb.mxu3 %v5325_v6 }
  0xf0   :  { %v1428_v29 = vpop.f32.mrf.mxu3  ;;  %v1272_v42 = vpop.f32.mrf.mxu1 }
  0xf1   :  { %v1429_v35 = vadd.f32 %v1428_v29, %v1349_v23  ;;  %v1273_v44 = vadd.f32 %v1272_v42, %v1193_v30  ;;  %v6623_v29 = vld [vmem:[#allocation5 + $0x24c] sm:$0xf]  ;;  %v5286_v30 = vld [vmem:[#allocation5 + $0x26c] sm:$0xf0] }
  0xf2   :  { %1647 = vmatpush.bf16.msrb.mxu2 %v5037_v61  ;;  %v5289_v34 = vor.u32 %v6623_v29, %v5286_v30  ;;  %v4980_v61 = vld [vmem:[#allocation2 + $0xd0] sm:$0xf] }
  0xf3   :  { %v2532_v38 = vmax.f32 %v7273_v24, %v1429_v35  ;;  %v2558_v53 = vmax.f32 %v7275_v28, %v1273_v44  ;;  %v5284_v24 = vld [vmem:[#allocation5 + $0x248] sm:$0xf]  ;;  %v4997_v28 = vor.u32 %v6555_v12, %v4996_v11  ;;  %v7305_v0 = vor.u32 %v6549_v62, %v4980_v61  ;;  %v6619_v62 = vld [vmem:[#allocation5 + $0x228] sm:$0xf0] }
  0xf4   :  { %v5285_v26 = vor.u32 %v6627_v18, %v5284_v24  ;;  %1723 = vmatpush.bf16.msrb.mxu3 %v5289_v34  ;;  %v5256_v61 = vld [vmem:[#allocation5 + $0x208] sm:$0xf] }
  0xf5   :  { %1490 = vmatpush.bf16.msrb.mxu0 %v4997_v28  ;;  %7869 = vst [vmem:[#allocation25_spill] sm:$0xff] %v7305_v0 }
  0xf6   :  { %1569 = vmatpush.bf16.msrb.mxu1 %v5285_v26  ;;  %1648 = vmatpush.bf16.msrb.mxu2 %v5001_v27 }
  0xf7   :  { %v1351_v8 = vpop.f32.mrf.mxu2  ;;  %v1196_v16 = vpop.f32.mrf.mxu0 }
  0xf8   :  { %v1430_v60 = vpop.f32.mrf.mxu3  ;;  %v1275_v25 = vpop.f32.mrf.mxu1 }
  0xf9   :  { %v1431_v23 = vadd.f32 %v1430_v60, %v1351_v8  ;;  %v1276_v31 = vadd.f32 %v1275_v25, %v1196_v16  ;;  %v7307_v8 = vor.u32 %v6548_v63, %v4982_v1  ;;  %v5544_v63 = vld [vmem:[#allocation5 + $0x448] sm:$0xf]  ;;  %v5257_v1 = vor.u32 %v6619_v62, %v5256_v61 }
  0xfa   :  { %1235 = vmatmul.bf16.gmra.mxu0 %v7293_v9 }
  0xfb   :  { %v2571_v35 = vmax.f32 %v7283_v4, %v1431_v23  ;;  %v2520_v42 = vmax.f32 %v2519_v7, %v1276_v31  ;;  %1314 = vmatmul.bf16.gmra.mxu1 %v7295_v17  ;;  %7870 = vst [vmem:[#allocation26_spill] sm:$0xff] %v7307_v8  ;;  %1791 = vmatpush.bf16.msra.mxu0 %v5257_v1 }
  0xfc   :  { %1393 = vmatmul.bf16.gmra.mxu2 %v7293_v9 }
  0xfd   :  { %1472 = vmatmul.bf16.gmra.mxu3 %v7295_v17 }
  0xff   :  { %v1354_v43 = vpop.f32.mrf.mxu2  ;;  %v1198_v46 = vpop.f32.mrf.mxu0 }
 0x100   :  { %v1433_v44 = vpop.f32.mrf.mxu3  ;;  %v1277_v4 = vpop.f32.mrf.mxu1 }
 0x101   :  { %v1434_v50 = vadd.f32 %v1433_v44, %v1354_v43  ;;  %v1278_v51 = vadd.f32 %v1277_v4, %v1198_v46 }
 0x103   :  { %v2533_v39 = vmax.f32 %v2532_v38, %v1434_v50  ;;  %v2559_v59 = vmax.f32 %v2558_v53, %v1278_v51 }
 0x107   :  { %v1356_v7 = vpop.f32.mrf.mxu2  ;;  %v1201_v6 = vpop.f32.mrf.mxu0 }
 0x108   :  { %v1435_v5 = vpop.f32.mrf.mxu3  ;;  %v1280_v12 = vpop.f32.mrf.mxu1 }
 0x109   :  { %v1436_v11 = vadd.f32 %v1435_v5, %v1356_v7  ;;  %v1281_v24 = vadd.f32 %v1280_v12, %v1201_v6  ;;  %v6691_v7 = vld [vmem:[#allocation5 + $0x468] sm:$0xf0] }
 0x10a   :  { %1240 = vmatmul.bf16.gmra.mxu0 %v7305_v0  ;;  %v5545_v5 = vor.u32 %v6691_v7, %v5544_v63 }
 0x10b   :  { %v2572_v60 = vmax.f32 %v2571_v35, %v1436_v11  ;;  %v2521_v16 = vmax.f32 %v2520_v42, %v1281_v24  ;;  %1319 = vmatmul.bf16.gmra.mxu1 %v7307_v8 }
 0x10c   :  { %1398 = vmatmul.bf16.gmra.mxu2 %v7305_v0  ;;  %1866 = vmatpush.bf16.msra.mxu1 %v5545_v5 }
 0x10d   :  { %1477 = vmatmul.bf16.gmra.mxu3 %v7307_v8 }
 0x10f   :  { %v1359_v38 = vpop.f32.mrf.mxu2  ;;  %v1203_v28 = vpop.f32.mrf.mxu0 }
 0x110   :  { %v1438_v53 = vpop.f32.mrf.mxu3  ;;  %v1282_v19 = vpop.f32.mrf.mxu1 }
 0x111   :  { %v1439_v18 = vadd.f32 %v1438_v53, %v1359_v38  ;;  %v1283_v22 = vadd.f32 %v1282_v19, %v1203_v28 }
 0x113   :  { %v2534_v23 = vmax.f32 %v2533_v39, %v1439_v18  ;;  %v2560_v25 = vmax.f32 %v2559_v59, %v1283_v22 }
 0x117   :  { %v1361_v26 = vpop.f32.mrf.mxu2  ;;  %v1206_v29 = vpop.f32.mrf.mxu0 }
 0x118   :  { %v1440_v27 = vpop.f32.mrf.mxu3  ;;  %v1285_v31 = vpop.f32.mrf.mxu1 }
 0x119   :  { %v1441_v30 = vadd.f32 %v1440_v27, %v1361_v26  ;;  %v1286_v34 = vadd.f32 %v1285_v31, %v1206_v29 }
 0x11a   :  { %1491 = vmatmul.bf16.vlgmr.msrb.gmra.mxu0 %v7174_v36 }
 0x11b   :  { %v2573_v35 = vmax.f32 %v2572_v60, %v1441_v30  ;;  %v2522_v42 = vmax.f32 %v2521_v16, %v1286_v34  ;;  %1570 = vmatmul.bf16.vlgmr.msrb.gmra.mxu1 %v7176_v37 }
 0x11c   :  { %1649 = vmatmul.bf16.vlgmr.msrb.gmra.mxu2 %v7174_v36 }
 0x11d   :  { %1724 = vmatmul.bf16.vlgmr.msrb.gmra.mxu3 %v7176_v37 }
 0x11f   :  { %v1364_v43 = vpop.f32.mrf.mxu2  ;;  %v1208_v46 = vpop.f32.mrf.mxu0 }
 0x120   :  { %v1443_v44 = vpop.f32.mrf.mxu3  ;;  %v1287_v4 = vpop.f32.mrf.mxu1 }
 0x121   :  { %v1444_v50 = vadd.f32 %v1443_v44, %v1364_v43  ;;  %v1288_v51 = vadd.f32 %v1287_v4, %v1208_v46  ;;  %v5220_v46 = vld [vmem:[#allocation5 + $0x1c0] sm:$0xf] }
 0x122   :  { %v5508_v4 = vld [vmem:[#allocation5 + $0x400] sm:$0xf] }
 0x123   :  { %v2535_v39 = vmax.f32 %v2534_v23, %v1444_v50  ;;  %v2561_v59 = vmax.f32 %v2560_v25, %v1288_v51  ;;  %v6610_v50 = vld [vmem:[#allocation5 + $0x1e0] sm:$0xf0] }
 0x124   :  { %v5221_v51 = vor.u32 %v6610_v50, %v5220_v46 }
 0x126   :  { %1792 = vmatpush.bf16.msra.mxu0 %v5221_v51  ;;  %v6601_v51 = vld [vmem:[#allocation5 + $0x198] sm:$0xf0] }
 0x127   :  { %v1366_v6 = vpop.f32.mrf.mxu2  ;;  %v1211_v12 = vpop.f32.mrf.mxu0 }
 0x128   :  { %v1445_v11 = vpop.f32.mrf.mxu3  ;;  %v1290_v60 = vpop.f32.mrf.mxu1 }
 0x129   :  { %v1446_v24 = vadd.f32 %v1445_v11, %v1366_v6  ;;  %v1291_v16 = vadd.f32 %v1290_v60, %v1211_v12 }
 0x12a   :  { %1496 = vmatmul.bf16.gmra.mxu0 %v7182_v48 }
 0x12b   :  { %v2574_v38 = vmax.f32 %v2573_v35, %v1446_v24  ;;  %v2523_v53 = vmax.f32 %v2522_v42, %v1291_v16  ;;  %1575 = vmatmul.bf16.gmra.mxu1 %v7184_v49 }
 0x12c   :  { %1654 = vmatmul.bf16.gmra.mxu2 %v7182_v48 }
 0x12d   :  { %1729 = vmatmul.bf16.gmra.mxu3 %v7184_v49 }
 0x12f   :  { %v1369_v28 = vpop.f32.mrf.mxu2  ;;  %v1213_v19 = vpop.f32.mrf.mxu0 }
 0x130   :  { %v1448_v18 = vpop.f32.mrf.mxu3  ;;  %v1292_v23 = vpop.f32.mrf.mxu1 }
 0x131   :  { %v1449_v22 = vadd.f32 %v1448_v18, %v1369_v28  ;;  %v1293_v25 = vadd.f32 %v1292_v23, %v1213_v19 }
 0x133   :  { %v2536_v26 = vmax.f32 %v2535_v39, %v1449_v22  ;;  %v2562_v27 = vmax.f32 %v2561_v59, %v1293_v25  ;;  %v6682_v39 = vld [vmem:[#allocation5 + $0x420] sm:$0xf0] }
 0x134   :  { %v5509_v61 = vor.u32 %v6682_v39, %v5508_v4  ;;  %v5184_v4 = vld [vmem:[#allocation5 + $0x178] sm:$0xf] }
 0x135   :  { %v5472_v39 = vld [vmem:[#allocation5 + $0x3b8] sm:$0xf] }
 0x136   :  { %1867 = vmatpush.bf16.msra.mxu1 %v5509_v61  ;;  %v6673_v61 = vld [vmem:[#allocation5 + $0x3d8] sm:$0xf0] }
 0x137   :  { %v1371_v29 = vpop.f32.mrf.mxu2  ;;  %v1216_v31 = vpop.f32.mrf.mxu0 }
 0x138   :  { %v1450_v30 = vpop.f32.mrf.mxu3  ;;  %v1295_v35 = vpop.f32.mrf.mxu1 }
 0x139   :  { %v1451_v34 = vadd.f32 %v1450_v30, %v1371_v29  ;;  %v1296_v42 = vadd.f32 %v1295_v35, %v1216_v31 }
 0x13a   :  { %1501 = vmatmul.bf16.gmra.mxu0 %v7190_v54 }
 0x13b   :  { %v2575_v43 = vmax.f32 %v2574_v38, %v1451_v34  ;;  %v2524_v44 = vmax.f32 %v2523_v53, %v1296_v42  ;;  %1580 = vmatmul.bf16.gmra.mxu1 %v7192_v55 }
 0x13c   :  { %1659 = vmatmul.bf16.gmra.mxu2 %v7190_v54 }
 0x13d   :  { %1734 = vmatmul.bf16.gmra.mxu3 %v7192_v55 }
 0x13f   :  { %v1374_v59 = vpop.f32.mrf.mxu2  ;;  %v1218_v63 = vpop.f32.mrf.mxu0 }
 0x140   :  { %v1453_v62 = vpop.f32.mrf.mxu3  ;;  %v1297_v7 = vpop.f32.mrf.mxu1 }
 0x141   :  { %v1454_v1 = vadd.f32 %v1453_v62, %v1374_v59  ;;  %v1298_v5 = vadd.f32 %v1297_v7, %v1218_v63  ;;  %v5185_v59 = vor.u32 %v6601_v51, %v5184_v4  ;;  %v5473_v62 = vor.u32 %v6673_v61, %v5472_v39  ;;  %v5148_v4 = vld [vmem:[#allocation5 + $0x130] sm:$0xf]  ;;  %v6592_v51 = vld [vmem:[#allocation5 + $0x150] sm:$0xf0] }
 0x142   :  { %v5436_v39 = vld [vmem:[#allocation5 + $0x370] sm:$0xf]  ;;  %v5149_v61 = vor.u32 %v6592_v51, %v5148_v4  ;;  %v6583_v4 = vld [vmem:[#allocation5 + $0x108] sm:$0xf0]  ;;  %v5400_v51 = vld [vmem:[#allocation5 + $0x328] sm:$0xf] }
 0x143   :  { %v2537_v6 = vmax.f32 %v2536_v26, %v1454_v1  ;;  %v2563_v11 = vmax.f32 %v2562_v27, %v1298_v5  ;;  %1793 = vmatpush.bf16.msra.mxu0 %v5185_v59  ;;  %1868 = vmatpush.bf16.msra.mxu1 %v5473_v62  ;;  %v6664_v62 = vld [vmem:[#allocation5 + $0x390] sm:$0xf0] }
 0x147   :  { %v1376_v12 = vpop.f32.mrf.mxu2  ;;  %v1221_v60 = vpop.f32.mrf.mxu0  ;;  %1794 = vmatpush.bf16.msra.mxu0 %v5149_v61 }
 0x148   :  { %v1455_v24 = vpop.f32.mrf.mxu3  ;;  %v1300_v38 = vpop.f32.mrf.mxu1 }
 0x149   :  { %v1456_v16 = vadd.f32 %v1455_v24, %v1376_v12  ;;  %v1301_v53 = vadd.f32 %v1300_v38, %v1221_v60 }
 0x14a   :  { %1506 = vmatmul.bf16.gmra.mxu0 %v7198_v2 }
 0x14b   :  { %v2576_v28 = vmax.f32 %v2575_v43, %v1456_v16  ;;  %v2525_v18 = vmax.f32 %v2524_v44, %v1301_v53  ;;  %1585 = vmatmul.bf16.gmra.mxu1 %v7200_v3 }
 0x14c   :  { %1664 = vmatmul.bf16.gmra.mxu2 %v7198_v2 }
 0x14d   :  { %1739 = vmatmul.bf16.gmra.mxu3 %v7200_v3 }
 0x14f   :  { %v1379_v19 = vpop.f32.mrf.mxu2  ;;  %v1223_v23 = vpop.f32.mrf.mxu0 }
 0x150   :  { %v1458_v22 = vpop.f32.mrf.mxu3  ;;  %v1302_v26 = vpop.f32.mrf.mxu1 }
 0x151   :  { %v1459_v25 = vadd.f32 %v1458_v22, %v1379_v19  ;;  %v1303_v27 = vadd.f32 %v1302_v26, %v1223_v23 }
 0x153   :  { %v2538_v29 = vmax.f32 %v2537_v6, %v1459_v25  ;;  %v2564_v30 = vmax.f32 %v2563_v11, %v1303_v27 }
 0x157   :  { %v1381_v31 = vpop.f32.mrf.mxu2  ;;  %v1226_v35 = vpop.f32.mrf.mxu0 }
 0x158   :  { %v1460_v34 = vpop.f32.mrf.mxu3  ;;  %v1305_v43 = vpop.f32.mrf.mxu1 }
 0x159   :  { %v1461_v42 = vadd.f32 %v1460_v34, %v1381_v31  ;;  %v1306_v44 = vadd.f32 %v1305_v43, %v1226_v35 }
 0x15a   :  { %1511 = vmatmul.bf16.gmra.mxu0 %v7206_v14 }
 0x15b   :  { %v2577_v46 = vmax.f32 %v2576_v28, %v1461_v42  ;;  %v2526_v50 = vmax.f32 %v2525_v18, %v1306_v44  ;;  %1590 = vmatmul.bf16.gmra.mxu1 %v7208_v15 }
 0x15c   :  { %1669 = vmatmul.bf16.gmra.mxu2 %v7206_v14 }
 0x15d   :  { %1744 = vmatmul.bf16.gmra.mxu3 %v7208_v15 }
 0x15f   :  { %v1384_v63 = vpop.f32.mrf.mxu2  ;;  %v1228_v7 = vpop.f32.mrf.mxu0 }
 0x160   :  { %v1463_v1 = vpop.f32.mrf.mxu3  ;;  %v1307_v6 = vpop.f32.mrf.mxu1 }
 0x161   :  { %v1464_v5 = vadd.f32 %v1463_v1, %v1384_v63  ;;  %v1308_v11 = vadd.f32 %v1307_v6, %v1228_v7  ;;  %v5437_v1 = vor.u32 %v6664_v62, %v5436_v39 }
 0x163   :  { %v2539_v12 = vmax.f32 %v2538_v29, %v1464_v5  ;;  %v2565_v24 = vmax.f32 %v2564_v30, %v1308_v11  ;;  %1869 = vmatpush.bf16.msra.mxu1 %v5437_v1 }
 0x167   :  { %v1386_v60 = vpop.f32.mrf.mxu2  ;;  %v1231_v38 = vpop.f32.mrf.mxu0 }
 0x168   :  { %v1465_v16 = vpop.f32.mrf.mxu3  ;;  %v1310_v28 = vpop.f32.mrf.mxu1 }
 0x169   :  { %v1466_v53 = vadd.f32 %v1465_v16, %v1386_v60  ;;  %v1311_v18 = vadd.f32 %v1310_v28, %v1231_v38 }
 0x16a   :  { %1516 = vmatmul.bf16.gmra.mxu0 %v7214_v20 }
 0x16b   :  { %v2578_v19 = vmax.f32 %v2577_v46, %v1466_v53  ;;  %v2527_v22 = vmax.f32 %v2526_v50, %v1311_v18  ;;  %1595 = vmatmul.bf16.gmra.mxu1 %v7216_v21 }
 0x16c   :  { %1674 = vmatmul.bf16.gmra.mxu2 %v7214_v20 }
 0x16d   :  { %1749 = vmatmul.bf16.gmra.mxu3 %v7216_v21 }
 0x16f   :  { %v1389_v23 = vpop.f32.mrf.mxu2  ;;  %v1233_v26 = vpop.f32.mrf.mxu0 }
 0x170   :  { %v1468_v25 = vpop.f32.mrf.mxu3  ;;  %v1312_v29 = vpop.f32.mrf.mxu1 }
 0x171   :  { %v1469_v27 = vadd.f32 %v1468_v25, %v1389_v23  ;;  %v1313_v30 = vadd.f32 %v1312_v29, %v1233_v26  ;;  %v7344_v26 = vld [vmem:[#allocation7] sm:$0x7] }
 0x172   :  { %v2597_v29 = vperm.slane %v7344_v26, 0 }
 0x173   :  { %v2540_v31 = vmax.f32 %v2539_v12, %v1469_v27  ;;  %v2566_v34 = vmax.f32 %v2565_v24, %v1313_v30 }
 0x177   :  { %v1391_v35 = vpop.f32.mrf.mxu2  ;;  %v1236_v43 = vpop.f32.mrf.mxu0 }
 0x178   :  { %v1470_v42 = vpop.f32.mrf.mxu3  ;;  %v1315_v46 = vpop.f32.mrf.mxu1 }
 0x179   :  { %v1471_v44 = vadd.f32 %v1470_v42, %v1391_v35  ;;  %v1316_v50 = vadd.f32 %v1315_v46, %v1236_v43 }
 0x17a   :  { %1521 = vmatmul.bf16.gmra.mxu0 %v7222_v32 }
 0x17b   :  { %v2579_v59 = vmax.f32 %v2578_v19, %v1471_v44  ;;  %v2528_v63 = vmax.f32 %v2527_v22, %v1316_v50  ;;  %1600 = vmatmul.bf16.gmra.mxu1 %v7224_v33  ;;  %v5112_v50 = vld [vmem:[#allocation5 + $0xe8] sm:$0xf] }
 0x17c   :  { %1679 = vmatmul.bf16.gmra.mxu2 %v7222_v32  ;;  %v5113_v39 = vor.u32 %v6583_v4, %v5112_v50  ;;  %v5076_v4 = vld [vmem:[#allocation5 + $0xa0] sm:$0xf] }
 0x17d   :  { %1754 = vmatmul.bf16.gmra.mxu3 %v7224_v33 }
 0x17e   :  { %1795 = vmatpush.bf16.msra.mxu0 %v5113_v39  ;;  %v5364_v39 = vld [vmem:[#allocation5 + $0x2e0] sm:$0xf] }
 0x17f   :  { %v1394_v7 = vpop.f32.mrf.mxu2  ;;  %v1238_v6 = vpop.f32.mrf.mxu0 }
 0x180   :  { %v1473_v5 = vpop.f32.mrf.mxu3  ;;  %v1317_v12 = vpop.f32.mrf.mxu1 }
 0x181   :  { %v1474_v11 = vadd.f32 %v1473_v5, %v1394_v7  ;;  %v1318_v24 = vadd.f32 %v1317_v12, %v1238_v6 }
 0x183   :  { %v2541_v60 = vmax.f32 %v2540_v31, %v1474_v11  ;;  %v2567_v16 = vmax.f32 %v2566_v34, %v1318_v24 }
 0x187   :  { %v1396_v38 = vpop.f32.mrf.mxu2  ;;  %v1241_v28 = vpop.f32.mrf.mxu0 }
 0x188   :  { %v1475_v53 = vpop.f32.mrf.mxu3  ;;  %v1320_v19 = vpop.f32.mrf.mxu1 }
 0x189   :  { %v1476_v18 = vadd.f32 %v1475_v53, %v1396_v38  ;;  %v1321_v22 = vadd.f32 %v1320_v19, %v1241_v28 }
 0x18a   :  { %1526 = vmatmul.bf16.gmra.mxu0 %v7230_v40 }
 0x18b   :  { %v2580_v23 = vmax.f32 %v2579_v59, %v1476_v18  ;;  %v2529_v25 = vmax.f32 %v2528_v63, %v1321_v22  ;;  %1605 = vmatmul.bf16.gmra.mxu1 %v7232_v41  ;;  %v6655_v59 = vld [vmem:[#allocation5 + $0x348] sm:$0xf0]  ;;  %v2598_v63 = vperm.slane %v7344_v26, 1 }
 0x18c   :  { %1684 = vmatmul.bf16.gmra.mxu2 %v7230_v40  ;;  %v5401_v62 = vor.u32 %v6655_v59, %v5400_v51  ;;  %v6574_v51 = vld [vmem:[#allocation5 + $0xc0] sm:$0xf0] }
 0x18d   :  { %1759 = vmatmul.bf16.gmra.mxu3 %v7232_v41  ;;  %v2603_v44 = vadd.f32 %v2597_v29, %v2529_v25  ;;  %v5077_v59 = vor.u32 %v6574_v51, %v5076_v4 }
 0x18e   :  { %1870 = vmatpush.bf16.msra.mxu1 %v5401_v62 }
 0x18f   :  { %v1399_v27 = vpop.f32.mrf.mxu2  ;;  %v1243_v31 = vpop.f32.mrf.mxu0  ;;  %v2609_v7 = vmax.f32 %v2603_v44, 0.0  ;;  %1796 = vmatpush.bf16.msra.mxu0 %v5077_v59 }
 0x190   :  { %v1478_v30 = vpop.f32.mrf.mxu3  ;;  %v1322_v35 = vpop.f32.mrf.mxu1 }
 0x191   :  { %v1479_v34 = vadd.f32 %v1478_v30, %v1399_v27  ;;  %v1323_v42 = vadd.f32 %v1322_v35, %v1243_v31 }
 0x193   :  { %v2542_v43 = vmax.f32 %v2541_v60, %v1479_v34  ;;  %v2568_v46 = vmax.f32 %v2567_v16, %v1323_v42 }
 0x195   :  { %v2606_v61 = vadd.f32 %v2597_v29, %v2568_v46  ;;  %v2604_v38 = vadd.f32 %v2598_v63, %v2542_v43 }
 0x197   :  { %v1401_v1 = vpop.f32.mrf.mxu2  ;;  %v2612_v5 = vmax.f32 %v2606_v61, 0.0  ;;  %v1492_v11 = vpop.f32.mrf.mxu0  ;;  %v2610_v18 = vmax.f32 %v2604_v38, 0.0  ;;  %v6646_v61 = vld [vmem:[#allocation5 + $0x300] sm:$0xf0] }
 0x198   :  { %v1480_v6 = vpop.f32.mrf.mxu3  ;;  %v1571_v24 = vpop.f32.mrf.mxu1 }
 0x199   :  { %v1481_v12 = vadd.f32 %v1480_v6, %v1401_v1  ;;  %v7349_v60 = vpack.c.bf16 %v2612_v5, %v2609_v7  ;;  %v1572_v16 = vadd.f32 %v1571_v24, %v1492_v11 }
 0x19a   :  { %1531 = vmatmul.bf16.gmra.mxu0 %v7238_v56 }
 0x19b   :  { %v2581_v53 = vmax.f32 %v2580_v23, %v1481_v12  ;;  %1610 = vmatmul.bf16.gmra.mxu1 %v7240_v58 }
 0x19c   :  { %1689 = vmatmul.bf16.gmra.mxu2 %v7238_v56 }
 0x19d   :  { %v2607_v28 = vadd.f32 %v2598_v63, %v2581_v53  ;;  %1764 = vmatmul.bf16.gmra.mxu3 %v7240_v58  ;;  %v5365_v63 = vor.u32 %v6646_v61, %v5364_v39 }
 0x19f   :  { %v2613_v19 = vmax.f32 %v2607_v28, 0.0  ;;  %v1650_v22 = vpop.f32.mrf.mxu2  ;;  %v1494_v27 = vpop.f32.mrf.mxu0  ;;  %1871 = vmatpush.bf16.msra.mxu1 %v5365_v63 }
 0x1a0   :  { %v1725_v25 = vpop.f32.mrf.mxu3  ;;  %v1573_v31 = vpop.f32.mrf.mxu1 }
 0x1a1   :  { %v7355_v29 = vpack.c.bf16 %v2613_v19, %v2610_v18  ;;  %v7357_v30 = vadd.f32 %v1725_v25, %v1650_v22  ;;  %v7359_v23 = vadd.f32 %v1573_v31, %v1494_v27  ;;  %v6615_v25 = vld [vmem:[#allocation5 + $0x20c] sm:$0xf]  ;;  %v5258_v27 = vld [vmem:[#allocation5 + $0x22c] sm:$0xf0] }
 0x1a2   :  { %v6687_v31 = vld [vmem:[#allocation5 + $0x44c] sm:$0xf] }
 0x1a3   :  { %7871 = vst [vmem:[#allocation27_spill] sm:$0xff] %v7355_v29 }
 0x1a7   :  { %v1652_v34 = vpop.f32.mrf.mxu2  ;;  %v1497_v42 = vpop.f32.mrf.mxu0 }
 0x1a8   :  { %v1727_v35 = vpop.f32.mrf.mxu3  ;;  %v1576_v44 = vpop.f32.mrf.mxu1 }
 0x1a9   :  { %v7361_v43 = vadd.f32 %v1727_v35, %v1652_v34  ;;  %v1577_v46 = vadd.f32 %v1576_v44, %v1497_v42  ;;  %v5222_v44 = vld [vmem:[#allocation5 + $0x1e4] sm:$0xf0] }
 0x1aa   :  { %1536 = vmatmul.bf16.gmra.mxu0 %v7250_v10 }
 0x1ab   :  { %v2543_v50 = vmax.f32 %v1572_v16, %v1577_v46  ;;  %1615 = vmatmul.bf16.gmra.mxu1 %v7252_v13  ;;  %v6678_v46 = vld [vmem:[#allocation5 + $0x404] sm:$0xf] }
 0x1ac   :  { %1694 = vmatmul.bf16.gmra.mxu2 %v7250_v10 }
 0x1ad   :  { %1769 = vmatmul.bf16.gmra.mxu3 %v7252_v13 }
 0x1af   :  { %v1655_v62 = vpop.f32.mrf.mxu2  ;;  %v1499_v7 = vpop.f32.mrf.mxu0 }
 0x1b0   :  { %v1730_v1 = vpop.f32.mrf.mxu3  ;;  %v1578_v6 = vpop.f32.mrf.mxu1 }
 0x1b1   :  { %v1731_v5 = vadd.f32 %v1730_v1, %v1655_v62  ;;  %v1579_v11 = vadd.f32 %v1578_v6, %v1499_v7  ;;  %v6597_v7 = vld [vmem:[#allocation5 + $0x17c] sm:$0xf] }
 0x1b2   :  { %v6669_v6 = vld [vmem:[#allocation5 + $0x3bc] sm:$0xf] }
 0x1b3   :  { %v2615_v12 = vmax.f32 %v7357_v30, %v1731_v5  ;;  %v2582_v24 = vmax.f32 %v7359_v23, %v1579_v11  ;;  %v5261_v30 = vor.u32 %v6615_v25, %v5258_v27  ;;  %v5546_v23 = vld [vmem:[#allocation5 + $0x46c] sm:$0xf0]  ;;  %v5186_v5 = vld [vmem:[#allocation5 + $0x19c] sm:$0xf0]  ;;  %v6660_v25 = vld [vmem:[#allocation5 + $0x374] sm:$0xf] }
 0x1b4   :  { %v5549_v35 = vor.u32 %v6687_v31, %v5546_v23 }
 0x1b5   :  { %1941 = vmatpush.bf16.msra.mxu2 %v5261_v30 }
 0x1b6   :  { %2016 = vmatpush.bf16.msra.mxu3 %v5549_v35 }
 0x1b7   :  { %v1657_v16 = vpop.f32.mrf.mxu2  ;;  %v1502_v53 = vpop.f32.mrf.mxu0 }
 0x1b8   :  { %v1732_v38 = vpop.f32.mrf.mxu3  ;;  %v1581_v18 = vpop.f32.mrf.mxu1 }
 0x1b9   :  { %v1733_v28 = vadd.f32 %v1732_v38, %v1657_v16  ;;  %v1582_v19 = vadd.f32 %v1581_v18, %v1502_v53  ;;  %v5189_v16 = vor.u32 %v6597_v7, %v5186_v5  ;;  %v5474_v38 = vld [vmem:[#allocation5 + $0x3dc] sm:$0xf0]  ;;  %v6588_v18 = vld [vmem:[#allocation5 + $0x134] sm:$0xf] }
 0x1ba   :  { %1541 = vmatmul.bf16.gmra.mxu0 %v7262_v47  ;;  %v5477_v53 = vor.u32 %v6669_v6, %v5474_v38  ;;  %v5078_v38 = vld [vmem:[#allocation5 + $0xc4] sm:$0xf0] }
 0x1bb   :  { %v2648_v22 = vmax.f32 %v7361_v43, %v1733_v28  ;;  %v7371_v34 = vmax.f32 %v2543_v50, %v1582_v19  ;;  %1620 = vmatmul.bf16.gmra.mxu1 %v7264_v52  ;;  %v6606_v43 = vld [vmem:[#allocation5 + $0x1c4] sm:$0xf]  ;;  %v5510_v50 = vld [vmem:[#allocation5 + $0x424] sm:$0xf0]  ;;  %v5150_v19 = vld [vmem:[#allocation5 + $0x154] sm:$0xf0] }
 0x1bc   :  { %1699 = vmatmul.bf16.gmra.mxu2 %v7262_v47  ;;  %v5225_v39 = vor.u32 %v6606_v43, %v5222_v44  ;;  %v5513_v62 = vor.u32 %v6678_v46, %v5510_v50  ;;  %v5153_v30 = vor.u32 %v6588_v18, %v5150_v19  ;;  %v6579_v44 = vld [vmem:[#allocation5 + $0xec] sm:$0xf]  ;;  %v5114_v46 = vld [vmem:[#allocation5 + $0x10c] sm:$0xf0]  ;;  %v6565_v50 = vld [vmem:[#allocation5 + $0x78] sm:$0xf0] }
 0x1bd   :  { %1774 = vmatmul.bf16.gmra.mxu3 %v7264_v52 }
 0x1be   :  { %1942 = vmatpush.bf16.msra.mxu2 %v5225_v39  ;;  %2017 = vmatpush.bf16.msra.mxu3 %v5513_v62  ;;  %v5040_v39 = vld [vmem:[#allocation5 + $0x58] sm:$0xf]  ;;  %v6637_v62 = vld [vmem:[#allocation5 + $0x2b8] sm:$0xf0] }
 0x1bf   :  { %v1660_v42 = vpop.f32.mrf.mxu2  ;;  %v1504_v51 = vpop.f32.mrf.mxu0 }
 0x1c0   :  { %v1735_v4 = vpop.f32.mrf.mxu3  ;;  %v1583_v61 = vpop.f32.mrf.mxu1 }
 0x1c1   :  { %v1736_v59 = vadd.f32 %v1735_v4, %v1660_v42  ;;  %v1584_v63 = vadd.f32 %v1583_v61, %v1504_v51  ;;  %v6651_v4 = vld [vmem:[#allocation5 + $0x32c] sm:$0xf]  ;;  %v5117_v61 = vor.u32 %v6579_v44, %v5114_v46  ;;  %v6633_v44 = vld [vmem:[#allocation5 + $0x29c] sm:$0xf] }
 0x1c2   :  { %1943 = vmatpush.bf16.msra.mxu2 %v5189_v16  ;;  %2018 = vmatpush.bf16.msra.mxu3 %v5477_v53  ;;  %v6570_v16 = vld [vmem:[#allocation5 + $0xa4] sm:$0xf] }
 0x1c3   :  { %v7376_v1 = vmax.f32 %v2615_v12, %v1736_v59  ;;  %v7378_v11 = vmax.f32 %v2582_v24, %v1584_v63  ;;  %v5438_v12 = vld [vmem:[#allocation5 + $0x394] sm:$0xf0]  ;;  %v5402_v63 = vld [vmem:[#allocation5 + $0x34c] sm:$0xf0]  ;;  %v6642_v53 = vld [vmem:[#allocation5 + $0x2e4] sm:$0xf]  ;;  %v5081_v19 = vor.u32 %v6570_v16, %v5078_v38 }
 0x1c4   :  { %v5441_v42 = vor.u32 %v6660_v25, %v5438_v12  ;;  %v5328_v59 = vld [vmem:[#allocation5 + $0x298] sm:$0xf]  ;;  %v5405_v5 = vor.u32 %v6651_v4, %v5402_v63  ;;  %v5366_v25 = vld [vmem:[#allocation5 + $0x304] sm:$0xf0] }
 0x1c5   :  { %v5329_v7 = vor.u32 %v6637_v62, %v5328_v59  ;;  %v5292_v62 = vld [vmem:[#allocation5 + $0x250] sm:$0xf]  ;;  %v5006_v16 = vld [vmem:[#allocation5 + $0x34] sm:$0xf0] }
 0x1c6   :  { %1944 = vmatpush.bf16.msra.mxu2 %v5153_v30  ;;  %2019 = vmatpush.bf16.msra.mxu3 %v5441_v42  ;;  %v5369_v30 = vor.u32 %v6642_v53, %v5366_v25  ;;  %v5042_v42 = vld [vmem:[#allocation5 + $0x7c] sm:$0xf0] }
 0x1c7   :  { %v1662_v28 = vpop.f32.mrf.mxu2  ;;  %v1507_v31 = vpop.f32.mrf.mxu0  ;;  %1872 = vmatpush.bf16.msra.mxu1 %v5329_v7 }
 0x1c8   :  { %v1737_v27 = vpop.f32.mrf.mxu3  ;;  %v1586_v35 = vpop.f32.mrf.mxu1 }
 0x1c9   :  { %v1738_v23 = vadd.f32 %v1737_v27, %v1662_v28  ;;  %v7380_v43 = vadd.f32 %v1586_v35, %v1507_v31  ;;  %v6561_v35 = vld [vmem:[#allocation5 + $0x5c] sm:$0xf] }
 0x1ca   :  { %1546 = vmatmul.bf16.gmra.mxu0 %v7277_v45  ;;  %1945 = vmatpush.bf16.msra.mxu2 %v5117_v61  ;;  %v5045_v4 = vor.u32 %v6561_v35, %v5042_v42  ;;  %v5004_v61 = vld [vmem:[#allocation5 + $0x10] sm:$0xf] }
 0x1cb   :  { %v7382_v24 = vmax.f32 %v2648_v22, %v1738_v23  ;;  %v2545_v51 = vmax.f32 %v7371_v34, %v7380_v43  ;;  %1625 = vmatmul.bf16.gmra.mxu1 %v7279_v57  ;;  %v5041_v22 = vor.u32 %v6565_v50, %v5040_v39  ;;  %2020 = vmatpush.bf16.msra.mxu3 %v5405_v5  ;;  %v5330_v39 = vld [vmem:[#allocation5 + $0x2bc] sm:$0xf0] }
 0x1cc   :  { %1704 = vmatmul.bf16.gmra.mxu2 %v7277_v45  ;;  %v5333_v50 = vor.u32 %v6633_v44, %v5330_v39 }
 0x1cd   :  { %1779 = vmatmul.bf16.gmra.mxu3 %v7279_v57  ;;  %1797 = vmatpush.bf16.msra.mxu0 %v5041_v22  ;;  %v6556_v22 = vld [vmem:[#allocation5 + $0x30] sm:$0xf0] }
 0x1ce   :  { %1946 = vmatpush.bf16.msra.mxu2 %v5081_v19  ;;  %v5005_v5 = vor.u32 %v6556_v22, %v5004_v61  ;;  %v5294_v19 = vld [vmem:[#allocation5 + $0x274] sm:$0xf0] }
 0x1cf   :  { %v1665_v6 = vpop.f32.mrf.mxu2  ;;  %v1509_v18 = vpop.f32.mrf.mxu0  ;;  %2021 = vmatpush.bf16.msra.mxu3 %v5369_v30 }
 0x1d0   :  { %v1740_v28 = vpop.f32.mrf.mxu3  ;;  %v1588_v31 = vpop.f32.mrf.mxu1 }
 0x1d1   :  { %v1741_v27 = vadd.f32 %v1740_v28, %v1665_v6  ;;  %v1589_v12 = vadd.f32 %v1588_v31, %v1509_v18  ;;  %v6628_v6 = vld [vmem:[#allocation5 + $0x270] sm:$0xf0]  ;;  %1798 = vmatpush.bf16.msra.mxu0 %v5005_v5 }
 0x1d2   :  { %1947 = vmatpush.bf16.msra.mxu2 %v5045_v4  ;;  %v5293_v28 = vor.u32 %v6628_v6, %v5292_v62  ;;  %v6624_v18 = vld [vmem:[#allocation5 + $0x254] sm:$0xf] }
 0x1d3   :  { %v2617_v23 = vmax.f32 %v7376_v1, %v1741_v27  ;;  %v2584_v46 = vmax.f32 %v7378_v11, %v1589_v12  ;;  %2022 = vmatpush.bf16.msra.mxu3 %v5333_v50  ;;  %v6552_v1 = vld [vmem:[#allocation5 + $0x14] sm:$0xf]  ;;  %v5297_v27 = vor.u32 %v6624_v18, %v5294_v19 }
 0x1d4   :  { %v5009_v11 = vor.u32 %v6552_v1, %v5006_v16  ;;  %1873 = vmatpush.bf16.msra.mxu1 %v5293_v28 }
 0x1d6   :  { %1948 = vmatpush.bf16.msra.mxu2 %v5009_v11 }
 0x1d7   :  { %v1667_v59 = vpop.f32.mrf.mxu2  ;;  %v1512_v7 = vpop.f32.mrf.mxu0  ;;  %2023 = vmatpush.bf16.msra.mxu3 %v5297_v27 }
 0x1d8   :  { %v1742_v63 = vpop.f32.mrf.mxu3  ;;  %v1591_v53 = vpop.f32.mrf.mxu1 }
 0x1d9   :  { %v1743_v38 = vadd.f32 %v1742_v63, %v1667_v59  ;;  %v1592_v25 = vadd.f32 %v1591_v53, %v1512_v7 }
 0x1da   :  { %1551 = vmatmul.bf16.gmra.mxu0 %v7293_v9 }
 0x1db   :  { %v2650_v31 = vmax.f32 %v7382_v24, %v1743_v38  ;;  %v2546_v30 = vmax.f32 %v2545_v51, %v1592_v25  ;;  %1630 = vmatmul.bf16.gmra.mxu1 %v7295_v17 }
 0x1dc   :  { %1709 = vmatmul.bf16.gmra.mxu2 %v7293_v9 }
 0x1dd   :  { %1784 = vmatmul.bf16.gmra.mxu3 %v7295_v17 }
 0x1df   :  { %v1670_v12 = vpop.f32.mrf.mxu2  ;;  %v1514_v42 = vpop.f32.mrf.mxu0 }
 0x1e0   :  { %v1745_v35 = vpop.f32.mrf.mxu3  ;;  %v1593_v24 = vpop.f32.mrf.mxu1 }
 0x1e1   :  { %v1746_v44 = vadd.f32 %v1745_v35, %v1670_v12  ;;  %v1594_v4 = vadd.f32 %v1593_v24, %v1514_v42 }
 0x1e3   :  { %v2618_v39 = vmax.f32 %v2617_v23, %v1746_v44  ;;  %v2585_v50 = vmax.f32 %v2584_v46, %v1594_v4 }
 0x1e7   :  { %v1672_v59 = vpop.f32.mrf.mxu2  ;;  %v1517_v34 = vpop.f32.mrf.mxu0 }
 0x1e8   :  { %v1747_v61 = vpop.f32.mrf.mxu3  ;;  %v1596_v51 = vpop.f32.mrf.mxu1 }
 0x1e9   :  { %v1748_v43 = vadd.f32 %v1747_v61, %v1672_v59  ;;  %v1597_v22 = vadd.f32 %v1596_v51, %v1517_v34  ;;  %v6620_v59 = vld [vmem:[#allocation5 + $0x230] sm:$0xf0]  ;;  %v5552_v61 = vld [vmem:[#allocation5 + $0x450] sm:$0xf] }
 0x1ea   :  { %1556 = vmatmul.bf16.gmra.mxu0 %v7305_v0 }
 0x1eb   :  { %v2651_v62 = vmax.f32 %v2650_v31, %v1748_v43  ;;  %v2547_v63 = vmax.f32 %v2546_v30, %v1597_v22  ;;  %1635 = vmatmul.bf16.gmra.mxu1 %v7307_v8  ;;  %v6692_v43 = vld [vmem:[#allocation5 + $0x470] sm:$0xf0] }
 0x1ec   :  { %1712 = vmatmul.bf16.gmra.mxu2 %v7305_v0  ;;  %v5553_v51 = vor.u32 %v6692_v43, %v5552_v61 }
 0x1ed   :  { %1787 = vmatmul.bf16.gmra.mxu3 %v7307_v8 }
 0x1ee   :  { %2162 = vmatpush.bf16.msrb.mxu1 %v5553_v51 }
 0x1ef   :  { %v1675_v7 = vpop.f32.mrf.mxu2  ;;  %v1519_v23 = vpop.f32.mrf.mxu0 }
 0x1f0   :  { %v1750_v5 = vpop.f32.mrf.mxu3  ;;  %v1598_v6 = vpop.f32.mrf.mxu1 }
 0x1f1   :  { %v1751_v46 = vadd.f32 %v1750_v5, %v1675_v7  ;;  %v1599_v1 = vadd.f32 %v1598_v6, %v1519_v23 }
 0x1f3   :  { %v2619_v16 = vmax.f32 %v2618_v39, %v1751_v46  ;;  %v2586_v38 = vmax.f32 %v2585_v50, %v1599_v1  ;;  %v5264_v50 = vld [vmem:[#allocation5 + $0x210] sm:$0xf] }
 0x1f4   :  { %v5265_v34 = vor.u32 %v6620_v59, %v5264_v50  ;;  %v6611_v50 = vld [vmem:[#allocation5 + $0x1e8] sm:$0xf0] }
 0x1f5   :  { %v6683_v59 = vld [vmem:[#allocation5 + $0x428] sm:$0xf0] }
 0x1f6   :  { %2091 = vmatpush.bf16.msrb.mxu0 %v5265_v34 }
 0x1f7   :  { %v1677_v53 = vpop.f32.mrf.mxu2  ;;  %v1522_v11 = vpop.f32.mrf.mxu0 }
 0x1f8   :  { %v1752_v28 = vpop.f32.mrf.mxu3  ;;  %v1601_v19 = vpop.f32.mrf.mxu1 }
 0x1f9   :  { %v1753_v18 = vadd.f32 %v1752_v28, %v1677_v53  ;;  %v1602_v25 = vadd.f32 %v1601_v19, %v1522_v11 }
 0x1fa   :  { %1799 = vmatmul.bf16.vlgmr.msra.gmra.mxu0 %v7174_v36 }
 0x1fb   :  { %v2652_v27 = vmax.f32 %v2651_v62, %v1753_v18  ;;  %v2548_v31 = vmax.f32 %v2547_v63, %v1602_v25  ;;  %1874 = vmatmul.bf16.vlgmr.msra.gmra.mxu1 %v7176_v37 }
 0x1fc   :  { %1949 = vmatmul.bf16.vlgmr.msra.gmra.mxu2 %v7174_v36 }
 0x1fd   :  { %2024 = vmatmul.bf16.vlgmr.msra.gmra.mxu3 %v7176_v37 }
 0x1ff   :  { %v1680_v30 = vpop.f32.mrf.mxu2  ;;  %v1524_v35 = vpop.f32.mrf.mxu0 }
 0x200   :  { %v1755_v12 = vpop.f32.mrf.mxu3  ;;  %v1603_v44 = vpop.f32.mrf.mxu1 }
 0x201   :  { %v1756_v42 = vadd.f32 %v1755_v12, %v1680_v30  ;;  %v1604_v24 = vadd.f32 %v1603_v44, %v1524_v35 }
 0x203   :  { %v2620_v4 = vmax.f32 %v2619_v16, %v1756_v42  ;;  %v2587_v39 = vmax.f32 %v2586_v38, %v1604_v24  ;;  %v5228_v24 = vld [vmem:[#allocation5 + $0x1c8] sm:$0xf] }
 0x207   :  { %v1682_v22 = vpop.f32.mrf.mxu2  ;;  %v1527_v63 = vpop.f32.mrf.mxu0 }
 0x208   :  { %v1757_v62 = vpop.f32.mrf.mxu3  ;;  %v1606_v5 = vpop.f32.mrf.mxu1 }
 0x209   :  { %v1758_v7 = vadd.f32 %v1757_v62, %v1682_v22  ;;  %v1607_v23 = vadd.f32 %v1606_v5, %v1527_v63 }
 0x20a   :  { %1804 = vmatmul.bf16.gmra.mxu0 %v7182_v48 }
 0x20b   :  { %v2653_v46 = vmax.f32 %v2652_v27, %v1758_v7  ;;  %v2549_v6 = vmax.f32 %v2548_v31, %v1607_v23  ;;  %1879 = vmatmul.bf16.gmra.mxu1 %v7184_v49 }
 0x20c   :  { %1954 = vmatmul.bf16.gmra.mxu2 %v7182_v48 }
 0x20d   :  { %2029 = vmatmul.bf16.gmra.mxu3 %v7184_v49 }
 0x20f   :  { %v1685_v1 = vpop.f32.mrf.mxu2  ;;  %v1529_v38 = vpop.f32.mrf.mxu0 }
 0x210   :  { %v1760_v16 = vpop.f32.mrf.mxu3  ;;  %v1608_v28 = vpop.f32.mrf.mxu1 }
 0x211   :  { %v1761_v53 = vadd.f32 %v1760_v16, %v1685_v1  ;;  %v1609_v11 = vadd.f32 %v1608_v28, %v1529_v38 }
 0x213   :  { %v2621_v18 = vmax.f32 %v2620_v4, %v1761_v53  ;;  %v2588_v19 = vmax.f32 %v2587_v39, %v1609_v11  ;;  %v5516_v4 = vld [vmem:[#allocation5 + $0x408] sm:$0xf]  ;;  %v5229_v39 = vor.u32 %v6611_v50, %v5228_v24 }
 0x214   :  { %v5517_v34 = vor.u32 %v6683_v59, %v5516_v4 }
 0x215   :  { %2092 = vmatpush.bf16.msrb.mxu0 %v5229_v39 }
 0x216   :  { %2163 = vmatpush.bf16.msrb.mxu1 %v5517_v34 }
 0x217   :  { %v1687_v25 = vpop.f32.mrf.mxu2  ;;  %v1532_v27 = vpop.f32.mrf.mxu0 }
 0x218   :  { %v1762_v30 = vpop.f32.mrf.mxu3  ;;  %v1611_v35 = vpop.f32.mrf.mxu1 }
 0x219   :  { %v1763_v12 = vadd.f32 %v1762_v30, %v1687_v25  ;;  %v1612_v31 = vadd.f32 %v1611_v35, %v1532_v27 }
 0x21a   :  { %1809 = vmatmul.bf16.gmra.mxu0 %v7190_v54 }
 0x21b   :  { %v2654_v42 = vmax.f32 %v2653_v46, %v1763_v12  ;;  %v2550_v44 = vmax.f32 %v2549_v6, %v1612_v31  ;;  %1884 = vmatmul.bf16.gmra.mxu1 %v7192_v55 }
 0x21c   :  { %1959 = vmatmul.bf16.gmra.mxu2 %v7190_v54 }
 0x21d   :  { %2034 = vmatmul.bf16.gmra.mxu3 %v7192_v55 }
 0x21f   :  { %v1690_v61 = vpop.f32.mrf.mxu2  ;;  %v1534_v51 = vpop.f32.mrf.mxu0 }
 0x220   :  { %v1765_v43 = vpop.f32.mrf.mxu3  ;;  %v1613_v62 = vpop.f32.mrf.mxu1 }
 0x221   :  { %v1766_v22 = vadd.f32 %v1765_v43, %v1690_v61  ;;  %v1614_v63 = vadd.f32 %v1613_v62, %v1534_v51  ;;  %v5192_v62 = vld [vmem:[#allocation5 + $0x180] sm:$0xf] }
 0x223   :  { %v2622_v7 = vmax.f32 %v2621_v18, %v1766_v22  ;;  %v2589_v5 = vmax.f32 %v2588_v19, %v1614_v63  ;;  %v6602_v63 = vld [vmem:[#allocation5 + $0x1a0] sm:$0xf0] }
 0x227   :  { %v1692_v23 = vpop.f32.mrf.mxu2  ;;  %v1537_v6 = vpop.f32.mrf.mxu0 }
 0x228   :  { %v1767_v46 = vpop.f32.mrf.mxu3  ;;  %v1616_v16 = vpop.f32.mrf.mxu1 }
 0x229   :  { %v1768_v1 = vadd.f32 %v1767_v46, %v1692_v23  ;;  %v1617_v38 = vadd.f32 %v1616_v16, %v1537_v6  ;;  %v5193_v23 = vor.u32 %v6602_v63, %v5192_v62  ;;  %v6674_v46 = vld [vmem:[#allocation5 + $0x3e0] sm:$0xf0]  ;;  %v5156_v63 = vld [vmem:[#allocation5 + $0x138] sm:$0xf] }
 0x22a   :  { %1814 = vmatmul.bf16.gmra.mxu0 %v7198_v2 }
 0x22b   :  { %v2655_v53 = vmax.f32 %v2654_v42, %v1768_v1  ;;  %v2551_v28 = vmax.f32 %v2550_v44, %v1617_v38  ;;  %1889 = vmatmul.bf16.gmra.mxu1 %v7200_v3  ;;  %2093 = vmatpush.bf16.msrb.mxu0 %v5193_v23 }
 0x22c   :  { %1964 = vmatmul.bf16.gmra.mxu2 %v7198_v2 }
 0x22d   :  { %2039 = vmatmul.bf16.gmra.mxu3 %v7200_v3 }
 0x22f   :  { %v1695_v11 = vpop.f32.mrf.mxu2  ;;  %v1539_v18 = vpop.f32.mrf.mxu0 }
 0x230   :  { %v1770_v25 = vpop.f32.mrf.mxu3  ;;  %v1618_v30 = vpop.f32.mrf.mxu1 }
 0x231   :  { %v1771_v19 = vadd.f32 %v1770_v25, %v1695_v11  ;;  %v1619_v27 = vadd.f32 %v1618_v30, %v1539_v18 }
 0x233   :  { %v2623_v12 = vmax.f32 %v2622_v7, %v1771_v19  ;;  %v2590_v35 = vmax.f32 %v2589_v5, %v1619_v27  ;;  %v5480_v7 = vld [vmem:[#allocation5 + $0x3c0] sm:$0xf] }
 0x234   :  { %v5481_v1 = vor.u32 %v6674_v46, %v5480_v7  ;;  %v6593_v7 = vld [vmem:[#allocation5 + $0x158] sm:$0xf0] }
 0x235   :  { %v5157_v46 = vor.u32 %v6593_v7, %v5156_v63  ;;  %v5120_v63 = vld [vmem:[#allocation5 + $0xf0] sm:$0xf]  ;;  %v6584_v7 = vld [vmem:[#allocation5 + $0x110] sm:$0xf0] }
 0x236   :  { %2164 = vmatpush.bf16.msrb.mxu1 %v5481_v1  ;;  %v6665_v1 = vld [vmem:[#allocation5 + $0x398] sm:$0xf0] }
 0x237   :  { %v1697_v31 = vpop.f32.mrf.mxu2  ;;  %v1542_v42 = vpop.f32.mrf.mxu0  ;;  %2094 = vmatpush.bf16.msrb.mxu0 %v5157_v46  ;;  %v6656_v46 = vld [vmem:[#allocation5 + $0x350] sm:$0xf0] }
 0x238   :  { %v1772_v24 = vpop.f32.mrf.mxu3  ;;  %v1621_v4 = vpop.f32.mrf.mxu1 }
 0x239   :  { %v1773_v50 = vadd.f32 %v1772_v24, %v1697_v31  ;;  %v1622_v44 = vadd.f32 %v1621_v4, %v1542_v42  ;;  %v7428_v42 = vld [vmem:[#allocation7 + $0x3] sm:$0x7] }
 0x23a   :  { %1819 = vmatmul.bf16.gmra.mxu0 %v7206_v14 }
 0x23b   :  { %v2656_v39 = vmax.f32 %v2655_v53, %v1773_v50  ;;  %v2552_v59 = vmax.f32 %v2551_v28, %v1622_v44  ;;  %1894 = vmatmul.bf16.gmra.mxu1 %v7208_v15 }
 0x23c   :  { %1969 = vmatmul.bf16.gmra.mxu2 %v7206_v14 }
 0x23d   :  { %2044 = vmatmul.bf16.gmra.mxu3 %v7208_v15 }
 0x23f   :  { %v1700_v61 = vpop.f32.mrf.mxu2  ;;  %v1544_v43 = vpop.f32.mrf.mxu0 }
 0x240   :  { %v1775_v34 = vpop.f32.mrf.mxu3  ;;  %v1623_v22 = vpop.f32.mrf.mxu1 }
 0x241   :  { %v1776_v51 = vadd.f32 %v1775_v34, %v1700_v61  ;;  %v1624_v5 = vadd.f32 %v1623_v22, %v1544_v43 }
 0x243   :  { %v2624_v6 = vmax.f32 %v2623_v12, %v1776_v51  ;;  %v2591_v16 = vmax.f32 %v2590_v35, %v1624_v5  ;;  %v5444_v5 = vld [vmem:[#allocation5 + $0x378] sm:$0xf] }
 0x247   :  { %v1702_v38 = vpop.f32.mrf.mxu2  ;;  %v1547_v28 = vpop.f32.mrf.mxu0 }
 0x248   :  { %v1777_v53 = vpop.f32.mrf.mxu3  ;;  %v1626_v25 = vpop.f32.mrf.mxu1 }
 0x249   :  { %v1778_v11 = vadd.f32 %v1777_v53, %v1702_v38  ;;  %v1627_v18 = vadd.f32 %v1626_v25, %v1547_v28 }
 0x24a   :  { %1824 = vmatmul.bf16.gmra.mxu0 %v7214_v20 }
 0x24b   :  { %v2657_v19 = vmax.f32 %v2656_v39, %v1778_v11  ;;  %v2553_v30 = vmax.f32 %v2552_v59, %v1627_v18  ;;  %1899 = vmatmul.bf16.gmra.mxu1 %v7216_v21  ;;  %v2683_v39 = vperm.slane %v7428_v42, 0 }
 0x24c   :  { %1974 = vmatmul.bf16.gmra.mxu2 %v7214_v20 }
 0x24d   :  { %2049 = vmatmul.bf16.gmra.mxu3 %v7216_v21 }
 0x24f   :  { %v1705_v27 = vpop.f32.mrf.mxu2  ;;  %v1549_v35 = vpop.f32.mrf.mxu0 }
 0x250   :  { %v1780_v12 = vpop.f32.mrf.mxu3  ;;  %v1628_v24 = vpop.f32.mrf.mxu1 }
 0x251   :  { %v1781_v31 = vadd.f32 %v1780_v12, %v1705_v27  ;;  %v1629_v50 = vadd.f32 %v1628_v24, %v1549_v35 }
 0x253   :  { %v2625_v4 = vmax.f32 %v2624_v6, %v1781_v31  ;;  %v2592_v44 = vmax.f32 %v2591_v16, %v1629_v50  ;;  %v5445_v6 = vor.u32 %v6665_v1, %v5444_v5  ;;  %v5408_v5 = vld [vmem:[#allocation5 + $0x330] sm:$0xf] }
 0x255   :  { %v2689_v43 = vadd.f32 %v2683_v39, %v2625_v4  ;;  %2165 = vmatpush.bf16.msrb.mxu1 %v5445_v6 }
 0x257   :  { %v1707_v61 = vpop.f32.mrf.mxu2  ;;  %v1552_v34 = vpop.f32.mrf.mxu0  ;;  %v2695_v16 = vmax.f32 %v2689_v43, 0.0 }
 0x258   :  { %v1782_v59 = vpop.f32.mrf.mxu3  ;;  %v1631_v22 = vpop.f32.mrf.mxu1 }
 0x259   :  { %v1783_v51 = vadd.f32 %v1782_v59, %v1707_v61  ;;  %v1632_v62 = vadd.f32 %v1631_v22, %v1552_v34  ;;  %v2599_v59 = vperm.slane %v7344_v26, 2 }
 0x25a   :  { %1829 = vmatmul.bf16.gmra.mxu0 %v7222_v32 }
 0x25b   :  { %v2658_v23 = vmax.f32 %v2657_v19, %v1783_v51  ;;  %v2554_v38 = vmax.f32 %v2553_v30, %v1632_v62  ;;  %1904 = vmatmul.bf16.gmra.mxu1 %v7224_v33 }
 0x25c   :  { %1979 = vmatmul.bf16.gmra.mxu2 %v7222_v32 }
 0x25d   :  { %v2692_v53 = vadd.f32 %v2683_v39, %v2658_v23  ;;  %2054 = vmatmul.bf16.gmra.mxu3 %v7224_v33  ;;  %v5121_v23 = vor.u32 %v6584_v7, %v5120_v63  ;;  %v6647_v63 = vld [vmem:[#allocation5 + $0x308] sm:$0xf0] }
 0x25f   :  { %v2698_v28 = vmax.f32 %v2692_v53, 0.0  ;;  %v1710_v11 = vpop.f32.mrf.mxu2  ;;  %v1554_v18 = vpop.f32.mrf.mxu0  ;;  %2095 = vmatpush.bf16.msrb.mxu0 %v5121_v23 }
 0x260   :  { %v1785_v25 = vpop.f32.mrf.mxu3  ;;  %v1633_v27 = vpop.f32.mrf.mxu1 }
 0x261   :  { %v7435_v19 = vpack.c.bf16 %v2698_v28, %v2695_v16  ;;  %v1634_v12 = vadd.f32 %v1633_v27, %v1554_v18 }
 0x263   :  { %7872 = vst [vmem:[#allocation28_spill] sm:$0xff] %v7435_v19  ;;  %v2593_v30 = vmax.f32 %v2592_v44, %v1634_v12 }
 0x267   :  { %v1711_v35 = vpop.f32.mrf.mxu2  ;;  %v1557_v24 = vpop.f32.mrf.mxu0 }
 0x268   :  { %v1786_v31 = vpop.f32.mrf.mxu3  ;;  %v1636_v50 = vpop.f32.mrf.mxu1 }
 0x269   :  { %v1637_v4 = vadd.f32 %v1636_v50, %v1557_v24 }
 0x26a   :  { %1834 = vmatmul.bf16.gmra.mxu0 %v7230_v40 }
 0x26b   :  { %v2555_v39 = vmax.f32 %v2554_v38, %v1637_v4  ;;  %1909 = vmatmul.bf16.gmra.mxu1 %v7232_v41  ;;  %v5409_v38 = vor.u32 %v6656_v46, %v5408_v5 }
 0x26c   :  { %1984 = vmatmul.bf16.gmra.mxu2 %v7230_v40 }
 0x26d   :  { %2059 = vmatmul.bf16.gmra.mxu3 %v7232_v41  ;;  %v2605_v22 = vadd.f32 %v2599_v59, %v2555_v39  ;;  %2166 = vmatpush.bf16.msrb.mxu1 %v5409_v38 }
 0x26f   :  { %v1713_v61 = vpop.f32.mrf.mxu2  ;;  %v1559_v43 = vpop.f32.mrf.mxu0  ;;  %v2611_v16 = vmax.f32 %v2605_v22, 0.0  ;;  %v5372_v22 = vld [vmem:[#allocation5 + $0x2e8] sm:$0xf] }
 0x270   :  { %v1788_v34 = vpop.f32.mrf.mxu3  ;;  %v1638_v44 = vpop.f32.mrf.mxu1  ;;  %v5373_v5 = vor.u32 %v6647_v63, %v5372_v22 }
 0x271   :  { %v1639_v51 = vadd.f32 %v1638_v44, %v1559_v43  ;;  %v5084_v44 = vld [vmem:[#allocation5 + $0xa8] sm:$0xf] }
 0x272   :  { %2167 = vmatpush.bf16.msrb.mxu1 %v5373_v5 }
 0x273   :  { %v2594_v62 = vmax.f32 %v2593_v30, %v1639_v51  ;;  %v6575_v51 = vld [vmem:[#allocation5 + $0xc8] sm:$0xf0] }
 0x275   :  { %v2608_v1 = vadd.f32 %v2599_v59, %v2594_v62  ;;  %v5085_v62 = vor.u32 %v6575_v51, %v5084_v44  ;;  %v5230_v44 = vld [vmem:[#allocation5 + $0x1ec] sm:$0xf0]  ;;  %v6679_v51 = vld [vmem:[#allocation5 + $0x40c] sm:$0xf] }
 0x277   :  { %v1714_v6 = vpop.f32.mrf.mxu2  ;;  %v2614_v53 = vmax.f32 %v2608_v1, 0.0  ;;  %v1800_v11 = vpop.f32.mrf.mxu0  ;;  %2096 = vmatpush.bf16.msrb.mxu0 %v5085_v62 }
 0x278   :  { %v1789_v28 = vpop.f32.mrf.mxu3  ;;  %v1875_v26 = vpop.f32.mrf.mxu1 }
 0x279   :  { %v7442_v25 = vpack.c.bf16 %v2614_v53, %v2611_v16  ;;  %v1876_v18 = vadd.f32 %v1875_v26, %v1800_v11 }
 0x27a   :  { %1839 = vmatmul.bf16.gmra.mxu0 %v7238_v56 }
 0x27b   :  { %1914 = vmatmul.bf16.gmra.mxu1 %v7240_v58 }
 0x27c   :  { %1989 = vmatmul.bf16.gmra.mxu2 %v7238_v56 }
 0x27d   :  { %2064 = vmatmul.bf16.gmra.mxu3 %v7240_v58 }
 0x27f   :  { %v1950_v27 = vpop.f32.mrf.mxu2  ;;  %v1802_v30 = vpop.f32.mrf.mxu0 }
 0x280   :  { %v2025_v12 = vpop.f32.mrf.mxu3  ;;  %v1877_v31 = vpop.f32.mrf.mxu1 }
 0x281   :  { %v7448_v35 = vadd.f32 %v2025_v12, %v1950_v27  ;;  %v7450_v24 = vadd.f32 %v1877_v31, %v1802_v30  ;;  %v6616_v31 = vld [vmem:[#allocation5 + $0x214] sm:$0xf] }
 0x287   :  { %v1952_v50 = vpop.f32.mrf.mxu2  ;;  %v1805_v39 = vpop.f32.mrf.mxu0 }
 0x288   :  { %v2027_v4 = vpop.f32.mrf.mxu3  ;;  %v1880_v59 = vpop.f32.mrf.mxu1 }
 0x289   :  { %v7452_v61 = vadd.f32 %v2027_v4, %v1952_v50  ;;  %v1881_v34 = vadd.f32 %v1880_v59, %v1805_v39  ;;  %v5266_v50 = vld [vmem:[#allocation5 + $0x234] sm:$0xf0]  ;;  %v6688_v4 = vld [vmem:[#allocation5 + $0x454] sm:$0xf] }
 0x28a   :  { %1844 = vmatmul.bf16.gmra.mxu0 %v7250_v10 }
 0x28b   :  { %v2626_v43 = vmax.f32 %v1876_v18, %v1881_v34  ;;  %1919 = vmatmul.bf16.gmra.mxu1 %v7252_v13 }
 0x28c   :  { %1994 = vmatmul.bf16.gmra.mxu2 %v7250_v10 }
 0x28d   :  { %2069 = vmatmul.bf16.gmra.mxu3 %v7252_v13 }
 0x28f   :  { %v1955_v7 = vpop.f32.mrf.mxu2  ;;  %v1807_v46 = vpop.f32.mrf.mxu0 }
 0x290   :  { %v2030_v23 = vpop.f32.mrf.mxu3  ;;  %v1882_v38 = vpop.f32.mrf.mxu1 }
 0x291   :  { %v2031_v1 = vadd.f32 %v2030_v23, %v1955_v7  ;;  %v1883_v6 = vadd.f32 %v1882_v38, %v1807_v46  ;;  %v6598_v38 = vld [vmem:[#allocation5 + $0x184] sm:$0xf] }
 0x293   :  { %v2637_v16 = vmax.f32 %v7448_v35, %v2031_v1  ;;  %v2659_v53 = vmax.f32 %v7450_v24, %v1883_v6  ;;  %v5269_v35 = vor.u32 %v6616_v31, %v5266_v50  ;;  %v5554_v24 = vld [vmem:[#allocation5 + $0x474] sm:$0xf0]  ;;  %v5194_v6 = vld [vmem:[#allocation5 + $0x1a4] sm:$0xf0]  ;;  %v6589_v31 = vld [vmem:[#allocation5 + $0x13c] sm:$0xf] }
 0x294   :  { %v5557_v59 = vor.u32 %v6688_v4, %v5554_v24  ;;  %v5158_v50 = vld [vmem:[#allocation5 + $0x15c] sm:$0xf0]  ;;  %v6661_v4 = vld [vmem:[#allocation5 + $0x37c] sm:$0xf] }
 0x295   :  { %2233 = vmatpush.bf16.msrb.mxu2 %v5269_v35 }
 0x296   :  { %2304 = vmatpush.bf16.msrb.mxu3 %v5557_v59  ;;  %v5161_v59 = vor.u32 %v6589_v31, %v5158_v50  ;;  %v6643_v31 = vld [vmem:[#allocation5 + $0x2ec] sm:$0xf] }
 0x297   :  { %v1957_v28 = vpop.f32.mrf.mxu2  ;;  %v1810_v26 = vpop.f32.mrf.mxu0 }
 0x298   :  { %v2032_v11 = vpop.f32.mrf.mxu3  ;;  %v1885_v27 = vpop.f32.mrf.mxu1 }
 0x299   :  { %v2033_v18 = vadd.f32 %v2032_v11, %v1957_v28  ;;  %v1886_v12 = vadd.f32 %v1885_v27, %v1810_v26  ;;  %v6670_v28 = vld [vmem:[#allocation5 + $0x3c4] sm:$0xf]  ;;  %v5197_v26 = vor.u32 %v6598_v38, %v5194_v6  ;;  %v5410_v6 = vld [vmem:[#allocation5 + $0x354] sm:$0xf0] }
 0x29a   :  { %1849 = vmatmul.bf16.gmra.mxu0 %v7262_v47  ;;  %v6638_v38 = vld [vmem:[#allocation5 + $0x2c0] sm:$0xf0] }
 0x29b   :  { %v2670_v30 = vmax.f32 %v7452_v61, %v2033_v18  ;;  %v7462_v39 = vmax.f32 %v2626_v43, %v1886_v12  ;;  %1924 = vmatmul.bf16.gmra.mxu1 %v7264_v52  ;;  %v6607_v61 = vld [vmem:[#allocation5 + $0x1cc] sm:$0xf]  ;;  %v5518_v43 = vld [vmem:[#allocation5 + $0x42c] sm:$0xf0]  ;;  %v5482_v18 = vld [vmem:[#allocation5 + $0x3e4] sm:$0xf0] }
 0x29c   :  { %1999 = vmatmul.bf16.gmra.mxu2 %v7262_v47  ;;  %v5233_v63 = vor.u32 %v6607_v61, %v5230_v44  ;;  %v5521_v23 = vor.u32 %v6679_v51, %v5518_v43  ;;  %v5485_v27 = vor.u32 %v6670_v28, %v5482_v18 }
 0x29d   :  { %2074 = vmatmul.bf16.gmra.mxu3 %v7264_v52 }
 0x29e   :  { %2234 = vmatpush.bf16.msrb.mxu2 %v5233_v63  ;;  %2305 = vmatpush.bf16.msrb.mxu3 %v5521_v23  ;;  %v6652_v63 = vld [vmem:[#allocation5 + $0x334] sm:$0xf]  ;;  %v5336_v23 = vld [vmem:[#allocation5 + $0x2a0] sm:$0xf] }
 0x29f   :  { %v1960_v34 = vpop.f32.mrf.mxu2  ;;  %v1812_v62 = vpop.f32.mrf.mxu0  ;;  %v5337_v28 = vor.u32 %v6638_v38, %v5336_v23  ;;  %v5338_v23 = vld [vmem:[#allocation5 + $0x2c4] sm:$0xf0]  ;;  %v5012_v38 = vld [vmem:[#allocation5 + $0x18] sm:$0xf] }
 0x2a0   :  { %v2035_v22 = vpop.f32.mrf.mxu3  ;;  %v1887_v5 = vpop.f32.mrf.mxu1 }
 0x2a1   :  { %v2036_v7 = vadd.f32 %v2035_v22, %v1960_v34  ;;  %v1888_v46 = vadd.f32 %v1887_v5, %v1812_v62  ;;  %v6580_v22 = vld [vmem:[#allocation5 + $0xf4] sm:$0xf]  ;;  %v5122_v62 = vld [vmem:[#allocation5 + $0x114] sm:$0xf0]  ;;  %v6566_v5 = vld [vmem:[#allocation5 + $0x80] sm:$0xf0]  ;;  %2168 = vmatpush.bf16.msrb.mxu1 %v5337_v28 }
 0x2a2   :  { %2235 = vmatpush.bf16.msrb.mxu2 %v5197_v26  ;;  %2306 = vmatpush.bf16.msrb.mxu3 %v5485_v27  ;;  %v5413_v26 = vor.u32 %v6652_v63, %v5410_v6  ;;  %v6571_v27 = vld [vmem:[#allocation5 + $0xac] sm:$0xf]  ;;  %v6634_v63 = vld [vmem:[#allocation5 + $0x2a4] sm:$0xf]  ;;  %v6557_v6 = vld [vmem:[#allocation5 + $0x38] sm:$0xf0] }
 0x2a3   :  { %v7467_v1 = vmax.f32 %v2637_v16, %v2036_v7  ;;  %v7469_v11 = vmax.f32 %v2659_v53, %v1888_v46  ;;  %v5446_v16 = vld [vmem:[#allocation5 + $0x39c] sm:$0xf0]  ;;  %v5125_v46 = vor.u32 %v6580_v22, %v5122_v62  ;;  %v6562_v22 = vld [vmem:[#allocation5 + $0x64] sm:$0xf]  ;;  %v5050_v62 = vld [vmem:[#allocation5 + $0x84] sm:$0xf0] }
 0x2a4   :  { %v5449_v44 = vor.u32 %v6661_v4, %v5446_v16  ;;  %v5048_v7 = vld [vmem:[#allocation5 + $0x60] sm:$0xf]  ;;  %v5300_v28 = vld [vmem:[#allocation5 + $0x258] sm:$0xf] }
 0x2a6   :  { %2236 = vmatpush.bf16.msrb.mxu2 %v5161_v59  ;;  %2307 = vmatpush.bf16.msrb.mxu3 %v5449_v44 }
 0x2a7   :  { %v1962_v12 = vpop.f32.mrf.mxu2  ;;  %v1815_v24 = vpop.f32.mrf.mxu0 }
 0x2a8   :  { %v2037_v35 = vpop.f32.mrf.mxu3  ;;  %v1890_v61 = vpop.f32.mrf.mxu1 }
 0x2a9   :  { %v2038_v34 = vadd.f32 %v2037_v35, %v1962_v12  ;;  %v7471_v51 = vadd.f32 %v1890_v61, %v1815_v24  ;;  %v5086_v12 = vld [vmem:[#allocation5 + $0xcc] sm:$0xf0] }
 0x2aa   :  { %1854 = vmatmul.bf16.gmra.mxu0 %v7277_v45  ;;  %2237 = vmatpush.bf16.msrb.mxu2 %v5125_v46  ;;  %v5089_v35 = vor.u32 %v6571_v27, %v5086_v12  ;;  %v5374_v24 = vld [vmem:[#allocation5 + $0x30c] sm:$0xf0]  ;;  %v5341_v46 = vor.u32 %v6634_v63, %v5338_v23  ;;  %v5013_v27 = vor.u32 %v6557_v6, %v5012_v38  ;;  %v6629_v12 = vld [vmem:[#allocation5 + $0x278] sm:$0xf0] }
 0x2ab   :  { %v7473_v53 = vmax.f32 %v2670_v30, %v2038_v34  ;;  %v2628_v43 = vmax.f32 %v7462_v39, %v7471_v51  ;;  %1929 = vmatmul.bf16.gmra.mxu1 %v7279_v57  ;;  %v5049_v30 = vor.u32 %v6566_v5, %v5048_v7  ;;  %2308 = vmatpush.bf16.msrb.mxu3 %v5413_v26 }
 0x2ac   :  { %2004 = vmatmul.bf16.gmra.mxu2 %v7277_v45  ;;  %v5377_v34 = vor.u32 %v6643_v31, %v5374_v24  ;;  %v5053_v5 = vor.u32 %v6562_v22, %v5050_v62  ;;  %v5014_v31 = vld [vmem:[#allocation5 + $0x3c] sm:$0xf0]  ;;  %v6625_v24 = vld [vmem:[#allocation5 + $0x25c] sm:$0xf] }
 0x2ad   :  { %2079 = vmatmul.bf16.gmra.mxu3 %v7279_v57  ;;  %2097 = vmatpush.bf16.msrb.mxu0 %v5049_v30 }
 0x2ae   :  { %2238 = vmatpush.bf16.msrb.mxu2 %v5089_v35  ;;  %v5301_v35 = vor.u32 %v6629_v12, %v5300_v28 }
 0x2af   :  { %v1965_v18 = vpop.f32.mrf.mxu2  ;;  %v1817_v4 = vpop.f32.mrf.mxu0  ;;  %2309 = vmatpush.bf16.msrb.mxu3 %v5377_v34 }
 0x2b0   :  { %v2040_v50 = vpop.f32.mrf.mxu3  ;;  %v1892_v16 = vpop.f32.mrf.mxu1  ;;  %2169 = vmatpush.bf16.msrb.mxu1 %v5301_v35 }
 0x2b1   :  { %v2041_v59 = vadd.f32 %v2040_v50, %v1965_v18  ;;  %v1893_v61 = vadd.f32 %v1892_v16, %v1817_v4  ;;  %2098 = vmatpush.bf16.msrb.mxu0 %v5013_v27 }
 0x2b2   :  { %2239 = vmatpush.bf16.msrb.mxu2 %v5053_v5 }
 0x2b3   :  { %v2639_v44 = vmax.f32 %v7467_v1, %v2041_v59  ;;  %v2661_v7 = vmax.f32 %v7469_v11, %v1893_v61  ;;  %2310 = vmatpush.bf16.msrb.mxu3 %v5341_v46  ;;  %v6553_v1 = vld [vmem:[#allocation5 + $0x1c] sm:$0xf]  ;;  %v5302_v59 = vld [vmem:[#allocation5 + $0x27c] sm:$0xf0] }
 0x2b4   :  { %v5017_v11 = vor.u32 %v6553_v1, %v5014_v31  ;;  %v5305_v34 = vor.u32 %v6625_v24, %v5302_v59 }
 0x2b6   :  { %2240 = vmatpush.bf16.msrb.mxu2 %v5017_v11 }
 0x2b7   :  { %v1967_v30 = vpop.f32.mrf.mxu2  ;;  %v1820_v18 = vpop.f32.mrf.mxu0  ;;  %2311 = vmatpush.bf16.msrb.mxu3 %v5305_v34 }
 0x2b8   :  { %v2042_v26 = vpop.f32.mrf.mxu3  ;;  %v1895_v4 = vpop.f32.mrf.mxu1 }
 0x2b9   :  { %v2043_v50 = vadd.f32 %v2042_v26, %v1967_v30  ;;  %v1896_v16 = vadd.f32 %v1895_v4, %v1820_v18 }
 0x2ba   :  { %1859 = vmatmul.bf16.gmra.mxu0 %v7293_v9 }
 0x2bb   :  { %v2672_v61 = vmax.f32 %v7473_v53, %v2043_v50  ;;  %v2629_v22 = vmax.f32 %v2628_v43, %v1896_v16  ;;  %1934 = vmatmul.bf16.gmra.mxu1 %v7295_v17 }
 0x2bc   :  { %2009 = vmatmul.bf16.gmra.mxu2 %v7293_v9 }
 0x2bd   :  { %2084 = vmatmul.bf16.gmra.mxu3 %v7295_v17 }
 0x2bf   :  { %v1970_v62 = vpop.f32.mrf.mxu2  ;;  %v1822_v5 = vpop.f32.mrf.mxu0 }
 0x2c0   :  { %v2045_v63 = vpop.f32.mrf.mxu3  ;;  %v1897_v53 = vpop.f32.mrf.mxu1 }
 0x2c1   :  { %v2046_v23 = vadd.f32 %v2045_v63, %v1970_v62  ;;  %v1898_v46 = vadd.f32 %v1897_v53, %v1822_v5 }
 0x2c3   :  { %v2640_v30 = vmax.f32 %v2639_v44, %v2046_v23  ;;  %v2662_v38 = vmax.f32 %v2661_v7, %v1898_v46 }
 0x2c7   :  { %v1972_v6 = vpop.f32.mrf.mxu2  ;;  %v1825_v39 = vpop.f32.mrf.mxu0 }
 0x2c8   :  { %v2047_v28 = vpop.f32.mrf.mxu3  ;;  %v1900_v43 = vpop.f32.mrf.mxu1 }
 0x2c9   :  { %v2048_v51 = vadd.f32 %v2047_v28, %v1972_v6  ;;  %v1901_v26 = vadd.f32 %v1900_v43, %v1825_v39  ;;  %v5272_v28 = vld [vmem:[#allocation5 + $0x218] sm:$0xf]  ;;  %v6621_v39 = vld [vmem:[#allocation5 + $0x238] sm:$0xf0] }
 0x2ca   :  { %1862 = vmatmul.bf16.gmra.mxu0 %v7305_v0  ;;  %v5273_v43 = vor.u32 %v6621_v39, %v5272_v28  ;;  %v5236_v39 = vld [vmem:[#allocation5 + $0x1d0] sm:$0xf] }
 0x2cb   :  { %v2673_v18 = vmax.f32 %v2672_v61, %v2048_v51  ;;  %v2630_v27 = vmax.f32 %v2629_v22, %v1901_v26  ;;  %1937 = vmatmul.bf16.gmra.mxu1 %v7307_v8  ;;  %v5560_v51 = vld [vmem:[#allocation5 + $0x458] sm:$0xf]  ;;  %v6693_v26 = vld [vmem:[#allocation5 + $0x478] sm:$0xf0] }
 0x2cc   :  { %2012 = vmatmul.bf16.gmra.mxu2 %v7305_v0  ;;  %2375 = vmatpush.bf16.msra.mxu0 %v5273_v43  ;;  %v6684_v43 = vld [vmem:[#allocation5 + $0x430] sm:$0xf0] }
 0x2cd   :  { %2087 = vmatmul.bf16.gmra.mxu3 %v7307_v8 }
 0x2cf   :  { %v1975_v12 = vpop.f32.mrf.mxu2  ;;  %v1827_v44 = vpop.f32.mrf.mxu0 }
 0x2d0   :  { %v2050_v1 = vpop.f32.mrf.mxu3  ;;  %v1902_v31 = vpop.f32.mrf.mxu1 }
 0x2d1   :  { %v2051_v7 = vadd.f32 %v2050_v1, %v1975_v12  ;;  %v1903_v50 = vadd.f32 %v1902_v31, %v1827_v44 }
 0x2d3   :  { %v2641_v4 = vmax.f32 %v2640_v30, %v2051_v7  ;;  %v2663_v35 = vmax.f32 %v2662_v38, %v1903_v50 }
 0x2d7   :  { %v1977_v11 = vpop.f32.mrf.mxu2  ;;  %v1830_v59 = vpop.f32.mrf.mxu0 }
 0x2d8   :  { %v2052_v24 = vpop.f32.mrf.mxu3  ;;  %v1905_v34 = vpop.f32.mrf.mxu1 }
 0x2d9   :  { %v2053_v16 = vadd.f32 %v2052_v24, %v1977_v11  ;;  %v1906_v61 = vadd.f32 %v1905_v34, %v1830_v59 }
 0x2da   :  { %2099 = vmatmul.bf16.vlgmr.msrb.gmra.mxu0 %v7174_v36 }
 0x2db   :  { %v2674_v22 = vmax.f32 %v2673_v18, %v2053_v16  ;;  %v2631_v62 = vmax.f32 %v2630_v27, %v1906_v61  ;;  %2170 = vmatmul.bf16.vlgmr.msrb.gmra.mxu1 %v7176_v37  ;;  %v5561_v18 = vor.u32 %v6693_v26, %v5560_v51  ;;  %v6612_v51 = vld [vmem:[#allocation5 + $0x1f0] sm:$0xf0] }
 0x2dc   :  { %2241 = vmatmul.bf16.vlgmr.msrb.gmra.mxu2 %v7174_v36 }
 0x2dd   :  { %2312 = vmatmul.bf16.vlgmr.msrb.gmra.mxu3 %v7176_v37  ;;  %2446 = vmatpush.bf16.msra.mxu1 %v5561_v18 }
 0x2df   :  { %v1980_v63 = vpop.f32.mrf.mxu2  ;;  %v1832_v23 = vpop.f32.mrf.mxu0 }
 0x2e0   :  { %v2055_v5 = vpop.f32.mrf.mxu3  ;;  %v1907_v46 = vpop.f32.mrf.mxu1 }
 0x2e1   :  { %v2056_v53 = vadd.f32 %v2055_v5, %v1980_v63  ;;  %v1908_v30 = vadd.f32 %v1907_v46, %v1832_v23 }
 0x2e3   :  { %v2642_v38 = vmax.f32 %v2641_v4, %v2056_v53  ;;  %v2664_v6 = vmax.f32 %v2663_v35, %v1908_v30 }
 0x2e7   :  { %v1982_v27 = vpop.f32.mrf.mxu2  ;;  %v1835_v1 = vpop.f32.mrf.mxu0 }
 0x2e8   :  { %v2057_v12 = vpop.f32.mrf.mxu3  ;;  %v1910_v7 = vpop.f32.mrf.mxu1 }
 0x2e9   :  { %v2058_v44 = vadd.f32 %v2057_v12, %v1982_v27  ;;  %v1911_v31 = vadd.f32 %v1910_v7, %v1835_v1 }
 0x2ea   :  { %2104 = vmatmul.bf16.gmra.mxu0 %v7182_v48 }
 0x2eb   :  { %v2675_v50 = vmax.f32 %v2674_v22, %v2058_v44  ;;  %v2632_v11 = vmax.f32 %v2631_v62, %v1911_v31  ;;  %2175 = vmatmul.bf16.gmra.mxu1 %v7184_v49 }
 0x2ec   :  { %2246 = vmatmul.bf16.gmra.mxu2 %v7182_v48 }
 0x2ed   :  { %2317 = vmatmul.bf16.gmra.mxu3 %v7184_v49 }
 0x2ef   :  { %v1985_v4 = vpop.f32.mrf.mxu2  ;;  %v1837_v24 = vpop.f32.mrf.mxu0 }
 0x2f0   :  { %v2060_v35 = vpop.f32.mrf.mxu3  ;;  %v1912_v16 = vpop.f32.mrf.mxu1 }
 0x2f1   :  { %v2061_v59 = vadd.f32 %v2060_v35, %v1985_v4  ;;  %v1913_v34 = vadd.f32 %v1912_v16, %v1837_v24 }
 0x2f3   :  { %v2643_v61 = vmax.f32 %v2642_v38, %v2061_v59  ;;  %v2665_v63 = vmax.f32 %v2664_v6, %v1913_v34  ;;  %v5524_v38 = vld [vmem:[#allocation5 + $0x410] sm:$0xf]  ;;  %v5237_v6 = vor.u32 %v6612_v51, %v5236_v39 }
 0x2f4   :  { %v5525_v18 = vor.u32 %v6684_v43, %v5524_v38 }
 0x2f5   :  { %2376 = vmatpush.bf16.msra.mxu0 %v5237_v6 }
 0x2f6   :  { %2447 = vmatpush.bf16.msra.mxu1 %v5525_v18 }
 0x2f7   :  { %v1987_v5 = vpop.f32.mrf.mxu2  ;;  %v1840_v22 = vpop.f32.mrf.mxu0 }
 0x2f8   :  { %v2062_v23 = vpop.f32.mrf.mxu3  ;;  %v1915_v46 = vpop.f32.mrf.mxu1 }
 0x2f9   :  { %v2063_v53 = vadd.f32 %v2062_v23, %v1987_v5  ;;  %v1916_v62 = vadd.f32 %v1915_v46, %v1840_v22 }
 0x2fa   :  { %2109 = vmatmul.bf16.gmra.mxu0 %v7190_v54 }
 0x2fb   :  { %v2676_v30 = vmax.f32 %v2675_v50, %v2063_v53  ;;  %v2633_v28 = vmax.f32 %v2632_v11, %v1916_v62  ;;  %2180 = vmatmul.bf16.gmra.mxu1 %v7192_v55 }
 0x2fc   :  { %2251 = vmatmul.bf16.gmra.mxu2 %v7190_v54 }
 0x2fd   :  { %2322 = vmatmul.bf16.gmra.mxu3 %v7192_v55 }
 0x2ff   :  { %v1990_v26 = vpop.f32.mrf.mxu2  ;;  %v1842_v12 = vpop.f32.mrf.mxu0 }
 0x300   :  { %v2065_v27 = vpop.f32.mrf.mxu3  ;;  %v1917_v44 = vpop.f32.mrf.mxu1 }
 0x301   :  { %v2066_v1 = vadd.f32 %v2065_v27, %v1990_v26  ;;  %v1918_v7 = vadd.f32 %v1917_v44, %v1842_v12 }
 0x303   :  { %v2644_v31 = vmax.f32 %v2643_v61, %v2066_v1  ;;  %v2666_v50 = vmax.f32 %v2665_v63, %v1918_v7 }
 0x307   :  { %v1992_v11 = vpop.f32.mrf.mxu2  ;;  %v1845_v35 = vpop.f32.mrf.mxu0 }
 0x308   :  { %v2067_v4 = vpop.f32.mrf.mxu3  ;;  %v1920_v59 = vpop.f32.mrf.mxu1 }
 0x309   :  { %v2068_v24 = vadd.f32 %v2067_v4, %v1992_v11  ;;  %v1921_v16 = vadd.f32 %v1920_v59, %v1845_v35  ;;  %v5488_v11 = vld [vmem:[#allocation5 + $0x3c8] sm:$0xf] }
 0x30a   :  { %2114 = vmatmul.bf16.gmra.mxu0 %v7198_v2 }
 0x30b   :  { %v2677_v34 = vmax.f32 %v2676_v30, %v2068_v24  ;;  %v2634_v5 = vmax.f32 %v2633_v28, %v1921_v16  ;;  %2185 = vmatmul.bf16.gmra.mxu1 %v7200_v3  ;;  %v6675_v24 = vld [vmem:[#allocation5 + $0x3e8] sm:$0xf0] }
 0x30c   :  { %2256 = vmatmul.bf16.gmra.mxu2 %v7198_v2  ;;  %v5489_v16 = vor.u32 %v6675_v24, %v5488_v11  ;;  %v2685_v11 = vperm.slane %v7428_v42, 2 }
 0x30d   :  { %2327 = vmatmul.bf16.gmra.mxu3 %v7200_v3 }
 0x30e   :  { %2448 = vmatpush.bf16.msra.mxu1 %v5489_v16 }
 0x30f   :  { %v1995_v23 = vpop.f32.mrf.mxu2  ;;  %v1847_v61 = vpop.f32.mrf.mxu0 }
 0x310   :  { %v2070_v22 = vpop.f32.mrf.mxu3  ;;  %v1922_v53 = vpop.f32.mrf.mxu1 }
 0x311   :  { %v2071_v63 = vadd.f32 %v2070_v22, %v1995_v23  ;;  %v1923_v46 = vadd.f32 %v1922_v53, %v1847_v61 }
 0x313   :  { %v2645_v62 = vmax.f32 %v2644_v31, %v2071_v63  ;;  %v2667_v39 = vmax.f32 %v2666_v50, %v1923_v46  ;;  %v5200_v31 = vld [vmem:[#allocation5 + $0x188] sm:$0xf]  ;;  %v6603_v50 = vld [vmem:[#allocation5 + $0x1a8] sm:$0xf0] }
 0x314   :  { %v5201_v35 = vor.u32 %v6603_v50, %v5200_v31 }
 0x316   :  { %2377 = vmatpush.bf16.msra.mxu0 %v5201_v35 }
 0x317   :  { %v1997_v51 = vpop.f32.mrf.mxu2  ;;  %v1850_v30 = vpop.f32.mrf.mxu0 }
 0x318   :  { %v2072_v38 = vpop.f32.mrf.mxu3  ;;  %v1925_v43 = vpop.f32.mrf.mxu1 }
 0x319   :  { %v2073_v6 = vadd.f32 %v2072_v38, %v1997_v51  ;;  %v1926_v28 = vadd.f32 %v1925_v43, %v1850_v30 }
 0x31a   :  { %2119 = vmatmul.bf16.gmra.mxu0 %v7206_v14 }
 0x31b   :  { %v2678_v26 = vmax.f32 %v2677_v34, %v2073_v6  ;;  %v2635_v18 = vmax.f32 %v2634_v5, %v1926_v28  ;;  %2190 = vmatmul.bf16.gmra.mxu1 %v7208_v15  ;;  %v5164_v28 = vld [vmem:[#allocation5 + $0x140] sm:$0xf] }
 0x31c   :  { %2261 = vmatmul.bf16.gmra.mxu2 %v7206_v14 }
 0x31d   :  { %2332 = vmatmul.bf16.gmra.mxu3 %v7208_v15 }
 0x31f   :  { %v2000_v27 = vpop.f32.mrf.mxu2  ;;  %v1852_v1 = vpop.f32.mrf.mxu0 }
 0x320   :  { %v2075_v12 = vpop.f32.mrf.mxu3  ;;  %v1927_v7 = vpop.f32.mrf.mxu1 }
 0x321   :  { %v2076_v44 = vadd.f32 %v2075_v12, %v2000_v27  ;;  %v1928_v4 = vadd.f32 %v1927_v7, %v1852_v1  ;;  %v6594_v27 = vld [vmem:[#allocation5 + $0x160] sm:$0xf0]  ;;  %v5452_v12 = vld [vmem:[#allocation5 + $0x380] sm:$0xf] }
 0x322   :  { %v5165_v1 = vor.u32 %v6594_v27, %v5164_v28 }
 0x323   :  { %v2646_v59 = vmax.f32 %v2645_v62, %v2076_v44  ;;  %v2668_v34 = vmax.f32 %v2667_v39, %v1928_v4  ;;  %v2684_v39 = vperm.slane %v7428_v42, 1  ;;  %v6666_v44 = vld [vmem:[#allocation5 + $0x3a0] sm:$0xf0] }
 0x324   :  { %v5453_v7 = vor.u32 %v6666_v44, %v5452_v12  ;;  %2378 = vmatpush.bf16.msra.mxu0 %v5165_v1 }
 0x326   :  { %2449 = vmatpush.bf16.msra.mxu1 %v5453_v7  ;;  %v6585_v7 = vld [vmem:[#allocation5 + $0x118] sm:$0xf0] }
 0x327   :  { %v2002_v5 = vpop.f32.mrf.mxu2  ;;  %v1855_v22 = vpop.f32.mrf.mxu0 }
 0x328   :  { %v2077_v23 = vpop.f32.mrf.mxu3  ;;  %v1930_v63 = vpop.f32.mrf.mxu1 }
 0x329   :  { %v2078_v61 = vadd.f32 %v2077_v23, %v2002_v5  ;;  %v1931_v53 = vadd.f32 %v1930_v63, %v1855_v22 }
 0x32a   :  { %2124 = vmatmul.bf16.gmra.mxu0 %v7214_v20 }
 0x32b   :  { %v2679_v46 = vmax.f32 %v2678_v26, %v2078_v61  ;;  %v2636_v51 = vmax.f32 %v2635_v18, %v1931_v53  ;;  %2195 = vmatmul.bf16.gmra.mxu1 %v7216_v21 }
 0x32c   :  { %2266 = vmatmul.bf16.gmra.mxu2 %v7214_v20 }
 0x32d   :  { %2337 = vmatmul.bf16.gmra.mxu3 %v7216_v21  ;;  %v2690_v31 = vadd.f32 %v2684_v39, %v2636_v51 }
 0x32f   :  { %v2005_v62 = vpop.f32.mrf.mxu2  ;;  %v1857_v30 = vpop.f32.mrf.mxu0  ;;  %v2696_v24 = vmax.f32 %v2690_v31, 0.0  ;;  %v5416_v31 = vld [vmem:[#allocation5 + $0x338] sm:$0xf] }
 0x330   :  { %v2080_v38 = vpop.f32.mrf.mxu3  ;;  %v1932_v43 = vpop.f32.mrf.mxu1 }
 0x331   :  { %v2081_v6 = vadd.f32 %v2080_v38, %v2005_v62  ;;  %v1933_v26 = vadd.f32 %v1932_v43, %v1857_v30 }
 0x333   :  { %v2647_v18 = vmax.f32 %v2646_v59, %v2081_v6  ;;  %v2669_v50 = vmax.f32 %v2668_v34, %v1933_v26 }
 0x335   :  { %v2693_v4 = vadd.f32 %v2684_v39, %v2669_v50  ;;  %v2691_v22 = vadd.f32 %v2685_v11, %v2647_v18  ;;  %v5128_v18 = vld [vmem:[#allocation5 + $0xf8] sm:$0xf] }
 0x336   :  { %v5129_v50 = vor.u32 %v6585_v7, %v5128_v18 }
 0x337   :  { %v2007_v35 = vpop.f32.mrf.mxu2  ;;  %v2699_v16 = vmax.f32 %v2693_v4, 0.0  ;;  %v1860_v23 = vpop.f32.mrf.mxu0  ;;  %v2697_v42 = vmax.f32 %v2691_v22, 0.0 }
 0x338   :  { %v2082_v5 = vpop.f32.mrf.mxu3  ;;  %v1935_v63 = vpop.f32.mrf.mxu1  ;;  %2379 = vmatpush.bf16.msra.mxu0 %v5129_v50  ;;  %v6734_v50 = vld [vmem:[#allocation8 + $0x140] sm:$0xf0] }
 0x339   :  { %v2083_v61 = vadd.f32 %v2082_v5, %v2007_v35  ;;  %v7521_v53 = vpack.c.bf16 %v2699_v16, %v2696_v24 }
 0x33a   :  { %2129 = vmatmul.bf16.gmra.mxu0 %v7222_v32 }
 0x33b   :  { %v2680_v62 = vmax.f32 %v2679_v46, %v2083_v61  ;;  %2200 = vmatmul.bf16.gmra.mxu1 %v7224_v33 }
 0x33c   :  { %2271 = vmatmul.bf16.gmra.mxu2 %v7222_v32 }
 0x33d   :  { %v2694_v59 = vadd.f32 %v2685_v11, %v2680_v62  ;;  %2342 = vmatmul.bf16.gmra.mxu3 %v7224_v33  ;;  %v6657_v11 = vld [vmem:[#allocation5 + $0x358] sm:$0xf0]  ;;  %v5744_v62 = vld [vmem:[#allocation8 + $0x168] sm:$0xf] }
 0x33e   :  { %v5417_v4 = vor.u32 %v6657_v11, %v5416_v31  ;;  %v5720_v31 = vld [vmem:[#allocation8 + $0x138] sm:$0xf] }
 0x33f   :  { %v2700_v34 = vmax.f32 %v2694_v59, 0.0  ;;  %v2010_v51 = vpop.f32.mrf.mxu2  ;;  %v1861_v38 = vpop.f32.mrf.mxu0 }
 0x340   :  { %v2085_v39 = vpop.f32.mrf.mxu3  ;;  %v1936_v6 = vpop.f32.mrf.mxu1  ;;  %2450 = vmatpush.bf16.msra.mxu1 %v5417_v4  ;;  %v6716_v38 = vld [vmem:[#allocation8 + $0xb0] sm:$0xf0] }
 0x341   :  { %v7527_v30 = vpack.c.bf16 %v2700_v34, %v2697_v42  ;;  %v6740_v42 = vld [vmem:[#allocation8 + $0x170] sm:$0xf0]  ;;  %v5648_v39 = vld [vmem:[#allocation8 + $0xa8] sm:$0xf] }
 0x342   :  { %v5745_v51 = vor.u32 %v6740_v42, %v5744_v62  ;;  %v6731_v62 = vld [vmem:[#allocation8 + $0x128] sm:$0xf0]  ;;  %v5092_v42 = vld [vmem:[#allocation5 + $0xb0] sm:$0xf] }
 0x343   :  { %7873 = vst [vmem:[#allocation29_spill] sm:$0xff] %v7527_v30 }
 0x344   :  { %4246 = vmatpush.bf16.msra.mxu3 %v5745_v51  ;;  %v5380_v51 = vld [vmem:[#allocation5 + $0x2f0] sm:$0xf] }
 0x347   :  { %v2011_v43 = vpop.f32.mrf.mxu2  ;;  %v1863_v46 = vpop.f32.mrf.mxu0 }
 0x348   :  { %v2086_v28 = vpop.f32.mrf.mxu3  ;;  %v1938_v27 = vpop.f32.mrf.mxu1  ;;  %v5649_v43 = vor.u32 %v6716_v38, %v5648_v39  ;;  %v6737_v46 = vld [vmem:[#allocation8 + $0x158] sm:$0xf0] }
 0x349   :  { %v5732_v28 = vld [vmem:[#allocation8 + $0x150] sm:$0xf] }
 0x34a   :  { %2134 = vmatmul.bf16.gmra.mxu0 %v7230_v40  ;;  %4232 = vmatpush.bf16.msra.mxu2 %v5649_v43  ;;  %v5733_v27 = vor.u32 %v6737_v46, %v5732_v28  ;;  %v6648_v43 = vld [vmem:[#allocation5 + $0x310] sm:$0xf0]  ;;  %v5612_v28 = vld [vmem:[#allocation8 + $0x60] sm:$0xf] }
 0x34b   :  { %2205 = vmatmul.bf16.gmra.mxu1 %v7232_v41  ;;  %v6707_v46 = vld [vmem:[#allocation8 + $0x68] sm:$0xf0] }
 0x34c   :  { %2276 = vmatmul.bf16.gmra.mxu2 %v7230_v40  ;;  %4247 = vmatpush.bf16.msra.mxu3 %v5733_v27 }
 0x34d   :  { %2347 = vmatmul.bf16.gmra.mxu3 %v7232_v41 }
 0x34f   :  { %v2013_v12 = vpop.f32.mrf.mxu2  ;;  %v1864_v1 = vpop.f32.mrf.mxu0 }
 0x350   :  { %v2088_v26 = vpop.f32.mrf.mxu3  ;;  %v1939_v44 = vpop.f32.mrf.mxu1  ;;  %v5636_v12 = vld [vmem:[#allocation8 + $0x90] sm:$0xf] }
 0x351   :  { %v6713_v26 = vld [vmem:[#allocation8 + $0x98] sm:$0xf0] }
 0x352   :  { %v5637_v1 = vor.u32 %v6713_v26, %v5636_v12  ;;  %v5381_v12 = vor.u32 %v6648_v43, %v5380_v51  ;;  %v6701_v51 = vld [vmem:[#allocation8 + $0x38] sm:$0xf0] }
 0x354   :  { %4233 = vmatpush.bf16.msra.mxu2 %v5637_v1  ;;  %2451 = vmatpush.bf16.msra.mxu1 %v5381_v12 }
 0x357   :  { %v2014_v35 = vpop.f32.mrf.mxu2  ;;  %v2100_v16 = vpop.f32.mrf.mxu0 }
 0x358   :  { %v2089_v24 = vpop.f32.mrf.mxu3  ;;  %v2171_v5 = vpop.f32.mrf.mxu1  ;;  %v5721_v35 = vor.u32 %v6734_v50, %v5720_v31 }
 0x359   :  { %v7533_v23 = vadd.f32 %v2171_v5, %v2100_v16  ;;  %v5624_v24 = vld [vmem:[#allocation8 + $0x78] sm:$0xf]  ;;  %v6710_v16 = vld [vmem:[#allocation8 + $0x80] sm:$0xf0] }
 0x35a   :  { %2139 = vmatmul.bf16.gmra.mxu0 %v7238_v56  ;;  %4248 = vmatpush.bf16.msra.mxu3 %v5721_v35  ;;  %v6704_v35 = vld [vmem:[#allocation8 + $0x50] sm:$0xf0] }
 0x35b   :  { %2210 = vmatmul.bf16.gmra.mxu1 %v7240_v58 }
 0x35c   :  { %2281 = vmatmul.bf16.gmra.mxu2 %v7238_v56 }
 0x35d   :  { %2352 = vmatmul.bf16.gmra.mxu3 %v7240_v58 }
 0x35f   :  { %v2242_v22 = vpop.f32.mrf.mxu2  ;;  %v2102_v63 = vpop.f32.mrf.mxu0 }
 0x360   :  { %v2313_v61 = vpop.f32.mrf.mxu3  ;;  %v2173_v34 = vpop.f32.mrf.mxu1 }
 0x361   :  { %v7539_v59 = vadd.f32 %v2313_v61, %v2242_v22  ;;  %v7541_v6 = vadd.f32 %v2173_v34, %v2102_v63  ;;  %v5625_v22 = vor.u32 %v6710_v16, %v5624_v24  ;;  %v5708_v63 = vld [vmem:[#allocation8 + $0x120] sm:$0xf]  ;;  %v6576_v34 = vld [vmem:[#allocation5 + $0xd0] sm:$0xf0] }
 0x362   :  { %v5709_v39 = vor.u32 %v6731_v62, %v5708_v63  ;;  %v5093_v38 = vor.u32 %v6576_v34, %v5092_v42  ;;  %v5684_v63 = vld [vmem:[#allocation8 + $0xf0] sm:$0xf]  ;;  %v6725_v62 = vld [vmem:[#allocation8 + $0xf8] sm:$0xf0] }
 0x363   :  { %4234 = vmatpush.bf16.msra.mxu2 %v5625_v22  ;;  %v5685_v42 = vor.u32 %v6725_v62, %v5684_v63  ;;  %v5588_v34 = vld [vmem:[#allocation8 + $0x30] sm:$0xf]  ;;  %v5840_v62 = vld [vmem:[#allocation8 + $0x228] sm:$0xf] }
 0x364   :  { %4249 = vmatpush.bf16.msra.mxu3 %v5709_v39  ;;  %2380 = vmatpush.bf16.msra.mxu0 %v5093_v38  ;;  %v5589_v39 = vor.u32 %v6701_v51, %v5588_v34 }
 0x367   :  { %v2244_v44 = vpop.f32.mrf.mxu2  ;;  %v2105_v7 = vpop.f32.mrf.mxu0 }
 0x368   :  { %v2315_v18 = vpop.f32.mrf.mxu3  ;;  %v2176_v4 = vpop.f32.mrf.mxu1 }
 0x369   :  { %v7543_v11 = vadd.f32 %v2315_v18, %v2244_v44  ;;  %v7545_v5 = vadd.f32 %v2176_v4, %v2105_v7  ;;  %v5696_v44 = vld [vmem:[#allocation8 + $0x108] sm:$0xf]  ;;  %v6728_v18 = vld [vmem:[#allocation8 + $0x110] sm:$0xf0] }
 0x36a   :  { %2144 = vmatmul.bf16.gmra.mxu0 %v7250_v10  ;;  %v5697_v50 = vor.u32 %v6728_v18, %v5696_v44  ;;  %v5600_v4 = vld [vmem:[#allocation8 + $0x48] sm:$0xf] }
 0x36b   :  { %v2701_v61 = vmax.f32 %v7533_v23, %v7545_v5  ;;  %2215 = vmatmul.bf16.gmra.mxu1 %v7252_v13  ;;  %v5613_v23 = vor.u32 %v6707_v46, %v5612_v28  ;;  %v5601_v16 = vor.u32 %v6704_v35, %v5600_v4  ;;  %v5672_v46 = vld [vmem:[#allocation8 + $0xd8] sm:$0xf]  ;;  %v5564_v35 = vld [vmem:[#allocation8] sm:$0xf] }
 0x36c   :  { %2286 = vmatmul.bf16.gmra.mxu2 %v7250_v10  ;;  %4250 = vmatpush.bf16.msra.mxu3 %v5697_v50  ;;  %v6719_v50 = vld [vmem:[#allocation8 + $0xc8] sm:$0xf0] }
 0x36d   :  { %2357 = vmatmul.bf16.gmra.mxu3 %v7252_v13  ;;  %4235 = vmatpush.bf16.msra.mxu2 %v5613_v23 }
 0x36f   :  { %v2247_v27 = vpop.f32.mrf.mxu2  ;;  %v2107_v1 = vpop.f32.mrf.mxu0 }
 0x370   :  { %v2318_v26 = vpop.f32.mrf.mxu3  ;;  %v2178_v31 = vpop.f32.mrf.mxu1  ;;  %4251 = vmatpush.bf16.msra.mxu3 %v5685_v42  ;;  %v6764_v42 = vld [vmem:[#allocation8 + $0x230] sm:$0xf0] }
 0x371   :  { %v7553_v7 = vadd.f32 %v2318_v26, %v2247_v27  ;;  %v7555_v24 = vadd.f32 %v2178_v31, %v2107_v1  ;;  %4236 = vmatpush.bf16.msra.mxu2 %v5601_v16  ;;  %v6722_v27 = vld [vmem:[#allocation8 + $0xe0] sm:$0xf0]  ;;  %v5576_v26 = vld [vmem:[#allocation8 + $0x18] sm:$0xf]  ;;  %v5660_v31 = vld [vmem:[#allocation8 + $0xc0] sm:$0xf]  ;;  %v5841_v51 = vor.u32 %v6764_v42, %v5840_v62 }
 0x372   :  { %v5673_v23 = vor.u32 %v6722_v27, %v5672_v46  ;;  %v5661_v4 = vor.u32 %v6719_v50, %v5660_v31  ;;  %v5936_v16 = vld [vmem:[#allocation8 + $0x2e8] sm:$0xf]  ;;  %v5924_v46 = vld [vmem:[#allocation8 + $0x2d0] sm:$0xf]  ;;  %v6785_v27 = vld [vmem:[#allocation8 + $0x2d8] sm:$0xf0] }
 0x373   :  { %v2710_v5 = vmax.f32 %v7539_v59, %v7553_v7  ;;  %v2728_v22 = vmax.f32 %v7541_v6, %v7555_v24  ;;  %v6698_v6 = vld [vmem:[#allocation8 + $0x20] sm:$0xf0]  ;;  %v6695_v24 = vld [vmem:[#allocation8 + $0x8] sm:$0xf0]  ;;  %v5912_v31 = vld [vmem:[#allocation8 + $0x2b8] sm:$0xf] }
 0x374   :  { %v5577_v44 = vor.u32 %v6698_v6, %v5576_v26  ;;  %4252 = vmatpush.bf16.msra.mxu3 %v5673_v23  ;;  %v5565_v63 = vor.u32 %v6695_v24, %v5564_v35  ;;  %v5828_v23 = vld [vmem:[#allocation8 + $0x210] sm:$0xf]  ;;  %v6761_v26 = vld [vmem:[#allocation8 + $0x218] sm:$0xf0]  ;;  %v6782_v50 = vld [vmem:[#allocation8 + $0x2c0] sm:$0xf0] }
 0x375   :  { %4237 = vmatpush.bf16.msra.mxu2 %v5589_v39  ;;  %v5816_v35 = vld [vmem:[#allocation8 + $0x1f8] sm:$0xf]  ;;  %v6758_v24 = vld [vmem:[#allocation8 + $0x200] sm:$0xf0] }
 0x377   :  { %v2249_v38 = vpop.f32.mrf.mxu2  ;;  %v2110_v28 = vpop.f32.mrf.mxu0 }
 0x378   :  { %v2320_v43 = vpop.f32.mrf.mxu3  ;;  %v2181_v59 = vpop.f32.mrf.mxu1  ;;  %4253 = vmatpush.bf16.msra.mxu3 %v5661_v4  ;;  %v5913_v4 = vor.u32 %v6782_v50, %v5912_v31 }
 0x379   :  { %v7561_v12 = vadd.f32 %v2320_v43, %v2249_v38  ;;  %v2182_v1 = vadd.f32 %v2181_v59, %v2110_v28  ;;  %4238 = vmatpush.bf16.msra.mxu2 %v5577_v44  ;;  %v5925_v59 = vor.u32 %v6785_v27, %v5924_v46  ;;  %v5056_v27 = vld [vmem:[#allocation5 + $0x68] sm:$0xf] }
 0x37a   :  { %2149 = vmatmul.bf16.gmra.mxu0 %v7262_v47 }
 0x37b   :  { %v2737_v18 = vmax.f32 %v7543_v11, %v7561_v12  ;;  %v7566_v7 = vmax.f32 %v2701_v61, %v2182_v1  ;;  %2220 = vmatmul.bf16.gmra.mxu1 %v7264_v52  ;;  %v6788_v11 = vld [vmem:[#allocation8 + $0x2f0] sm:$0xf0]  ;;  %v5829_v1 = vor.u32 %v6761_v26, %v5828_v23  ;;  %v6639_v26 = vld [vmem:[#allocation5 + $0x2c8] sm:$0xf0] }
 0x37c   :  { %2291 = vmatmul.bf16.gmra.mxu2 %v7262_v47  ;;  %v5937_v61 = vor.u32 %v6788_v11, %v5936_v16 }
 0x37d   :  { %2362 = vmatmul.bf16.gmra.mxu3 %v7264_v52  ;;  %4239 = vmatpush.bf16.msra.mxu2 %v5565_v63  ;;  %v5817_v63 = vor.u32 %v6758_v24, %v5816_v35  ;;  %v6752_v35 = vld [vmem:[#allocation8 + $0x1d0] sm:$0xf0] }
 0x37e   :  { %4274 = vmatpush.bf16.msrb.mxu3 %v5937_v61  ;;  %v5900_v61 = vld [vmem:[#allocation8 + $0x2a0] sm:$0xf] }
 0x37f   :  { %v2252_v34 = vpop.f32.mrf.mxu2  ;;  %v2112_v38 = vpop.f32.mrf.mxu0 }
 0x380   :  { %v2323_v39 = vpop.f32.mrf.mxu3  ;;  %v2183_v28 = vpop.f32.mrf.mxu1 }
 0x381   :  { %v2324_v43 = vadd.f32 %v2323_v39, %v2252_v34  ;;  %v2184_v12 = vadd.f32 %v2183_v28, %v2112_v38  ;;  %4260 = vmatpush.bf16.msrb.mxu2 %v5841_v51  ;;  %v5804_v39 = vld [vmem:[#allocation8 + $0x1e0] sm:$0xf]  ;;  %v6755_v38 = vld [vmem:[#allocation8 + $0x1e8] sm:$0xf0] }
 0x382   :  { %4275 = vmatpush.bf16.msrb.mxu3 %v5925_v59  ;;  %v5805_v28 = vor.u32 %v6755_v38, %v5804_v39  ;;  %v5344_v59 = vld [vmem:[#allocation5 + $0x2a8] sm:$0xf]  ;;  %v5780_v38 = vld [vmem:[#allocation8 + $0x1b0] sm:$0xf] }
 0x383   :  { %v7571_v6 = vmax.f32 %v2710_v5, %v2324_v43  ;;  %v7573_v44 = vmax.f32 %v2728_v22, %v2184_v12  ;;  %v6779_v5 = vld [vmem:[#allocation8 + $0x2a8] sm:$0xf0]  ;;  %v6567_v12 = vld [vmem:[#allocation5 + $0x88] sm:$0xf0]  ;;  %v5345_v31 = vor.u32 %v6639_v26, %v5344_v59  ;;  %v5864_v59 = vld [vmem:[#allocation8 + $0x258] sm:$0xf] }
 0x384   :  { %v5901_v22 = vor.u32 %v6779_v5, %v5900_v61  ;;  %v5057_v23 = vor.u32 %v6567_v12, %v5056_v27  ;;  %v6773_v61 = vld [vmem:[#allocation8 + $0x278] sm:$0xf0] }
 0x385   :  { %4261 = vmatpush.bf16.msrb.mxu2 %v5829_v1  ;;  %v5888_v1 = vld [vmem:[#allocation8 + $0x288] sm:$0xf]  ;;  %2452 = vmatpush.bf16.msra.mxu1 %v5345_v31 }
 0x386   :  { %4276 = vmatpush.bf16.msrb.mxu3 %v5913_v4  ;;  %v5792_v4 = vld [vmem:[#allocation8 + $0x1c8] sm:$0xf]  ;;  %2381 = vmatpush.bf16.msra.mxu0 %v5057_v23  ;;  %v6770_v23 = vld [vmem:[#allocation8 + $0x260] sm:$0xf0] }
 0x387   :  { %v2254_v16 = vpop.f32.mrf.mxu2  ;;  %v2115_v62 = vpop.f32.mrf.mxu0  ;;  %v5865_v26 = vor.u32 %v6770_v23, %v5864_v59 }
 0x388   :  { %v2325_v11 = vpop.f32.mrf.mxu3  ;;  %v2186_v34 = vpop.f32.mrf.mxu1 }
 0x389   :  { %v2326_v42 = vadd.f32 %v2325_v11, %v2254_v16  ;;  %v7575_v51 = vadd.f32 %v2186_v34, %v2115_v62  ;;  %4262 = vmatpush.bf16.msrb.mxu2 %v5817_v63  ;;  %v5793_v16 = vor.u32 %v6752_v35, %v5792_v4  ;;  %v5876_v34 = vld [vmem:[#allocation8 + $0x270] sm:$0xf]  ;;  %v5020_v35 = vld [vmem:[#allocation5 + $0x20] sm:$0xf] }
 0x38a   :  { %2152 = vmatmul.bf16.gmra.mxu0 %v7277_v45  ;;  %4277 = vmatpush.bf16.msrb.mxu3 %v5901_v22  ;;  %v5877_v39 = vor.u32 %v6773_v61, %v5876_v34  ;;  %v6749_v22 = vld [vmem:[#allocation8 + $0x1b8] sm:$0xf0]  ;;  %v6767_v61 = vld [vmem:[#allocation8 + $0x248] sm:$0xf0] }
 0x38b   :  { %v7577_v43 = vmax.f32 %v2737_v18, %v2326_v42  ;;  %v2703_v46 = vmax.f32 %v7566_v7, %v7575_v51  ;;  %2223 = vmatmul.bf16.gmra.mxu1 %v7279_v57  ;;  %v6776_v18 = vld [vmem:[#allocation8 + $0x290] sm:$0xf0]  ;;  %v5781_v27 = vor.u32 %v6749_v22, %v5780_v38  ;;  %v5756_v38 = vld [vmem:[#allocation8 + $0x180] sm:$0xf]  ;;  %v6743_v22 = vld [vmem:[#allocation8 + $0x188] sm:$0xf0] }
 0x38c   :  { %2294 = vmatmul.bf16.gmra.mxu2 %v7277_v45  ;;  %v5889_v50 = vor.u32 %v6776_v18, %v5888_v1  ;;  %v5768_v1 = vld [vmem:[#allocation8 + $0x198] sm:$0xf]  ;;  %v6746_v18 = vld [vmem:[#allocation8 + $0x1a0] sm:$0xf0]  ;;  %v5757_v59 = vor.u32 %v6743_v22, %v5756_v38  ;;  %v6128_v38 = vld [vmem:[#allocation8 + $0x468] sm:$0xf] }
 0x38d   :  { %2365 = vmatmul.bf16.gmra.mxu3 %v7279_v57  ;;  %4263 = vmatpush.bf16.msrb.mxu2 %v5805_v28  ;;  %v5769_v4 = vor.u32 %v6746_v18, %v5768_v1  ;;  %v6836_v22 = vld [vmem:[#allocation8 + $0x470] sm:$0xf0] }
 0x38e   :  { %4278 = vmatpush.bf16.msrb.mxu3 %v5889_v50  ;;  %v6558_v50 = vld [vmem:[#allocation5 + $0x40] sm:$0xf0] }
 0x38f   :  { %v2257_v24 = vpop.f32.mrf.mxu2  ;;  %v2117_v11 = vpop.f32.mrf.mxu0 }
 0x390   :  { %v2328_v63 = vpop.f32.mrf.mxu3  ;;  %v2188_v42 = vpop.f32.mrf.mxu1 }
 0x391   :  { %v2329_v62 = vadd.f32 %v2328_v63, %v2257_v24  ;;  %v2189_v5 = vadd.f32 %v2188_v42, %v2117_v11  ;;  %4264 = vmatpush.bf16.msrb.mxu2 %v5793_v16  ;;  %v5308_v24 = vld [vmem:[#allocation5 + $0x260] sm:$0xf]  ;;  %v6630_v11 = vld [vmem:[#allocation5 + $0x280] sm:$0xf0] }
 0x392   :  { %4279 = vmatpush.bf16.msrb.mxu3 %v5877_v39  ;;  %v5309_v34 = vor.u32 %v6630_v11, %v5308_v24 }
 0x393   :  { %v2712_v28 = vmax.f32 %v7571_v6, %v2329_v62  ;;  %v2730_v12 = vmax.f32 %v7573_v44, %v2189_v5  ;;  %v5021_v62 = vor.u32 %v6558_v50, %v5020_v35  ;;  %v5852_v44 = vld [vmem:[#allocation8 + $0x240] sm:$0xf] }
 0x394   :  { %v5853_v39 = vor.u32 %v6767_v61, %v5852_v44  ;;  %2453 = vmatpush.bf16.msra.mxu1 %v5309_v34  ;;  %v6032_v61 = vld [vmem:[#allocation8 + $0x3a8] sm:$0xf]  ;;  %v6800_v44 = vld [vmem:[#allocation8 + $0x350] sm:$0xf0] }
 0x395   :  { %4265 = vmatpush.bf16.msrb.mxu2 %v5781_v27  ;;  %2382 = vmatpush.bf16.msra.mxu0 %v5021_v62 }
 0x396   :  { %4280 = vmatpush.bf16.msrb.mxu3 %v5865_v26 }
 0x397   :  { %v2259_v31 = vpop.f32.mrf.mxu2  ;;  %v2120_v63 = vpop.f32.mrf.mxu0 }
 0x398   :  { %v2330_v16 = vpop.f32.mrf.mxu3  ;;  %v2191_v6 = vpop.f32.mrf.mxu1 }
 0x399   :  { %v2331_v42 = vadd.f32 %v2330_v16, %v2259_v31  ;;  %v2192_v5 = vadd.f32 %v2191_v6, %v2120_v63  ;;  %4266 = vmatpush.bf16.msrb.mxu2 %v5769_v4 }
 0x39a   :  { %2155 = vmatmul.bf16.gmra.mxu0 %v7293_v9  ;;  %4281 = vmatpush.bf16.msrb.mxu3 %v5853_v39 }
 0x39b   :  { %v2739_v27 = vmax.f32 %v7577_v43, %v2331_v42  ;;  %v7592_v23 = vmax.f32 %v2703_v46, %v2192_v5  ;;  %2226 = vmatmul.bf16.gmra.mxu1 %v7295_v17  ;;  %v6812_v5 = vld [vmem:[#allocation8 + $0x3b0] sm:$0xf0]  ;;  %v5984_v42 = vld [vmem:[#allocation8 + $0x348] sm:$0xf] }
 0x39c   :  { %2297 = vmatmul.bf16.gmra.mxu2 %v7293_v9  ;;  %v6884_v9 = vld [vmem:[#allocation8 + $0x5f0] sm:$0xf0] }
 0x39d   :  { %2368 = vmatmul.bf16.gmra.mxu3 %v7295_v17  ;;  %4267 = vmatpush.bf16.msrb.mxu2 %v5757_v59 }
 0x39f   :  { %v2262_v26 = vpop.f32.mrf.mxu2  ;;  %v2122_v1 = vpop.f32.mrf.mxu0 }
 0x3a0   :  { %v2333_v43 = vpop.f32.mrf.mxu3  ;;  %v2193_v31 = vpop.f32.mrf.mxu1 }
 0x3a1   :  { %v2334_v18 = vadd.f32 %v2333_v43, %v2262_v26  ;;  %v2194_v4 = vadd.f32 %v2193_v31, %v2122_v1  ;;  %v6033_v43 = vor.u32 %v6812_v5, %v6032_v61  ;;  %v6129_v1 = vor.u32 %v6836_v22, %v6128_v38  ;;  %v6809_v31 = vld [vmem:[#allocation8 + $0x398] sm:$0xf0]  ;;  %v6830_v61 = vld [vmem:[#allocation8 + $0x440] sm:$0xf0] }
 0x3a3   :  { %v7597_v35 = vmax.f32 %v2712_v28, %v2334_v18  ;;  %v7599_v7 = vmax.f32 %v2730_v12, %v2194_v4  ;;  %v6020_v18 = vld [vmem:[#allocation8 + $0x390] sm:$0xf] }
 0x3a4   :  { %v6116_v4 = vld [vmem:[#allocation8 + $0x450] sm:$0xf] }
 0x3a7   :  { %v2264_v51 = vpop.f32.mrf.mxu2  ;;  %v2125_v50 = vpop.f32.mrf.mxu0 }
 0x3a8   :  { %v2335_v46 = vpop.f32.mrf.mxu3  ;;  %v2196_v16 = vpop.f32.mrf.mxu1 }
 0x3a9   :  { %v2336_v24 = vadd.f32 %v2335_v46, %v2264_v51  ;;  %v7601_v63 = vadd.f32 %v2196_v16, %v2125_v50  ;;  %v6833_v51 = vld [vmem:[#allocation8 + $0x458] sm:$0xf0]  ;;  %v6021_v46 = vor.u32 %v6809_v31, %v6020_v18  ;;  %v6806_v16 = vld [vmem:[#allocation8 + $0x380] sm:$0xf0]  ;;  %v6803_v18 = vld [vmem:[#allocation8 + $0x368] sm:$0xf0] }
 0x3aa   :  { %2158 = vmatmul.bf16.gmra.mxu0 %v7305_v0  ;;  %v6117_v50 = vor.u32 %v6833_v51, %v6116_v4  ;;  %v6827_v31 = vld [vmem:[#allocation8 + $0x428] sm:$0xf0] }
 0x3ab   :  { %v7603_v11 = vmax.f32 %v2739_v27, %v2336_v24  ;;  %2229 = vmatmul.bf16.gmra.mxu1 %v7307_v8  ;;  %v6008_v24 = vld [vmem:[#allocation8 + $0x378] sm:$0xf] }
 0x3ac   :  { %2300 = vmatmul.bf16.gmra.mxu2 %v7305_v0  ;;  %v6824_v0 = vld [vmem:[#allocation8 + $0x410] sm:$0xf0] }
 0x3ad   :  { %2371 = vmatmul.bf16.gmra.mxu3 %v7307_v8  ;;  %v6080_v8 = vld [vmem:[#allocation8 + $0x408] sm:$0xf] }
 0x3af   :  { %v2267_v28 = vpop.f32.mrf.mxu2  ;;  %v7611_v6 = vpop.f32.mrf.mxu0 }
 0x3b0   :  { %v2338_v12 = vpop.f32.mrf.mxu3  ;;  %v7615_v34 = vpop.f32.mrf.mxu1 }
 0x3b1   :  { %v7613_v62 = vadd.f32 %v2338_v12, %v2267_v28  ;;  %v6104_v12 = vld [vmem:[#allocation8 + $0x438] sm:$0xf] }
 0x3b2   :  { %v6105_v22 = vor.u32 %v6830_v61, %v6104_v12  ;;  %v5972_v12 = vld [vmem:[#allocation8 + $0x330] sm:$0xf]  ;;  %v6797_v61 = vld [vmem:[#allocation8 + $0x338] sm:$0xf0] }
 0x3b7   :  { %v7619_v39 = vpop.f32.mrf.mxu2  ;;  %v7623_v59 = vpop.f32.mrf.mxu0 }
 0x3b8   :  { %v7621_v27 = vpop.f32.mrf.mxu3  ;;  %v7625_v26 = vpop.f32.mrf.mxu1 }
 0x3ba   :  { %2383 = vmatmul.bf16.vlgmr.msra.gmra.mxu0 %v7174_v36 }
 0x3bb   :  { %2454 = vmatmul.bf16.vlgmr.msra.gmra.mxu1 %v7176_v37  ;;  %v6009_v37 = vor.u32 %v6806_v16, %v6008_v24  ;;  %v5985_v24 = vor.u32 %v6800_v44, %v5984_v42  ;;  %v6081_v16 = vor.u32 %v6824_v0, %v6080_v8  ;;  %v6794_v42 = vld [vmem:[#allocation8 + $0x320] sm:$0xf0]  ;;  %v6056_v0 = vld [vmem:[#allocation8 + $0x3d8] sm:$0xf] }
 0x3bc   :  { %4240 = vmatmul.bf16.vlgmr.msra.gmra.mxu2 %v7349_v60  ;;  %v6818_v8 = vld [vmem:[#allocation8 + $0x3e0] sm:$0xf0] }
 0x3bd   :  { %4254 = vmatmul.bf16.vlgmr.msra.gmra.mxu3 %v7355_v29  ;;  %4288 = vmatpush.bf16.msra.mxu2 %v6033_v43  ;;  %v5996_v43 = vld [vmem:[#allocation8 + $0x360] sm:$0xf] }
 0x3be   :  { %4302 = vmatpush.bf16.msra.mxu3 %v6129_v1  ;;  %v6092_v1 = vld [vmem:[#allocation8 + $0x420] sm:$0xf]  ;;  %v5997_v4 = vor.u32 %v6803_v18, %v5996_v43  ;;  %v5973_v43 = vor.u32 %v6797_v61, %v5972_v12  ;;  %v6815_v61 = vld [vmem:[#allocation8 + $0x3c8] sm:$0xf0] }
 0x3bf   :  { %v7631_v28 = vpop.f32.mrf.mxu2  ;;  %v7635_v36 = vpop.f32.mrf.mxu0  ;;  %v6093_v51 = vor.u32 %v6827_v31, %v6092_v1  ;;  %v5960_v1 = vld [vmem:[#allocation8 + $0x318] sm:$0xf]  ;;  %v5948_v12 = vld [vmem:[#allocation8 + $0x300] sm:$0xf] }
 0x3c0   :  { %v7633_v5 = vpop.f32.mrf.mxu3  ;;  %v7637_v38 = vpop.f32.mrf.mxu1 }
 0x3c1   :  { %4289 = vmatpush.bf16.msra.mxu2 %v6021_v46 }
 0x3c2   :  { %4303 = vmatpush.bf16.msra.mxu3 %v6117_v50 }
 0x3c5   :  { %4290 = vmatpush.bf16.msra.mxu2 %v6009_v37  ;;  %v6068_v37 = vld [vmem:[#allocation8 + $0x3f0] sm:$0xf] }
 0x3c6   :  { %4304 = vmatpush.bf16.msra.mxu3 %v6105_v22  ;;  %v6821_v22 = vld [vmem:[#allocation8 + $0x3f8] sm:$0xf0] }
 0x3c7   :  { %v7639_v29 = vpop.f32.mrf.mxu2  ;;  %v7643_v46 = vpop.f32.mrf.mxu0  ;;  %v6069_v18 = vor.u32 %v6821_v22, %v6068_v37  ;;  %v6224_v37 = vld [vmem:[#allocation8 + $0x528] sm:$0xf]  ;;  %v6860_v22 = vld [vmem:[#allocation8 + $0x530] sm:$0xf0] }
 0x3c8   :  { %v7641_v17 = vpop.f32.mrf.mxu3  ;;  %v7645_v50 = vpop.f32.mrf.mxu1  ;;  %v6225_v52 = vor.u32 %v6860_v22, %v6224_v37  ;;  %v6875_v37 = vld [vmem:[#allocation8 + $0x5a8] sm:$0xf0] }
 0x3c9   :  { %4291 = vmatpush.bf16.msra.mxu2 %v5997_v4 }
 0x3ca   :  { %4305 = vmatpush.bf16.msra.mxu3 %v6093_v51  ;;  %2388 = vmatmul.bf16.gmra.mxu0 %v7182_v48  ;;  %v6057_v51 = vor.u32 %v6818_v8, %v6056_v0  ;;  %v6308_v0 = vld [vmem:[#allocation8 + $0x5d0] sm:$0xf]  ;;  %v6881_v8 = vld [vmem:[#allocation8 + $0x5d8] sm:$0xf0] }
 0x3cb   :  { %2459 = vmatmul.bf16.gmra.mxu1 %v7184_v49  ;;  %v5961_v49 = vor.u32 %v6794_v42, %v5960_v1  ;;  %v6857_v1 = vld [vmem:[#allocation8 + $0x518] sm:$0xf0] }
 0x3cc   :  { %4268 = vmatmul.bf16.vlgmr.msrb.gmra.mxu2 %v7442_v25 }
 0x3cd   :  { %4282 = vmatmul.bf16.vlgmr.msrb.gmra.mxu3 %v7435_v19  ;;  %4292 = vmatpush.bf16.msra.mxu2 %v5985_v24  ;;  %v6044_v24 = vld [vmem:[#allocation8 + $0x3c0] sm:$0xf]  ;;  %v6320_v19 = vld [vmem:[#allocation8 + $0x5e8] sm:$0xf] }
 0x3ce   :  { %4306 = vmatpush.bf16.msra.mxu3 %v6081_v16  ;;  %v6791_v16 = vld [vmem:[#allocation8 + $0x308] sm:$0xf0]  ;;  %v6045_v45 = vor.u32 %v6815_v61, %v6044_v24  ;;  %v6321_v13 = vor.u32 %v6884_v9, %v6320_v19  ;;  %v6854_v24 = vld [vmem:[#allocation8 + $0x500] sm:$0xf0]  ;;  %v6296_v9 = vld [vmem:[#allocation8 + $0x5b8] sm:$0xf] }
 0x3cf   :  { %v7651_v44 = vpop.f32.mrf.mxu2  ;;  %v7655_v48 = vpop.f32.mrf.mxu0  ;;  %v5949_v57 = vor.u32 %v6791_v16, %v5948_v12  ;;  %v6878_v19 = vld [vmem:[#allocation8 + $0x5c0] sm:$0xf0]  ;;  %v6284_v61 = vld [vmem:[#allocation8 + $0x5a0] sm:$0xf] }
 0x3d0   :  { %v7653_v31 = vpop.f32.mrf.mxu3  ;;  %v7657_v4 = vpop.f32.mrf.mxu1 }
 0x3d1   :  { %4293 = vmatpush.bf16.msra.mxu2 %v5973_v43  ;;  %v6212_v43 = vld [vmem:[#allocation8 + $0x510] sm:$0xf] }
 0x3d2   :  { %4307 = vmatpush.bf16.msra.mxu3 %v6069_v18  ;;  %v6213_v58 = vor.u32 %v6857_v1, %v6212_v43  ;;  %v6285_v43 = vor.u32 %v6875_v37, %v6284_v61  ;;  %v6176_v1 = vld [vmem:[#allocation8 + $0x4c8] sm:$0xf]  ;;  %v7874_v61 = vmax.f32 %v7597_v35, %v7613_v62  ;;  %v7875_v37 = vmax.f32 %v7592_v23, %v7601_v63 }
 0x3d3   :  { %v2346_v35 = vadd.f32 %v7641_v17, %v7639_v29  ;;  %v7697_v17 = vld [vmem:[#allocation7 + $0x6] sm:$0x7] }
 0x3d5   :  { %4294 = vmatpush.bf16.msra.mxu2 %v5961_v49  ;;  %v6309_v49 = vor.u32 %v6881_v8, %v6308_v0  ;;  %v6848_v0 = vld [vmem:[#allocation8 + $0x4d0] sm:$0xf0]  ;;  %v6272_v8 = vld [vmem:[#allocation8 + $0x588] sm:$0xf] }
 0x3d6   :  { %4308 = vmatpush.bf16.msra.mxu3 %v6057_v51  ;;  %v6200_v51 = vld [vmem:[#allocation8 + $0x4f8] sm:$0xf] }
 0x3d7   :  { %v7659_v47 = vpop.f32.mrf.mxu2  ;;  %v2140_v42 = vpop.f32.mrf.mxu0  ;;  %v6201_v12 = vor.u32 %v6854_v24, %v6200_v51  ;;  %v6177_v51 = vor.u32 %v6848_v0, %v6176_v1  ;;  %v2341_v24 = vadd.f32 %v7621_v27, %v7619_v39  ;;  %v2349_v27 = vadd.f32 %v7653_v31, %v7651_v44  ;;  %v6152_v44 = vld [vmem:[#allocation8 + $0x498] sm:$0xf]  ;;  %v6842_v31 = vld [vmem:[#allocation8 + $0x4a0] sm:$0xf0] }
 0x3d8   :  { %v7661_v18 = vpop.f32.mrf.mxu3  ;;  %v2211_v10 = vpop.f32.mrf.mxu1  ;;  %v6153_v0 = vor.u32 %v6842_v31, %v6152_v44 }
 0x3d9   :  { %4295 = vmatpush.bf16.msra.mxu2 %v5949_v57  ;;  %v6188_v57 = vld [vmem:[#allocation8 + $0x4e0] sm:$0xf] }
 0x3da   :  { %4309 = vmatpush.bf16.msra.mxu3 %v6045_v45  ;;  %2393 = vmatmul.bf16.gmra.mxu0 %v7190_v54 }
 0x3db   :  { %2464 = vmatmul.bf16.gmra.mxu1 %v7192_v55 }
 0x3dc   :  { %4296 = vmatmul.bf16.vlgmr.msra.gmra.mxu2 %v7521_v53 }
 0x3dd   :  { %4316 = vmatpush.bf16.msrb.mxu2 %v6225_v52  ;;  %4310 = vmatmul.bf16.vlgmr.msra.gmra.mxu3 %v7527_v30  ;;  %v6297_v52 = vor.u32 %v6878_v19, %v6296_v9  ;;  %v6872_v30 = vld [vmem:[#allocation8 + $0x590] sm:$0xf0] }
 0x3de   :  { %4330 = vmatpush.bf16.msrb.mxu3 %v6321_v13  ;;  %v6851_v13 = vld [vmem:[#allocation8 + $0x4e8] sm:$0xf0]  ;;  %v6273_v19 = vor.u32 %v6872_v30, %v6272_v8 }
 0x3df   :  { %v2282_v45 = vpop.f32.mrf.mxu2  ;;  %v2142_v54 = vpop.f32.mrf.mxu0  ;;  %v6189_v55 = vor.u32 %v6851_v13, %v6188_v57  ;;  %v2199_v57 = vadd.f32 %v7615_v34, %v7611_v6  ;;  %v2204_v6 = vadd.f32 %v7637_v38, %v7635_v36  ;;  %v2212_v34 = vadd.f32 %v2211_v10, %v2140_v42  ;;  %v6248_v38 = vld [vmem:[#allocation8 + $0x558] sm:$0xf] }
 0x3e0   :  { %v2353_v16 = vpop.f32.mrf.mxu3  ;;  %v2213_v22 = vpop.f32.mrf.mxu1  ;;  %v2209_v36 = vadd.f32 %v7657_v4, %v7655_v48 }
 0x3e1   :  { %4317 = vmatpush.bf16.msrb.mxu2 %v6213_v58  ;;  %v2344_v58 = vadd.f32 %v7633_v5, %v7631_v28  ;;  %v2207_v28 = vadd.f32 %v7645_v50, %v7643_v46  ;;  %v2741_v50 = vmax.f32 %v7603_v11, %v2341_v24  ;;  %v2732_v23 = vmax.f32 %v7599_v7, %v2199_v57  ;;  %v6866_v11 = vld [vmem:[#allocation8 + $0x560] sm:$0xf0]  ;;  %v6715_v57 = vld [vmem:[#allocation8 + $0xac] sm:$0xf] }
 0x3e2   :  { %4331 = vmatpush.bf16.msrb.mxu3 %v6309_v49  ;;  %v2202_v49 = vadd.f32 %v7625_v26, %v7623_v59  ;;  %v6260_v59 = vld [vmem:[#allocation8 + $0x570] sm:$0xf]  ;;  %v6869_v26 = vld [vmem:[#allocation8 + $0x578] sm:$0xf0]  ;;  %v2214_v1 = vadd.f32 %v2213_v22, %v2142_v54  ;;  %v2351_v7 = vadd.f32 %v7661_v18, %v7659_v47  ;;  %v6249_v4 = vor.u32 %v6866_v11, %v6248_v38  ;;  %v5626_v38 = vld [vmem:[#allocation8 + $0x84] sm:$0xf0] }
 0x3e3   :  { %v2715_v39 = vmax.f32 %v7874_v61, %v2344_v58  ;;  %v6261_v62 = vor.u32 %v6869_v26, %v6260_v59  ;;  %v2733_v29 = vmax.f32 %v2732_v23, %v2204_v6  ;;  %v2742_v8 = vmax.f32 %v2741_v50, %v2346_v35  ;;  %v6140_v58 = vld [vmem:[#allocation8 + $0x480] sm:$0xf]  ;;  %v6712_v6 = vld [vmem:[#allocation8 + $0x94] sm:$0xf] }
 0x3e5   :  { %4318 = vmatpush.bf16.msrb.mxu2 %v6201_v12  ;;  %v6164_v12 = vld [vmem:[#allocation8 + $0x4b0] sm:$0xf]  ;;  %v2716_v42 = vmax.f32 %v2715_v39, %v2349_v27  ;;  %v2743_v59 = vmax.f32 %v2742_v8, %v2351_v7 }
 0x3e6   :  { %4332 = vmatpush.bf16.msrb.mxu3 %v6297_v52  ;;  %v6845_v52 = vld [vmem:[#allocation8 + $0x4b8] sm:$0xf0] }
 0x3e7   :  { %v7673_v9 = vpop.f32.mrf.mxu2  ;;  %v2145_v13 = vpop.f32.mrf.mxu0  ;;  %v6165_v46 = vor.u32 %v6845_v52, %v6164_v12  ;;  %v6863_v12 = vld [vmem:[#allocation8 + $0x548] sm:$0xf0] }
 0x3e8   :  { %v2355_v5 = vpop.f32.mrf.mxu3  ;;  %v2216_v30 = vpop.f32.mrf.mxu1 }
 0x3e9   :  { %4319 = vmatpush.bf16.msrb.mxu2 %v6189_v55  ;;  %v2706_v55 = vmax.f32 %v7875_v37, %v2202_v49  ;;  %v2217_v10 = vadd.f32 %v2216_v30, %v2145_v13  ;;  %v2734_v49 = vmax.f32 %v2733_v29, %v2209_v36  ;;  %v2356_v26 = vadd.f32 %v2355_v5, %v7673_v9 }
 0x3ea   :  { %4333 = vmatpush.bf16.msrb.mxu3 %v6285_v43  ;;  %2398 = vmatmul.bf16.gmra.mxu0 %v7198_v2  ;;  %v2354_v43 = vadd.f32 %v2353_v16, %v2282_v45  ;;  %v2757_v45 = vperm.slane %v7697_v17, 0 }
 0x3eb   :  { %v2707_v63 = vmax.f32 %v2706_v55, %v2207_v28  ;;  %2469 = vmatmul.bf16.gmra.mxu1 %v7200_v3  ;;  %v6839_v3 = vld [vmem:[#allocation8 + $0x488] sm:$0xf0]  ;;  %v5650_v28 = vld [vmem:[#allocation8 + $0xb4] sm:$0xf0]  ;;  %v2735_v13 = vmax.f32 %v2734_v49, %v2214_v1  ;;  %v2758_v55 = vperm.slane %v7697_v17, 1  ;;  %v2744_v50 = vmax.f32 %v2743_v59, %v2356_v26 }
 0x3ec   :  { %v2717_v54 = vmax.f32 %v2716_v42, %v2354_v43  ;;  %v6141_v18 = vor.u32 %v6839_v3, %v6140_v58  ;;  %v5653_v30 = vor.u32 %v6715_v57, %v5650_v28  ;;  %v5614_v1 = vld [vmem:[#allocation8 + $0x6c] sm:$0xf0]  ;;  %v5602_v49 = vld [vmem:[#allocation8 + $0x54] sm:$0xf0]  ;;  %v6694_v28 = vld [vmem:[#allocation8 + $0x4] sm:$0xf] }
 0x3ed   :  { %4320 = vmatpush.bf16.msrb.mxu2 %v6177_v51  ;;  %v2708_v2 = vmax.f32 %v2707_v63, %v2212_v34  ;;  %v5638_v34 = vld [vmem:[#allocation8 + $0x9c] sm:$0xf0] }
 0x3ee   :  { %4334 = vmatpush.bf16.msrb.mxu3 %v6273_v19  ;;  %v6236_v19 = vld [vmem:[#allocation8 + $0x540] sm:$0xf]  ;;  %v5641_v5 = vor.u32 %v6712_v6, %v5638_v34  ;;  %v6757_v6 = vld [vmem:[#allocation8 + $0x1fc] sm:$0xf]  ;;  %v5818_v34 = vld [vmem:[#allocation8 + $0x204] sm:$0xf0] }
 0x3ef   :  { %v2287_v48 = vpop.f32.mrf.mxu2  ;;  %v2709_v51 = vmax.f32 %v2708_v2, %v2217_v10  ;;  %v2147_v24 = vpop.f32.mrf.mxu0  ;;  %v6237_v61 = vor.u32 %v6863_v12, %v6236_v19  ;;  %v6709_v10 = vld [vmem:[#allocation8 + $0x7c] sm:$0xf]  ;;  %v6706_v2 = vld [vmem:[#allocation8 + $0x64] sm:$0xf] }
 0x3f0   :  { %v2358_v16 = vpop.f32.mrf.mxu3  ;;  %v2218_v52 = vpop.f32.mrf.mxu1  ;;  %v5629_v43 = vor.u32 %v6709_v10, %v5626_v38 }
 0x3f1   :  { %4321 = vmatpush.bf16.msrb.mxu2 %v6165_v46  ;;  %v2359_v22 = vadd.f32 %v2358_v16, %v2287_v48  ;;  %v2219_v47 = vadd.f32 %v2218_v52, %v2147_v24  ;;  %v2763_v39 = vadd.f32 %v2757_v45, %v2709_v51  ;;  %v6700_v51 = vld [vmem:[#allocation8 + $0x34] sm:$0xf]  ;;  %v5578_v52 = vld [vmem:[#allocation8 + $0x24] sm:$0xf0] }
 0x3f2   :  { %4335 = vmatpush.bf16.msrb.mxu3 %v6261_v62 }
 0x3f3   :  { %v2736_v27 = vmax.f32 %v2735_v13, %v2219_v47  ;;  %v2718_v37 = vmax.f32 %v2717_v54, %v2359_v22  ;;  %v2769_v62 = vmax.f32 %v2763_v39, 0.0  ;;  %v6697_v22 = vld [vmem:[#allocation8 + $0x1c] sm:$0xf]  ;;  %v5566_v13 = vld [vmem:[#allocation8 + $0xc] sm:$0xf0] }
 0x3f4   :  { %v5581_v57 = vor.u32 %v6697_v22, %v5578_v52  ;;  %v6763_v47 = vld [vmem:[#allocation8 + $0x22c] sm:$0xf]  ;;  %v5569_v39 = vor.u32 %v6694_v28, %v5566_v13  ;;  %v6010_v28 = vld [vmem:[#allocation8 + $0x384] sm:$0xf0]  ;;  %v6226_v13 = vld [vmem:[#allocation8 + $0x534] sm:$0xf0] }
 0x3f5   :  { %4322 = vmatpush.bf16.msrb.mxu2 %v6153_v0  ;;  %v2766_v46 = vadd.f32 %v2757_v45, %v2736_v27  ;;  %v2764_v23 = vadd.f32 %v2758_v55, %v2718_v37  ;;  %v5590_v45 = vld [vmem:[#allocation8 + $0x3c] sm:$0xf0]  ;;  %v6760_v37 = vld [vmem:[#allocation8 + $0x214] sm:$0xf] }
 0x3f6   :  { %4336 = vmatpush.bf16.msrb.mxu3 %v6249_v4  ;;  %v5617_v4 = vor.u32 %v6706_v2, %v5614_v1  ;;  %v5593_v12 = vor.u32 %v6700_v51, %v5590_v45  ;;  %v6745_v2 = vld [vmem:[#allocation8 + $0x19c] sm:$0xf]  ;;  %v5770_v1 = vld [vmem:[#allocation8 + $0x1a4] sm:$0xf0]  ;;  %v6835_v51 = vld [vmem:[#allocation8 + $0x46c] sm:$0xf] }
 0x3f7   :  { %v2289_v35 = vpop.f32.mrf.mxu2  ;;  %v2772_v44 = vmax.f32 %v2766_v46, 0.0  ;;  %v2150_v9 = vpop.f32.mrf.mxu0  ;;  %v2770_v17 = vmax.f32 %v2764_v23, 0.0  ;;  %v5794_v23 = vld [vmem:[#allocation8 + $0x1d4] sm:$0xf0] }
 0x3f8   :  { %v2360_v31 = vpop.f32.mrf.mxu3  ;;  %v2221_v36 = vpop.f32.mrf.mxu1  ;;  %v6130_v45 = vld [vmem:[#allocation8 + $0x474] sm:$0xf0] }
 0x3f9   :  { %4323 = vmatpush.bf16.msrb.mxu2 %v6141_v18  ;;  %v2361_v63 = vadd.f32 %v2360_v31, %v2289_v35  ;;  %v7704_v11 = vpack.c.bf16 %v2772_v44, %v2769_v62  ;;  %v5842_v18 = vld [vmem:[#allocation8 + $0x234] sm:$0xf0]  ;;  %v5821_v62 = vor.u32 %v6757_v6, %v5818_v34  ;;  %v6754_v44 = vld [vmem:[#allocation8 + $0x1e4] sm:$0xf]  ;;  %v5806_v31 = vld [vmem:[#allocation8 + $0x1ec] sm:$0xf0] }
 0x3fa   :  { %4337 = vmatpush.bf16.msrb.mxu3 %v6237_v61  ;;  %2403 = vmatmul.bf16.gmra.mxu0 %v7206_v14  ;;  %v6703_v14 = vld [vmem:[#allocation8 + $0x4c] sm:$0xf]  ;;  %v5809_v9 = vor.u32 %v6754_v44, %v5806_v31  ;;  %v5986_v6 = vld [vmem:[#allocation8 + $0x354] sm:$0xf0]  ;;  %v7876_v34 = vld [vmem:[#allocation16_spill] sm:$0xff] }
 0x3fb   :  { %v2745_v42 = vmax.f32 %v2744_v50, %v2361_v63  ;;  %2474 = vmatmul.bf16.gmra.mxu1 %v7208_v15  ;;  %v5605_v15 = vor.u32 %v6703_v14, %v5602_v49  ;;  %v6034_v14 = vld [vmem:[#allocation8 + $0x3b4] sm:$0xf0] }
 0x3fc   :  { %4324 = vmatmul.bf16.vlgmr.msrb.gmra.mxu2 %v7704_v11 }
 0x3fd   :  { %v2767_v29 = vadd.f32 %v2758_v55, %v2745_v42  ;;  %v5830_v55 = vld [vmem:[#allocation8 + $0x21c] sm:$0xf0] }
 0x3fe   :  { %4358 = vmatpush.bf16.msra.mxu3 %v5653_v30  ;;  %v5845_v30 = vor.u32 %v6763_v47, %v5842_v18 }
 0x3ff   :  { %v2773_v0 = vmax.f32 %v2767_v29, 0.0  ;;  %v2292_v8 = vpop.f32.mrf.mxu2  ;;  %v2151_v48 = vpop.f32.mrf.mxu0 }
 0x400   :  { %v2363_v7 = vpop.f32.mrf.mxu3  ;;  %v2222_v3 = vpop.f32.mrf.mxu1  ;;  %v6742_v48 = vld [vmem:[#allocation8 + $0x184] sm:$0xf] }
 0x401   :  { %v7709_v58 = vpack.c.bf16 %v2773_v0, %v2770_v17  ;;  %v5782_v17 = vld [vmem:[#allocation8 + $0x1bc] sm:$0xf0]  ;;  %v5773_v7 = vor.u32 %v6745_v2, %v5770_v1  ;;  %v6811_v3 = vld [vmem:[#allocation8 + $0x3ac] sm:$0xf] }
 0x402   :  { %4359 = vmatpush.bf16.msra.mxu3 %v5641_v5  ;;  %v6751_v5 = vld [vmem:[#allocation8 + $0x1cc] sm:$0xf] }
 0x403   :  { %4338 = vmatmul.bf16.vlgmr.msrb.gmra.mxu3 %v7709_v58  ;;  %v5797_v42 = vor.u32 %v6751_v5, %v5794_v23  ;;  %v5962_v5 = vld [vmem:[#allocation8 + $0x324] sm:$0xf0] }
 0x406   :  { %4360 = vmatpush.bf16.msra.mxu3 %v5629_v43  ;;  %v6748_v43 = vld [vmem:[#allocation8 + $0x1b4] sm:$0xf] }
 0x407   :  { %v2293_v16 = vpop.f32.mrf.mxu2  ;;  %v2153_v19 = vpop.f32.mrf.mxu0  ;;  %v5785_v29 = vor.u32 %v6748_v43, %v5782_v17  ;;  %v6214_v43 = vld [vmem:[#allocation8 + $0x51c] sm:$0xf0] }
 0x408   :  { %v2364_v24 = vpop.f32.mrf.mxu3  ;;  %v2224_v54 = vpop.f32.mrf.mxu1  ;;  %v6022_v19 = vld [vmem:[#allocation8 + $0x39c] sm:$0xf0] }
 0x409   :  { %v6808_v24 = vld [vmem:[#allocation8 + $0x394] sm:$0xf] }
 0x40a   :  { %4361 = vmatpush.bf16.msra.mxu3 %v5617_v4  ;;  %2408 = vmatmul.bf16.gmra.mxu0 %v7214_v20  ;;  %v5833_v20 = vor.u32 %v6760_v37, %v5830_v55  ;;  %v5758_v4 = vld [vmem:[#allocation8 + $0x18c] sm:$0xf0] }
 0x40b   :  { %2479 = vmatmul.bf16.gmra.mxu1 %v7216_v21  ;;  %v5761_v49 = vor.u32 %v6742_v48, %v5758_v4  ;;  %v6202_v4 = vld [vmem:[#allocation8 + $0x504] sm:$0xf0] }
 0x40e   :  { %4362 = vmatpush.bf16.msra.mxu3 %v5605_v15  ;;  %v6037_v15 = vor.u32 %v6811_v3, %v6034_v14  ;;  %v7878_v14 = vld [vmem:[#allocation18_spill] sm:$0xff] }
 0x40f   :  { %v2295_v59 = vpop.f32.mrf.mxu2  ;;  %v2154_v61 = vpop.f32.mrf.mxu0 }
 0x410   :  { %v2366_v26 = vpop.f32.mrf.mxu3  ;;  %v2225_v27 = vpop.f32.mrf.mxu1  ;;  %v5998_v61 = vld [vmem:[#allocation8 + $0x36c] sm:$0xf0] }
 0x411   :  { %v6802_v26 = vld [vmem:[#allocation8 + $0x364] sm:$0xf] }
 0x412   :  { %4363 = vmatpush.bf16.msra.mxu3 %v5593_v12  ;;  %v6133_v12 = vor.u32 %v6835_v51, %v6130_v45  ;;  %v6001_v55 = vor.u32 %v6802_v26, %v5998_v61  ;;  %v6094_v51 = vld [vmem:[#allocation8 + $0x42c] sm:$0xf0]  ;;  %v6850_v45 = vld [vmem:[#allocation8 + $0x4e4] sm:$0xf]  ;;  %v6844_v26 = vld [vmem:[#allocation8 + $0x4b4] sm:$0xf] }
 0x414   :  { %4428 = vmatpush.bf16.msrb.mxu0 %v6133_v12 }
 0x416   :  { %4364 = vmatpush.bf16.msra.mxu3 %v5581_v57  ;;  %v6805_v57 = vld [vmem:[#allocation8 + $0x37c] sm:$0xf] }
 0x417   :  { %v2296_v21 = vpop.f32.mrf.mxu2  ;;  %v2156_v50 = vpop.f32.mrf.mxu0  ;;  %v6013_v18 = vor.u32 %v6805_v57, %v6010_v28  ;;  %v6847_v57 = vld [vmem:[#allocation8 + $0x4cc] sm:$0xf] }
 0x418   :  { %v2367_v46 = vpop.f32.mrf.mxu3  ;;  %v2227_v35 = vpop.f32.mrf.mxu1  ;;  %v5974_v50 = vld [vmem:[#allocation8 + $0x33c] sm:$0xf0] }
 0x419   :  { %v6796_v46 = vld [vmem:[#allocation8 + $0x334] sm:$0xf] }
 0x41a   :  { %4365 = vmatpush.bf16.msra.mxu3 %v5569_v39  ;;  %2413 = vmatmul.bf16.gmra.mxu0 %v7222_v32  ;;  %v5977_v31 = vor.u32 %v6796_v46, %v5974_v50  ;;  %v6154_v50 = vld [vmem:[#allocation8 + $0x4a4] sm:$0xf0] }
 0x41b   :  { %2484 = vmatmul.bf16.gmra.mxu1 %v7224_v33 }
 0x41d   :  { %4366 = vmatmul.bf16.vlgmr.msra.gmra.mxu3 %v7349_v60 }
 0x41e   :  { %4386 = vmatpush.bf16.msrb.mxu3 %v5845_v30 }
 0x41f   :  { %v2298_v63 = vpop.f32.mrf.mxu2  ;;  %v2157_v10 = vpop.f32.mrf.mxu0 }
 0x420   :  { %v2369_v36 = vpop.f32.mrf.mxu3  ;;  %v2228_v38 = vpop.f32.mrf.mxu1  ;;  %v6832_v63 = vld [vmem:[#allocation8 + $0x454] sm:$0xf]  ;;  %v6790_v10 = vld [vmem:[#allocation8 + $0x304] sm:$0xf] }
 0x421   :  { %v6856_v36 = vld [vmem:[#allocation8 + $0x514] sm:$0xf]  ;;  %v5950_v38 = vld [vmem:[#allocation8 + $0x30c] sm:$0xf0] }
 0x422   :  { %4387 = vmatpush.bf16.msrb.mxu3 %v5833_v20  ;;  %v6799_v20 = vld [vmem:[#allocation8 + $0x34c] sm:$0xf] }
 0x423   :  { %v5989_v21 = vor.u32 %v6799_v20, %v5986_v6  ;;  %v6817_v20 = vld [vmem:[#allocation8 + $0x3dc] sm:$0xf]  ;;  %v6058_v6 = vld [vmem:[#allocation8 + $0x3e4] sm:$0xf0] }
 0x424   :  { %v6061_v46 = vor.u32 %v6817_v20, %v6058_v6  ;;  %v6702_v20 = vld [vmem:[#allocation8 + $0x40] sm:$0xf0]  ;;  %v5692_v6 = vld [vmem:[#allocation8 + $0xf8] sm:$0xf] }
 0x426   :  { %4388 = vmatpush.bf16.msrb.mxu3 %v5821_v62 }
 0x427   :  { %v2299_v0 = vpop.f32.mrf.mxu2  ;;  %v2159_v8 = vpop.f32.mrf.mxu0 }
 0x428   :  { %v2370_v32 = vpop.f32.mrf.mxu3  ;;  %v2230_v33 = vpop.f32.mrf.mxu1  ;;  %v5953_v0 = vor.u32 %v6790_v10, %v5950_v38  ;;  %v6106_v8 = vld [vmem:[#allocation8 + $0x444] sm:$0xf0] }
 0x429   :  { %v6829_v32 = vld [vmem:[#allocation8 + $0x43c] sm:$0xf] }
 0x42a   :  { %4389 = vmatpush.bf16.msrb.mxu3 %v5809_v9  ;;  %2418 = vmatmul.bf16.gmra.mxu0 %v7230_v40  ;;  %v6025_v40 = vor.u32 %v6808_v24, %v6022_v19  ;;  %v6793_v9 = vld [vmem:[#allocation8 + $0x31c] sm:$0xf]  ;;  %v6109_v48 = vor.u32 %v6829_v32, %v6106_v8  ;;  %v6190_v24 = vld [vmem:[#allocation8 + $0x4ec] sm:$0xf0]  ;;  %v6714_v32 = vld [vmem:[#allocation8 + $0xa0] sm:$0xf0] }
 0x42b   :  { %2489 = vmatmul.bf16.gmra.mxu1 %v7232_v41  ;;  %v6859_v41 = vld [vmem:[#allocation8 + $0x52c] sm:$0xf]  ;;  %v5965_v23 = vor.u32 %v6793_v9, %v5962_v5  ;;  %v6853_v33 = vld [vmem:[#allocation8 + $0x4fc] sm:$0xf]  ;;  %v6193_v19 = vor.u32 %v6850_v45, %v6190_v24  ;;  %v6046_v9 = vld [vmem:[#allocation8 + $0x3cc] sm:$0xf0] }
 0x42c   :  { %v6229_v47 = vor.u32 %v6859_v41, %v6226_v13  ;;  %v6178_v41 = vld [vmem:[#allocation8 + $0x4d4] sm:$0xf0]  ;;  %v6838_v5 = vld [vmem:[#allocation8 + $0x484] sm:$0xf]  ;;  %v6735_v45 = vld [vmem:[#allocation8 + $0x148] sm:$0xf0] }
 0x42d   :  { %v5740_v8 = vld [vmem:[#allocation8 + $0x158] sm:$0xf] }
 0x42e   :  { %4390 = vmatpush.bf16.msrb.mxu3 %v5797_v42  ;;  %4442 = vmatpush.bf16.msrb.mxu1 %v6229_v47  ;;  %v6181_v47 = vor.u32 %v6847_v57, %v6178_v41  ;;  %v7882_v57 = vld [vmem:[#allocation22_spill] sm:$0xff]  ;;  %v6732_v41 = vld [vmem:[#allocation8 + $0x130] sm:$0xf0] }
 0x42f   :  { %v2301_v16 = vpop.f32.mrf.mxu2  ;;  %v2160_v22 = vpop.f32.mrf.mxu0 }
 0x430   :  { %v2372_v54 = vpop.f32.mrf.mxu3  ;;  %v2231_v52 = vpop.f32.mrf.mxu1 }
 0x431   :  { %v6823_v52 = vld [vmem:[#allocation8 + $0x40c] sm:$0xf] }
 0x432   :  { %4391 = vmatpush.bf16.msrb.mxu3 %v5785_v29  ;;  %v6217_v29 = vor.u32 %v6856_v36, %v6214_v43  ;;  %v6717_v36 = vld [vmem:[#allocation8 + $0xb8] sm:$0xf0]  ;;  %v5752_v43 = vld [vmem:[#allocation8 + $0x170] sm:$0xf] }
 0x434   :  { %4443 = vmatpush.bf16.msrb.mxu1 %v6217_v29 }
 0x436   :  { %4392 = vmatpush.bf16.msrb.mxu3 %v5773_v7  ;;  %v7877_v7 = vld [vmem:[#allocation17_spill] sm:$0xff] }
 0x437   :  { %v2302_v59 = vpop.f32.mrf.mxu2  ;;  %v2384_v27 = vpop.f32.mrf.mxu0 }
 0x438   :  { %v2373_v39 = vpop.f32.mrf.mxu3  ;;  %v2455_v30 = vpop.f32.mrf.mxu1  ;;  %v6070_v59 = vld [vmem:[#allocation8 + $0x3fc] sm:$0xf0] }
 0x439   :  { %v7720_v37 = vadd.f32 %v2455_v30, %v2384_v27  ;;  %v6166_v39 = vld [vmem:[#allocation8 + $0x4bc] sm:$0xf0] }
 0x43a   :  { %4393 = vmatpush.bf16.msrb.mxu3 %v5761_v49  ;;  %2423 = vmatmul.bf16.gmra.mxu0 %v7238_v56  ;;  %v6118_v56 = vld [vmem:[#allocation8 + $0x45c] sm:$0xf0]  ;;  %v6205_v49 = vor.u32 %v6853_v33, %v6202_v4  ;;  %v6169_v27 = vor.u32 %v6844_v26, %v6166_v39  ;;  %v6729_v39 = vld [vmem:[#allocation8 + $0x118] sm:$0xf0] }
 0x43b   :  { %2494 = vmatmul.bf16.gmra.mxu1 %v7876_v34  ;;  %v6121_v42 = vor.u32 %v6832_v63, %v6118_v56  ;;  %v6841_v34 = vld [vmem:[#allocation8 + $0x49c] sm:$0xf]  ;;  %v6142_v63 = vld [vmem:[#allocation8 + $0x48c] sm:$0xf0] }
 0x43c   :  { %4444 = vmatpush.bf16.msrb.mxu1 %v6205_v49  ;;  %v5656_v56 = vld [vmem:[#allocation8 + $0xb0] sm:$0xf]  ;;  %v6145_v38 = vor.u32 %v6838_v5, %v6142_v63  ;;  %v5728_v49 = vld [vmem:[#allocation8 + $0x140] sm:$0xf]  ;;  %v6723_v5 = vld [vmem:[#allocation8 + $0xe8] sm:$0xf0] }
 0x43d   :  { %4394 = vmatmul.bf16.vlgmr.msrb.gmra.mxu3 %v7442_v25  ;;  %4429 = vmatpush.bf16.msrb.mxu0 %v6121_v42  ;;  %v5657_v42 = vor.u32 %v6717_v36, %v5656_v56  ;;  %v5729_v24 = vor.u32 %v6735_v45, %v5728_v49  ;;  %v7883_v36 = vld [vmem:[#allocation23_spill] sm:$0xff] }
 0x43e   :  { %4414 = vmatpush.bf16.msra.mxu3 %v6037_v15  ;;  %v6826_v15 = vld [vmem:[#allocation8 + $0x424] sm:$0xf] }
 0x43f   :  { %v2386_v35 = vpop.f32.mrf.mxu0  ;;  %v6097_v16 = vor.u32 %v6826_v15, %v6094_v51 }
 0x440   :  { %v2457_v62 = vpop.f32.mrf.mxu1  ;;  %4445 = vmatpush.bf16.msrb.mxu1 %v6193_v19 }
 0x441   :  { %v7724_v44 = vadd.f32 %v2457_v62, %v2386_v35  ;;  %4430 = vmatpush.bf16.msrb.mxu0 %v6109_v48  ;;  %v7880_v62 = vld [vmem:[#allocation20_spill] sm:$0xff]  ;;  %v6738_v48 = vld [vmem:[#allocation8 + $0x160] sm:$0xf0] }
 0x442   :  { %4415 = vmatpush.bf16.msra.mxu3 %v6025_v40  ;;  %v6082_v40 = vld [vmem:[#allocation8 + $0x414] sm:$0xf0]  ;;  %v5741_v4 = vor.u32 %v6738_v48, %v5740_v8  ;;  %v6416_v8 = vld [vmem:[#allocation8 + $0x6a8] sm:$0xf] }
 0x443   :  { %v6085_v28 = vor.u32 %v6823_v52, %v6082_v40  ;;  %v5716_v52 = vld [vmem:[#allocation8 + $0x128] sm:$0xf] }
 0x444   :  { %4446 = vmatpush.bf16.msrb.mxu1 %v6181_v47  ;;  %v5608_v47 = vld [vmem:[#allocation8 + $0x50] sm:$0xf] }
 0x445   :  { %4431 = vmatpush.bf16.msrb.mxu0 %v6097_v16 }
 0x446   :  { %4416 = vmatpush.bf16.msra.mxu3 %v6013_v18  ;;  %v6820_v18 = vld [vmem:[#allocation8 + $0x3f4] sm:$0xf] }
 0x447   :  { %v2389_v17 = vpop.f32.mrf.mxu0  ;;  %v6073_v61 = vor.u32 %v6820_v18, %v6070_v59  ;;  %v6705_v18 = vld [vmem:[#allocation8 + $0x58] sm:$0xf0]  ;;  %v5704_v59 = vld [vmem:[#allocation8 + $0x110] sm:$0xf] }
 0x448   :  { %v2460_v2 = vpop.f32.mrf.mxu1  ;;  %4447 = vmatpush.bf16.msrb.mxu1 %v6169_v27 }
 0x449   :  { %v2461_v1 = vadd.f32 %v2460_v2, %v2389_v17  ;;  %4432 = vmatpush.bf16.msrb.mxu0 %v6085_v28  ;;  %v6741_v17 = vld [vmem:[#allocation8 + $0x178] sm:$0xf0] }
 0x44a   :  { %4417 = vmatpush.bf16.msra.mxu3 %v6001_v55  ;;  %2428 = vmatmul.bf16.gmra.mxu0 %v7877_v7  ;;  %v5753_v2 = vor.u32 %v6741_v17, %v5752_v43  ;;  %v7884_v17 = vld [vmem:[#allocation24_spill] sm:$0xff] }
 0x44b   :  { %v2719_v3 = vmax.f32 %v7720_v37, %v2461_v1  ;;  %2499 = vmatmul.bf16.gmra.mxu1 %v7878_v14  ;;  %v6711_v14 = vld [vmem:[#allocation8 + $0x88] sm:$0xf0] }
 0x44d   :  { %4433 = vmatpush.bf16.msrb.mxu0 %v6073_v61  ;;  %v5609_v61 = vor.u32 %v6705_v18, %v5608_v47 }
 0x44e   :  { %4418 = vmatpush.bf16.msra.mxu3 %v5989_v21  ;;  %v7879_v21 = vld [vmem:[#allocation19_spill] sm:$0xff] }
 0x44f   :  { %v2391_v12 = vpop.f32.mrf.mxu0 }
 0x450   :  { %v2462_v54 = vpop.f32.mrf.mxu1 }
 0x451   :  { %v2463_v22 = vadd.f32 %v2462_v54, %v2391_v12  ;;  %4434 = vmatpush.bf16.msrb.mxu0 %v6061_v46  ;;  %v7881_v12 = vld [vmem:[#allocation21_spill] sm:$0xff]  ;;  %v5620_v54 = vld [vmem:[#allocation8 + $0x68] sm:$0xf]  ;;  %v6726_v46 = vld [vmem:[#allocation8 + $0x100] sm:$0xf0] }
 0x452   :  { %4419 = vmatpush.bf16.msra.mxu3 %v5977_v31  ;;  %v6814_v31 = vld [vmem:[#allocation8 + $0x3c4] sm:$0xf] }
 0x453   :  { %v2746_v13 = vmax.f32 %v7724_v44, %v2463_v22  ;;  %v6157_v44 = vor.u32 %v6841_v34, %v6154_v50  ;;  %v6708_v22 = vld [vmem:[#allocation8 + $0x70] sm:$0xf0]  ;;  %v5693_v50 = vor.u32 %v6726_v46, %v5692_v6  ;;  %v6368_v6 = vld [vmem:[#allocation8 + $0x648] sm:$0xf]  ;;  %v6895_v46 = vld [vmem:[#allocation8 + $0x64c] sm:$0xf] }
 0x454   :  { %v5621_v28 = vor.u32 %v6708_v22, %v5620_v54  ;;  %v6392_v22 = vld [vmem:[#allocation8 + $0x678] sm:$0xf] }
 0x455   :  { %4448 = vmatpush.bf16.msrb.mxu1 %v6157_v44  ;;  %v5680_v44 = vld [vmem:[#allocation8 + $0xe0] sm:$0xf] }
 0x456   :  { %4420 = vmatpush.bf16.msra.mxu3 %v5965_v23  ;;  %v6049_v23 = vor.u32 %v6814_v31, %v6046_v9  ;;  %v5681_v63 = vor.u32 %v6723_v5, %v5680_v44  ;;  %v6813_v44 = vld [vmem:[#allocation8 + $0x3b8] sm:$0xf0] }
 0x457   :  { %v2394_v30 = vpop.f32.mrf.mxu0  ;;  %v6893_v5 = vld [vmem:[#allocation8 + $0x638] sm:$0xf0] }
 0x458   :  { %v2465_v37 = vpop.f32.mrf.mxu1  ;;  %4435 = vmatpush.bf16.msrb.mxu0 %v6049_v23 }
 0x459   :  { %v2466_v55 = vadd.f32 %v2465_v37, %v2394_v30  ;;  %4449 = vmatpush.bf16.msrb.mxu1 %v6145_v38  ;;  %v5705_v30 = vor.u32 %v6729_v39, %v5704_v59  ;;  %v6696_v38 = vld [vmem:[#allocation8 + $0x10] sm:$0xf0]  ;;  %v7886_v59 = vld [vmem:[#allocation26_spill] sm:$0xff] }
 0x45a   :  { %4421 = vmatpush.bf16.msra.mxu3 %v5953_v0  ;;  %2433 = vmatmul.bf16.gmra.mxu0 %v7879_v21  ;;  %v5644_v0 = vld [vmem:[#allocation8 + $0x98] sm:$0xf] }
 0x45b   :  { %v7732_v35 = vmax.f32 %v2719_v3, %v2466_v55  ;;  %2504 = vmatmul.bf16.gmra.mxu1 %v7880_v62  ;;  %v5645_v7 = vor.u32 %v6714_v32, %v5644_v0  ;;  %v5632_v3 = vld [vmem:[#allocation8 + $0x80] sm:$0xf]  ;;  %v5596_v55 = vld [vmem:[#allocation8 + $0x38] sm:$0xf]  ;;  %v6699_v62 = vld [vmem:[#allocation8 + $0x28] sm:$0xf0] }
 0x45c   :  { %4484 = vmatpush.bf16.msra.mxu0 %v5657_v42  ;;  %v5633_v51 = vor.u32 %v6711_v14, %v5632_v3  ;;  %v5597_v21 = vor.u32 %v6702_v20, %v5596_v55  ;;  %v5668_v42 = vld [vmem:[#allocation8 + $0xc8] sm:$0xf]  ;;  %v6418_v3 = vld [vmem:[#allocation8 + $0x6b4] sm:$0xf0] }
 0x45d   :  { %4422 = vmatmul.bf16.vlgmr.msra.gmra.mxu3 %v7521_v53  ;;  %4498 = vmatpush.bf16.msra.mxu1 %v5753_v2  ;;  %v6720_v2 = vld [vmem:[#allocation8 + $0xd0] sm:$0xf0] }
 0x45f   :  { %v2396_v10 = vpop.f32.mrf.mxu0 }
 0x460   :  { %v2467_v29 = vpop.f32.mrf.mxu1  ;;  %4485 = vmatpush.bf16.msra.mxu0 %v5645_v7 }
 0x461   :  { %v2468_v1 = vadd.f32 %v2467_v29, %v2396_v10  ;;  %4499 = vmatpush.bf16.msra.mxu1 %v5741_v4  ;;  %v5572_v10 = vld [vmem:[#allocation8 + $0x8] sm:$0xf]  ;;  %v6907_v4 = vld [vmem:[#allocation8 + $0x6ac] sm:$0xf] }
 0x462   :  { %v5573_v29 = vor.u32 %v6696_v38, %v5572_v10  ;;  %v6421_v14 = vor.u32 %v6907_v4, %v6418_v3  ;;  %v6346_v4 = vld [vmem:[#allocation8 + $0x624] sm:$0xf0]  ;;  %v7887_v3 = vld [vmem:[#allocation29_spill] sm:$0xff] }
 0x463   :  { %v7735_v33 = vmax.f32 %v2746_v13, %v2468_v1  ;;  %v5717_v13 = vor.u32 %v6732_v41, %v5716_v52  ;;  %v5669_v1 = vor.u32 %v6720_v2, %v5668_v42  ;;  %v6902_v52 = vld [vmem:[#allocation8 + $0x680] sm:$0xf0]  ;;  %v6394_v41 = vld [vmem:[#allocation8 + $0x684] sm:$0xf0] }
 0x464   :  { %4486 = vmatpush.bf16.msra.mxu0 %v5633_v51  ;;  %4470 = vmatpush.bf16.msrb.mxu3 %v6421_v14  ;;  %v6905_v51 = vld [vmem:[#allocation8 + $0x698] sm:$0xf0] }
 0x465   :  { %4500 = vmatpush.bf16.msra.mxu1 %v5729_v24  ;;  %v6406_v24 = vld [vmem:[#allocation8 + $0x69c] sm:$0xf0] }
 0x467   :  { %v2399_v15 = vpop.f32.mrf.mxu0 }
 0x468   :  { %v2470_v16 = vpop.f32.mrf.mxu1  ;;  %4487 = vmatpush.bf16.msra.mxu0 %v5621_v28  ;;  %v6901_v28 = vld [vmem:[#allocation8 + $0x67c] sm:$0xf] }
 0x469   :  { %v2471_v19 = vadd.f32 %v2470_v16, %v2399_v15  ;;  %4501 = vmatpush.bf16.msra.mxu1 %v5717_v13  ;;  %v6404_v15 = vld [vmem:[#allocation8 + $0x690] sm:$0xf]  ;;  %v6904_v16 = vld [vmem:[#allocation8 + $0x694] sm:$0xf]  ;;  %v7885_v13 = vld [vmem:[#allocation25_spill] sm:$0xff]  ;;  %v6397_v47 = vor.u32 %v6901_v28, %v6394_v41 }
 0x46a   :  { %2436 = vmatmul.bf16.gmra.mxu0 %v7881_v12  ;;  %v6405_v45 = vor.u32 %v6905_v51, %v6404_v15  ;;  %v6016_v51 = vld [vmem:[#allocation8 + $0x380] sm:$0xf]  ;;  %v6886_v28 = vld [vmem:[#allocation8 + $0x604] sm:$0xf] }
 0x46b   :  { %v2721_v40 = vmax.f32 %v7732_v35, %v2471_v19  ;;  %2507 = vmatmul.bf16.gmra.mxu1 %v7882_v57  ;;  %v5584_v35 = vld [vmem:[#allocation8 + $0x20] sm:$0xf]  ;;  %v6409_v19 = vor.u32 %v6904_v16, %v6406_v24  ;;  %v6393_v57 = vor.u32 %v6902_v52, %v6392_v22  ;;  %v6739_v52 = vld [vmem:[#allocation8 + $0x16c] sm:$0xf] }
 0x46c   :  { %4488 = vmatpush.bf16.msra.mxu0 %v5609_v61  ;;  %v5585_v9 = vor.u32 %v6699_v62, %v5584_v35  ;;  %v6899_v61 = vld [vmem:[#allocation8 + $0x668] sm:$0xf0]  ;;  %v6040_v62 = vld [vmem:[#allocation8 + $0x3b0] sm:$0xf]  ;;  %v6112_v16 = vld [vmem:[#allocation8 + $0x440] sm:$0xf] }
 0x46d   :  { %4502 = vmatpush.bf16.msra.mxu1 %v5705_v30  ;;  %4471 = vmatpush.bf16.msrb.mxu3 %v6409_v19  ;;  %v6382_v30 = vld [vmem:[#allocation8 + $0x66c] sm:$0xf0]  ;;  %v6041_v42 = vor.u32 %v6813_v44, %v6040_v62  ;;  %v6831_v19 = vld [vmem:[#allocation8 + $0x448] sm:$0xf0]  ;;  %v5932_v44 = vld [vmem:[#allocation8 + $0x2d8] sm:$0xf] }
 0x46f   :  { %v2401_v26 = vpop.f32.mrf.mxu0 }
 0x470   :  { %v2472_v27 = vpop.f32.mrf.mxu1  ;;  %4489 = vmatpush.bf16.msra.mxu0 %v5597_v21 }
 0x471   :  { %v2473_v37 = vadd.f32 %v2472_v27, %v2401_v26  ;;  %4503 = vmatpush.bf16.msra.mxu1 %v5693_v50  ;;  %4472 = vmatpush.bf16.msrb.mxu3 %v6397_v47  ;;  %v6380_v26 = vld [vmem:[#allocation8 + $0x660] sm:$0xf]  ;;  %v6898_v27 = vld [vmem:[#allocation8 + $0x664] sm:$0xf]  ;;  %v6370_v50 = vld [vmem:[#allocation8 + $0x654] sm:$0xf0] }
 0x472   :  { %v6381_v39 = vor.u32 %v6899_v61, %v6380_v26  ;;  %v6373_v35 = vor.u32 %v6895_v46, %v6370_v50  ;;  %v5944_v47 = vld [vmem:[#allocation8 + $0x2f0] sm:$0xf]  ;;  %v6828_v46 = vld [vmem:[#allocation8 + $0x430] sm:$0xf0] }
 0x473   :  { %v2748_v34 = vmax.f32 %v7735_v33, %v2473_v37  ;;  %v6908_v33 = vld [vmem:[#allocation8 + $0x6b0] sm:$0xf0]  ;;  %v6385_v37 = vor.u32 %v6898_v27, %v6382_v30 }
 0x474   :  { %4490 = vmatpush.bf16.msra.mxu0 %v5585_v9  ;;  %v6417_v48 = vor.u32 %v6908_v33, %v6416_v8  ;;  %v6356_v9 = vld [vmem:[#allocation8 + $0x630] sm:$0xf]  ;;  %v6890_v8 = vld [vmem:[#allocation8 + $0x620] sm:$0xf0]  ;;  %v6736_v50 = vld [vmem:[#allocation8 + $0x154] sm:$0xf] }
 0x475   :  { %4504 = vmatpush.bf16.msra.mxu1 %v5681_v63  ;;  %4473 = vmatpush.bf16.msrb.mxu3 %v6385_v37  ;;  %v6357_v63 = vor.u32 %v6893_v5, %v6356_v9  ;;  %v6834_v33 = vld [vmem:[#allocation8 + $0x460] sm:$0xf0]  ;;  %v6113_v37 = vor.u32 %v6831_v19, %v6112_v16  ;;  %v5992_v5 = vld [vmem:[#allocation8 + $0x350] sm:$0xf]  ;;  %v5908_v19 = vld [vmem:[#allocation8 + $0x2a8] sm:$0xf] }
 0x476   :  { %4344 = vmatpush.bf16.msra.mxu2 %v6417_v48  ;;  %v6889_v48 = vld [vmem:[#allocation8 + $0x61c] sm:$0xf]  ;;  %v5710_v16 = vld [vmem:[#allocation8 + $0x12c] sm:$0xf0] }
 0x477   :  { %v2404_v31 = vpop.f32.mrf.mxu0  ;;  %v6349_v14 = vor.u32 %v6889_v48, %v6346_v4  ;;  %v5980_v4 = vld [vmem:[#allocation8 + $0x338] sm:$0xf] }
 0x478   :  { %v2475_v23 = vpop.f32.mrf.mxu1  ;;  %4491 = vmatpush.bf16.msra.mxu0 %v5573_v29  ;;  %v6810_v29 = vld [vmem:[#allocation8 + $0x3a0] sm:$0xf0] }
 0x479   :  { %v2476_v56 = vadd.f32 %v2475_v23, %v2404_v31  ;;  %4505 = vmatpush.bf16.msra.mxu1 %v5669_v1  ;;  %v6136_v31 = vld [vmem:[#allocation8 + $0x470] sm:$0xf]  ;;  %4474 = vmatpush.bf16.msrb.mxu3 %v6373_v35  ;;  %v6837_v23 = vld [vmem:[#allocation8 + $0x478] sm:$0xf0]  ;;  %v5734_v35 = vld [vmem:[#allocation8 + $0x15c] sm:$0xf0] }
 0x47a   :  { %2439 = vmatmul.bf16.gmra.mxu0 %v7883_v36  ;;  %4345 = vmatpush.bf16.msra.mxu2 %v6405_v45  ;;  %v6358_v36 = vld [vmem:[#allocation8 + $0x63c] sm:$0xf0]  ;;  %v6137_v1 = vor.u32 %v6837_v23, %v6136_v31  ;;  %v6807_v45 = vld [vmem:[#allocation8 + $0x388] sm:$0xf0]  ;;  %v5737_v62 = vor.u32 %v6736_v50, %v5734_v35  ;;  %v6786_v31 = vld [vmem:[#allocation8 + $0x2e0] sm:$0xf0] }
 0x47b   :  { %v7742_v43 = vmax.f32 %v2721_v40, %v2476_v56  ;;  %2510 = vmatmul.bf16.gmra.mxu1 %v7884_v17  ;;  %v6892_v56 = vld [vmem:[#allocation8 + $0x634] sm:$0xf]  ;;  %v6028_v17 = vld [vmem:[#allocation8 + $0x398] sm:$0xf]  ;;  %v6017_v61 = vor.u32 %v6807_v45, %v6016_v51  ;;  %v6801_v23 = vld [vmem:[#allocation8 + $0x358] sm:$0xf0] }
 0x47c   :  { %v6361_v10 = vor.u32 %v6892_v56, %v6358_v36  ;;  %v6029_v15 = vor.u32 %v6810_v29, %v6028_v17  ;;  %v6733_v56 = vld [vmem:[#allocation8 + $0x13c] sm:$0xf]  ;;  %v6783_v17 = vld [vmem:[#allocation8 + $0x2c8] sm:$0xf0]  ;;  %v6088_v29 = vld [vmem:[#allocation8 + $0x410] sm:$0xf] }
 0x47d   :  { %v6822_v51 = vld [vmem:[#allocation8 + $0x400] sm:$0xf0] }
 0x47e   :  { %4346 = vmatpush.bf16.msra.mxu2 %v6393_v57  ;;  %4475 = vmatpush.bf16.msrb.mxu3 %v6361_v10  ;;  %v5746_v57 = vld [vmem:[#allocation8 + $0x174] sm:$0xf0]  ;;  %v5722_v10 = vld [vmem:[#allocation8 + $0x144] sm:$0xf0]  ;;  %v6730_v45 = vld [vmem:[#allocation8 + $0x124] sm:$0xf] }
 0x47f   :  { %v2406_v0 = vpop.f32.mrf.mxu0  ;;  %v5749_v41 = vor.u32 %v6739_v52, %v5746_v57 }
 0x480   :  { %v2477_v32 = vpop.f32.mrf.mxu1 }
 0x481   :  { %v2478_v7 = vadd.f32 %v2477_v32, %v2406_v0  ;;  %v6124_v0 = vld [vmem:[#allocation8 + $0x458] sm:$0xf] }
 0x482   :  { %4347 = vmatpush.bf16.msra.mxu2 %v6381_v39  ;;  %v6344_v32 = vld [vmem:[#allocation8 + $0x618] sm:$0xf]  ;;  %v6125_v24 = vor.u32 %v6834_v33, %v6124_v0  ;;  %4476 = vmatpush.bf16.msrb.mxu3 %v6349_v14  ;;  %v5725_v0 = vor.u32 %v6733_v56, %v5722_v10  ;;  %v5993_v33 = vor.u32 %v6801_v23, %v5992_v5  ;;  %v6798_v14 = vld [vmem:[#allocation8 + $0x340] sm:$0xf0]  ;;  %v6724_v5 = vld [vmem:[#allocation8 + $0xf4] sm:$0xf] }
 0x483   :  { %v7745_v49 = vmax.f32 %v2748_v34, %v2478_v7  ;;  %v6896_v34 = vld [vmem:[#allocation8 + $0x650] sm:$0xf0]  ;;  %v6345_v7 = vor.u32 %v6890_v8, %v6344_v32  ;;  %v5686_v23 = vld [vmem:[#allocation8 + $0xfc] sm:$0xf0]  ;;  %v5884_v56 = vld [vmem:[#allocation8 + $0x278] sm:$0xf] }
 0x484   :  { %v6369_v21 = vor.u32 %v6896_v34, %v6368_v6  ;;  %v6004_v6 = vld [vmem:[#allocation8 + $0x368] sm:$0xf]  ;;  %v6804_v34 = vld [vmem:[#allocation8 + $0x370] sm:$0xf0] }
 0x485   :  { %v6005_v9 = vor.u32 %v6804_v34, %v6004_v6  ;;  %v5956_v34 = vld [vmem:[#allocation8 + $0x308] sm:$0xf] }
 0x486   :  { %4348 = vmatpush.bf16.msra.mxu2 %v6369_v21  ;;  %v6100_v21 = vld [vmem:[#allocation8 + $0x428] sm:$0xf] }
 0x487   :  { %v2409_v12 = vpop.f32.mrf.mxu0  ;;  %v6101_v36 = vor.u32 %v6828_v46, %v6100_v21  ;;  %v6792_v21 = vld [vmem:[#allocation8 + $0x310] sm:$0xf0] }
 0x488   :  { %v2480_v54 = vpop.f32.mrf.mxu1  ;;  %v5957_v10 = vor.u32 %v6792_v21, %v5956_v34  ;;  %v6894_v21 = vld [vmem:[#allocation8 + $0x640] sm:$0xf0] }
 0x489   :  { %v7747_v40 = vadd.f32 %v2480_v54, %v2409_v12  ;;  %v6332_v12 = vld [vmem:[#allocation8 + $0x600] sm:$0xf]  ;;  %v6887_v54 = vld [vmem:[#allocation8 + $0x608] sm:$0xf0] }
 0x48a   :  { %2442 = vmatmul.bf16.gmra.mxu0 %v7885_v13  ;;  %4349 = vmatpush.bf16.msra.mxu2 %v6357_v63  ;;  %v6333_v22 = vor.u32 %v6887_v54, %v6332_v12  ;;  %v6334_v13 = vld [vmem:[#allocation8 + $0x60c] sm:$0xf0]  ;;  %v5933_v63 = vor.u32 %v6786_v31, %v5932_v44  ;;  %v6780_v12 = vld [vmem:[#allocation8 + $0x2b0] sm:$0xf0]  ;;  %v7888_v54 = vld [vmem:[#allocation27_spill] sm:$0xff] }
 0x48b   :  { %v2723_v18 = vmax.f32 %v7742_v43, %v7747_v40  ;;  %2513 = vmatmul.bf16.gmra.mxu1 %v7886_v59  ;;  %v6789_v59 = vld [vmem:[#allocation8 + $0x2f8] sm:$0xf0]  ;;  %v6337_v39 = vor.u32 %v6886_v28, %v6334_v13  ;;  %v5909_v52 = vor.u32 %v6780_v12, %v5908_v19  ;;  %v5968_v28 = vld [vmem:[#allocation8 + $0x320] sm:$0xf]  ;;  %v6816_v44 = vld [vmem:[#allocation8 + $0x3d0] sm:$0xf0] }
 0x48c   :  { %v5945_v27 = vor.u32 %v6789_v59, %v5944_v47  ;;  %v6064_v13 = vld [vmem:[#allocation8 + $0x3e0] sm:$0xf]  ;;  %v6819_v47 = vld [vmem:[#allocation8 + $0x3e8] sm:$0xf0]  ;;  %v6424_v31 = vld [vmem:[#allocation8 + $0x6b0] sm:$0xf] }
 0x48d   :  { %4477 = vmatpush.bf16.msrb.mxu3 %v6337_v39  ;;  %v6727_v59 = vld [vmem:[#allocation8 + $0x10c] sm:$0xf]  ;;  %v5896_v39 = vld [vmem:[#allocation8 + $0x290] sm:$0xf]  ;;  %v6065_v35 = vor.u32 %v6819_v47, %v6064_v13  ;;  %v6718_v12 = vld [vmem:[#allocation8 + $0xc4] sm:$0xf] }
 0x48e   :  { %4350 = vmatpush.bf16.msra.mxu2 %v6345_v7  ;;  %v6903_v19 = vld [vmem:[#allocation8 + $0x688] sm:$0xf0]  ;;  %v6388_v47 = vld [vmem:[#allocation8 + $0x668] sm:$0xf]  ;;  %v6888_v40 = vld [vmem:[#allocation8 + $0x610] sm:$0xf0] }
 0x48f   :  { %v7753_v55 = vpop.f32.mrf.mxu0  ;;  %v6340_v43 = vld [vmem:[#allocation8 + $0x608] sm:$0xf] }
 0x490   :  { %v7755_v20 = vpop.f32.mrf.mxu1 }
 0x491   :  { %4526 = vmatpush.bf16.msra.mxu3 %v5945_v27  ;;  %v6777_v27 = vld [vmem:[#allocation8 + $0x298] sm:$0xf0] }
 0x492   :  { %4351 = vmatpush.bf16.msra.mxu2 %v6333_v22  ;;  %v5981_v22 = vor.u32 %v6798_v14, %v5980_v4  ;;  %v5897_v46 = vor.u32 %v6777_v27, %v5896_v39  ;;  %v5872_v4 = vld [vmem:[#allocation8 + $0x260] sm:$0xf]  ;;  %v6771_v14 = vld [vmem:[#allocation8 + $0x268] sm:$0xf0]  ;;  %v6376_v27 = vld [vmem:[#allocation8 + $0x650] sm:$0xf] }
 0x495   :  { %4527 = vmatpush.bf16.msra.mxu3 %v5933_v63  ;;  %v5689_v63 = vor.u32 %v6724_v5, %v5686_v23  ;;  %v6891_v23 = vld [vmem:[#allocation8 + $0x628] sm:$0xf0] }
 0x496   :  { %4372 = vmatpush.bf16.msrb.mxu2 %v5749_v41  ;;  %v6795_v41 = vld [vmem:[#allocation8 + $0x328] sm:$0xf0] }
 0x497   :  { %v7757_v38 = vpop.f32.mrf.mxu0  ;;  %v5969_v6 = vor.u32 %v6795_v41, %v5968_v28  ;;  %v6768_v28 = vld [vmem:[#allocation8 + $0x250] sm:$0xf0] }
 0x498   :  { %v7759_v2 = vpop.f32.mrf.mxu1 }
 0x499   :  { %v2486_v34 = vadd.f32 %v7759_v2, %v7757_v38  ;;  %v6352_v2 = vld [vmem:[#allocation8 + $0x620] sm:$0xf] }
 0x49a   :  { %4436 = vmatmul.bf16.vlgmr.msrb.gmra.mxu0 %v7887_v3  ;;  %4373 = vmatpush.bf16.msrb.mxu2 %v5737_v62  ;;  %v6052_v62 = vld [vmem:[#allocation8 + $0x3c8] sm:$0xf] }
 0x49b   :  { %4450 = vmatmul.bf16.vlgmr.msrb.gmra.mxu1 %v7704_v11  ;;  %4540 = vmatpush.bf16.msrb.mxu0 %v6041_v42  ;;  %v5920_v42 = vld [vmem:[#allocation8 + $0x2c0] sm:$0xf] }
 0x49c   :  { %4554 = vmatpush.bf16.msrb.mxu1 %v6137_v1  ;;  %v6825_v1 = vld [vmem:[#allocation8 + $0x418] sm:$0xf0]  ;;  %v5921_v32 = vor.u32 %v6783_v17, %v5920_v42  ;;  %v6053_v17 = vor.u32 %v6816_v44, %v6052_v62 }
 0x49d   :  { %v6089_v48 = vor.u32 %v6825_v1, %v6088_v29  ;;  %v6412_v1 = vld [vmem:[#allocation8 + $0x698] sm:$0xf] }
 0x49e   :  { %4374 = vmatpush.bf16.msrb.mxu2 %v5725_v0  ;;  %4528 = vmatpush.bf16.msra.mxu3 %v5921_v32  ;;  %v6906_v0 = vld [vmem:[#allocation8 + $0x6a0] sm:$0xf0]  ;;  %v6721_v32 = vld [vmem:[#allocation8 + $0xdc] sm:$0xf] }
 0x49f   :  { %v7763_v26 = vpop.f32.mrf.mxu0  ;;  %4541 = vmatpush.bf16.msrb.mxu0 %v6029_v15  ;;  %v6076_v15 = vld [vmem:[#allocation8 + $0x3f8] sm:$0xf] }
 0x4a0   :  { %v7765_v30 = vpop.f32.mrf.mxu1  ;;  %4555 = vmatpush.bf16.msrb.mxu1 %v6125_v24  ;;  %v5713_v24 = vor.u32 %v6730_v45, %v5710_v16  ;;  %v6077_v57 = vor.u32 %v6822_v51, %v6076_v15  ;;  %v5873_v51 = vor.u32 %v6771_v14, %v5872_v4  ;;  %v6413_v16 = vor.u32 %v6906_v0, %v6412_v1  ;;  %v6328_v4 = vld [vmem:[#allocation8 + $0x5f0] sm:$0xf]  ;;  %v6885_v14 = vld [vmem:[#allocation8 + $0x5f8] sm:$0xf0] }
 0x4a1   :  { %v2488_v5 = vadd.f32 %v7765_v30, %v7763_v26  ;;  %v6949_v26 = vld [vmem:[#allocation7 + $0x6] sm:$0x7] }
 0x4a2   :  { %4375 = vmatpush.bf16.msrb.mxu2 %v5713_v24  ;;  %4529 = vmatpush.bf16.msra.mxu3 %v5909_v52  ;;  %v6400_v24 = vld [vmem:[#allocation8 + $0x680] sm:$0xf]  ;;  %v2759_v30 = vperm.slane %v6949_v26, 2 }
 0x4a3   :  { %4542 = vmatpush.bf16.msrb.mxu0 %v6017_v61  ;;  %v5698_v61 = vld [vmem:[#allocation8 + $0x114] sm:$0xf0]  ;;  %v6401_v41 = vor.u32 %v6903_v19, %v6400_v24 }
 0x4a4   :  { %4556 = vmatpush.bf16.msrb.mxu1 %v6113_v37 }
 0x4a6   :  { %4530 = vmatpush.bf16.msra.mxu3 %v5897_v46  ;;  %v2483_v46 = vadd.f32 %v7755_v20, %v7753_v55 }
 0x4a7   :  { %v7767_v8 = vpop.f32.mrf.mxu0  ;;  %4543 = vmatpush.bf16.msrb.mxu0 %v6005_v9  ;;  %v6909_v9 = vld [vmem:[#allocation8 + $0x6b8] sm:$0xf0] }
 0x4a8   :  { %v7769_v7 = vpop.f32.mrf.mxu1  ;;  %4557 = vmatpush.bf16.msrb.mxu1 %v6101_v36  ;;  %v6774_v36 = vld [vmem:[#allocation8 + $0x280] sm:$0xf0]  ;;  %v6425_v29 = vor.u32 %v6909_v9, %v6424_v31  ;;  %v2724_v9 = vmax.f32 %v2723_v18, %v2486_v34 }
 0x4a9   :  { %v5885_v42 = vor.u32 %v6774_v36, %v5884_v56  ;;  %v6778_v34 = vld [vmem:[#allocation8 + $0x2a4] sm:$0xf] }
 0x4aa   :  { %4492 = vmatmul.bf16.vlgmr.msra.gmra.mxu0 %v7349_v60  ;;  %v5701_v60 = vor.u32 %v6727_v59, %v5698_v61  ;;  %v6900_v59 = vld [vmem:[#allocation8 + $0x670] sm:$0xf0] }
 0x4ab   :  { %4506 = vmatmul.bf16.vlgmr.msra.gmra.mxu1 %v7888_v54  ;;  %4544 = vmatpush.bf16.msrb.mxu0 %v5993_v33  ;;  %v5674_v33 = vld [vmem:[#allocation8 + $0xe4] sm:$0xf0]  ;;  %v6389_v39 = vor.u32 %v6900_v59, %v6388_v47  ;;  %v6781_v47 = vld [vmem:[#allocation8 + $0x2bc] sm:$0xf] }
 0x4ac   :  { %4558 = vmatpush.bf16.msrb.mxu1 %v6089_v48  ;;  %4376 = vmatpush.bf16.msrb.mxu2 %v5701_v60  ;;  %v5677_v48 = vor.u32 %v6721_v32, %v5674_v33  ;;  %v6787_v33 = vld [vmem:[#allocation8 + $0x2ec] sm:$0xf]  ;;  %v5914_v59 = vld [vmem:[#allocation8 + $0x2c4] sm:$0xf0] }
 0x4ad   :  { %4531 = vmatpush.bf16.msra.mxu3 %v5885_v42 }
 0x4af   :  { %v7773_v37 = vpop.f32.mrf.mxu0  ;;  %4545 = vmatpush.bf16.msrb.mxu0 %v5981_v22  ;;  %v5662_v22 = vld [vmem:[#allocation8 + $0xcc] sm:$0xf0] }
 0x4b0   :  { %v7775_v50 = vpop.f32.mrf.mxu1  ;;  %4559 = vmatpush.bf16.msrb.mxu1 %v6077_v57  ;;  %4377 = vmatpush.bf16.msrb.mxu2 %v5689_v63  ;;  %v5665_v52 = vor.u32 %v6718_v12, %v5662_v22  ;;  %v5860_v57 = vld [vmem:[#allocation8 + $0x248] sm:$0xf]  ;;  %v2750_v63 = vmax.f32 %v7745_v49, %v2483_v46  ;;  %v6341_v49 = vor.u32 %v6888_v40, %v6340_v43  ;;  %v6784_v22 = vld [vmem:[#allocation8 + $0x2d4] sm:$0xf]  ;;  %v6769_v43 = vld [vmem:[#allocation8 + $0x25c] sm:$0xf] }
 0x4b1   :  { %4532 = vmatpush.bf16.msra.mxu3 %v5873_v51  ;;  %v5861_v13 = vor.u32 %v6768_v28, %v5860_v57  ;;  %v2493_v20 = vadd.f32 %v7775_v50, %v7773_v37  ;;  %v6329_v12 = vor.u32 %v6885_v14, %v6328_v4  ;;  %v6316_v57 = vld [vmem:[#allocation8 + $0x5d8] sm:$0xf]  ;;  %v6882_v28 = vld [vmem:[#allocation8 + $0x5e0] sm:$0xf0]  ;;  %v6876_v46 = vld [vmem:[#allocation8 + $0x5b0] sm:$0xf0] }
 0x4b2   :  { %v2751_v56 = vmax.f32 %v2750_v63, %v2488_v5  ;;  %v6873_v5 = vld [vmem:[#allocation8 + $0x598] sm:$0xf0]  ;;  %v5866_v40 = vld [vmem:[#allocation8 + $0x264] sm:$0xf0]  ;;  %v6880_v4 = vld [vmem:[#allocation8 + $0x5d4] sm:$0xf] }
 0x4b3   :  { %4546 = vmatpush.bf16.msrb.mxu0 %v5969_v6  ;;  %v6897_v6 = vld [vmem:[#allocation8 + $0x658] sm:$0xf0]  ;;  %v6310_v14 = vld [vmem:[#allocation8 + $0x5dc] sm:$0xf0] }
 0x4b4   :  { %4560 = vmatpush.bf16.msrb.mxu1 %v6065_v35  ;;  %4378 = vmatpush.bf16.msrb.mxu2 %v5677_v48  ;;  %v2491_v35 = vadd.f32 %v7769_v7, %v7767_v8  ;;  %v6353_v7 = vor.u32 %v6891_v23, %v6352_v2  ;;  %v2752_v18 = vmax.f32 %v2751_v56, %v2493_v20  ;;  %v5938_v48 = vld [vmem:[#allocation8 + $0x2f4] sm:$0xf0]  ;;  %v5878_v20 = vld [vmem:[#allocation8 + $0x27c] sm:$0xf0]  ;;  %v7889_v56 = vld [vmem:[#allocation28_spill] sm:$0xff] }
 0x4b5   :  { %4533 = vmatpush.bf16.msra.mxu3 %v5861_v13  ;;  %v5941_v24 = vor.u32 %v6787_v33, %v5938_v48  ;;  %v6317_v13 = vor.u32 %v6882_v28, %v6316_v57 }
 0x4b6   :  { %v2725_v55 = vmax.f32 %v2724_v9, %v2491_v35  ;;  %v6280_v9 = vld [vmem:[#allocation8 + $0x590] sm:$0xf] }
 0x4b7   :  { %v2424_v15 = vpop.f32.mrf.mxu0  ;;  %4547 = vmatpush.bf16.msrb.mxu0 %v5957_v10  ;;  %v6281_v63 = vor.u32 %v6873_v5, %v6280_v9  ;;  %v7797_v9 = vpop.f32.mrf.mxu2 }
 0x4b8   :  { %v2495_v45 = vpop.f32.mrf.mxu1  ;;  %4561 = vmatpush.bf16.msrb.mxu1 %v6053_v17  ;;  %4379 = vmatpush.bf16.msrb.mxu2 %v5665_v52  ;;  %v5926_v52 = vld [vmem:[#allocation8 + $0x2dc] sm:$0xf0] }
 0x4b9   :  { %v2496_v38 = vadd.f32 %v2495_v45, %v2424_v15 }
 0x4ba   :  { %4548 = vmatmul.bf16.vlgmr.msrb.gmra.mxu0 %v7521_v53  ;;  %v6377_v53 = vor.u32 %v6897_v6, %v6376_v27  ;;  %v5917_v6 = vor.u32 %v6781_v47, %v5914_v59  ;;  %v6868_v59 = vld [vmem:[#allocation8 + $0x574] sm:$0xf] }
 0x4bb   :  { %4596 = vmatpush.bf16.msra.mxu0 %v6425_v29  ;;  %4562 = vmatmul.bf16.vlgmr.msrb.gmra.mxu1 %v7887_v3  ;;  %v6364_v3 = vld [vmem:[#allocation8 + $0x638] sm:$0xf]  ;;  %v2726_v36 = vmax.f32 %v2725_v55, %v2496_v38  ;;  %v6772_v55 = vld [vmem:[#allocation8 + $0x274] sm:$0xf] }
 0x4bc   :  { %v6365_v31 = vor.u32 %v6894_v21, %v6364_v3  ;;  %v5902_v3 = vld [vmem:[#allocation8 + $0x2ac] sm:$0xf0]  ;;  %v6292_v21 = vld [vmem:[#allocation8 + $0x5a8] sm:$0xf] }
 0x4bd   :  { %v5905_v35 = vor.u32 %v6778_v34, %v5902_v3  ;;  %v6862_v3 = vld [vmem:[#allocation8 + $0x544] sm:$0xf] }
 0x4bf   :  { %4597 = vmatpush.bf16.msra.mxu0 %v6413_v16  ;;  %v2426_v61 = vpop.f32.mrf.mxu0 }
 0x4c0   :  { %v2497_v60 = vpop.f32.mrf.mxu1 }
 0x4c1   :  { %v2498_v10 = vadd.f32 %v2497_v60, %v2426_v61  ;;  %v6304_v61 = vld [vmem:[#allocation8 + $0x5c0] sm:$0xf]  ;;  %v6879_v60 = vld [vmem:[#allocation8 + $0x5c8] sm:$0xf0] }
 0x4c3   :  { %4598 = vmatpush.bf16.msra.mxu0 %v6401_v41  ;;  %v2753_v1 = vmax.f32 %v2752_v18, %v2498_v10  ;;  %v5929_v41 = vor.u32 %v6784_v22, %v5926_v52  ;;  %v6256_v18 = vld [vmem:[#allocation8 + $0x560] sm:$0xf]  ;;  %v6286_v22 = vld [vmem:[#allocation8 + $0x5ac] sm:$0xf0] }
 0x4c7   :  { %4599 = vmatpush.bf16.msra.mxu0 %v6389_v39  ;;  %v2429_v62 = vpop.f32.mrf.mxu0 }
 0x4c8   :  { %v2500_v44 = vpop.f32.mrf.mxu1 }
 0x4c9   :  { %v2501_v8 = vadd.f32 %v2500_v44, %v2429_v62  ;;  %v6293_v62 = vor.u32 %v6876_v46, %v6292_v21  ;;  %v6775_v44 = vld [vmem:[#allocation8 + $0x28c] sm:$0xf]  ;;  %v6238_v21 = vld [vmem:[#allocation8 + $0x54c] sm:$0xf0] }
 0x4cb   :  { %4600 = vmatpush.bf16.msra.mxu0 %v6377_v53  ;;  %v2727_v42 = vmax.f32 %v2726_v36, %v2501_v8  ;;  %v6305_v53 = vor.u32 %v6879_v60, %v6304_v61  ;;  %v6268_v8 = vld [vmem:[#allocation8 + $0x578] sm:$0xf]  ;;  %v5881_v36 = vor.u32 %v6772_v55, %v5878_v20  ;;  %v6262_v61 = vld [vmem:[#allocation8 + $0x57c] sm:$0xf0]  ;;  %v6759_v55 = vld [vmem:[#allocation8 + $0x208] sm:$0xf0]  ;;  %v7799_v20 = vpop.f32.mrf.mxu3 }
 0x4cd   :  { %v2765_v32 = vadd.f32 %v2759_v30, %v2727_v42  ;;  %v6867_v42 = vld [vmem:[#allocation8 + $0x568] sm:$0xf0] }
 0x4cf   :  { %4601 = vmatpush.bf16.msra.mxu0 %v6365_v31  ;;  %v2431_v17 = vpop.f32.mrf.mxu0  ;;  %v2771_v15 = vmax.f32 %v2765_v32, 0.0  ;;  %v5890_v31 = vld [vmem:[#allocation8 + $0x294] sm:$0xf0]  ;;  %v6244_v32 = vld [vmem:[#allocation8 + $0x548] sm:$0xf] }
 0x4d0   :  { %v2502_v29 = vpop.f32.mrf.mxu1  ;;  %v5893_v23 = vor.u32 %v6775_v44, %v5890_v31  ;;  %v6241_v31 = vor.u32 %v6862_v3, %v6238_v21 }
 0x4d1   :  { %v2503_v0 = vadd.f32 %v2502_v29, %v2431_v17  ;;  %v5869_v17 = vor.u32 %v6769_v43, %v5866_v40  ;;  %v6257_v29 = vor.u32 %v6867_v42, %v6256_v18  ;;  %v5800_v43 = vld [vmem:[#allocation8 + $0x1d0] sm:$0xf]  ;;  %v6753_v40 = vld [vmem:[#allocation8 + $0x1d8] sm:$0xf0] }
 0x4d2   :  { %v5801_v42 = vor.u32 %v6753_v40, %v5800_v43 }
 0x4d3   :  { %4602 = vmatpush.bf16.msra.mxu0 %v6353_v7  ;;  %v2754_v37 = vmax.f32 %v2753_v1, %v2503_v0  ;;  %v6870_v7 = vld [vmem:[#allocation8 + $0x580] sm:$0xf0]  ;;  %v5854_v1 = vld [vmem:[#allocation8 + $0x24c] sm:$0xf0]  ;;  %v6883_v0 = vld [vmem:[#allocation8 + $0x5ec] sm:$0xf]  ;;  %v7804_v18 = vpop.f32.mrf.mxu3 }
 0x4d4   :  { %v6269_v10 = vor.u32 %v6870_v7, %v6268_v8  ;;  %v5812_v7 = vld [vmem:[#allocation8 + $0x1e8] sm:$0xf] }
 0x4d5   :  { %v2768_v50 = vadd.f32 %v2759_v30, %v2754_v37  ;;  %v6864_v37 = vld [vmem:[#allocation8 + $0x550] sm:$0xf0] }
 0x4d6   :  { %v6245_v48 = vor.u32 %v6864_v37, %v6244_v32  ;;  %v6917_v32 = vld [vmem:[#allocation10 + $0x38] sm:$0xff] }
 0x4d7   :  { %4603 = vmatpush.bf16.msra.mxu0 %v6341_v49  ;;  %v2774_v51 = vmax.f32 %v2768_v50, 0.0  ;;  %v2434_v45 = vpop.f32.mrf.mxu0  ;;  %v6766_v49 = vld [vmem:[#allocation8 + $0x244] sm:$0xf]  ;;  %4809 = vmatpush.bf16.msra.mxu1 %v6917_v32 }
 0x4d8   :  { %v2505_v16 = vpop.f32.mrf.mxu1  ;;  %v5857_v50 = vor.u32 %v6766_v49, %v5854_v1  ;;  %v6313_v45 = vor.u32 %v6880_v4, %v6310_v14  ;;  %v6747_v49 = vld [vmem:[#allocation8 + $0x1a8] sm:$0xf0]  ;;  %v6916_v14 = vld [vmem:[#allocation10 + $0x30] sm:$0xff] }
 0x4d9   :  { %v2783_v19 = vpack.c.bf16 %v2774_v51, %v2771_v15  ;;  %v6877_v16 = vld [vmem:[#allocation8 + $0x5bc] sm:$0xf] }
 0x4db   :  { %4352 = vmatmul.bf16.vlgmr.msra.gmra.mxu2 %v2783_v19  ;;  %4478 = vmatmul.bf16.vlgmr.msrb.gmra.mxu3 %v2783_v19  ;;  %v7808_v37 = vpop.f32.mrf.mxu3 }
 0x4dc   :  { %4400 = vmatpush.bf16.msra.mxu2 %v5941_v24  ;;  %4604 = vmatmul.bf16.vlgmr.msra.gmra.mxu0 %v2783_v19  ;;  %v6298_v24 = vld [vmem:[#allocation8 + $0x5c4] sm:$0xf0] }
 0x4dd   :  { %4582 = vmatpush.bf16.msrb.mxu3 %v6329_v12  ;;  %v6301_v19 = vor.u32 %v6877_v16, %v6298_v24  ;;  %v6874_v12 = vld [vmem:[#allocation8 + $0x5a4] sm:$0xf]  ;;  %4810 = vmatpush.bf16.msra.mxu1 %v6916_v14  ;;  %v6915_v16 = vld [vmem:[#allocation10 + $0x28] sm:$0xff] }
 0x4de   :  { %v6289_v28 = vor.u32 %v6874_v12, %v6286_v22  ;;  %v6855_v12 = vld [vmem:[#allocation8 + $0x508] sm:$0xf0] }
 0x4df   :  { %v2435_v39 = vpop.f32.mrf.mxu0 }
 0x4e0   :  { %4401 = vmatpush.bf16.msra.mxu2 %v5929_v41  ;;  %v2506_v27 = vpop.f32.mrf.mxu1  ;;  %v6871_v41 = vld [vmem:[#allocation8 + $0x58c] sm:$0xf] }
 0x4e1   :  { %4583 = vmatpush.bf16.msrb.mxu3 %v6317_v13  ;;  %v6274_v13 = vld [vmem:[#allocation8 + $0x594] sm:$0xf0]  ;;  %v6265_v27 = vor.u32 %v6868_v59, %v6262_v61  ;;  %4811 = vmatpush.bf16.msra.mxu1 %v6915_v16  ;;  %v6184_v61 = vld [vmem:[#allocation8 + $0x4d0] sm:$0xf] }
 0x4e2   :  { %v6277_v47 = vor.u32 %v6871_v41, %v6274_v13  ;;  %v6914_v41 = vld [vmem:[#allocation10 + $0x20] sm:$0xff] }
 0x4e3   :  { %v4285_v22 = vpop.f32.mrf.mxu3 }
 0x4e4   :  { %4402 = vmatpush.bf16.msra.mxu2 %v5917_v6  ;;  %v6865_v6 = vld [vmem:[#allocation8 + $0x55c] sm:$0xf] }
 0x4e5   :  { %4584 = vmatpush.bf16.msrb.mxu3 %v6305_v53  ;;  %v6250_v53 = vld [vmem:[#allocation8 + $0x564] sm:$0xf0]  ;;  %4812 = vmatpush.bf16.msra.mxu1 %v6914_v41 }
 0x4e6   :  { %v6253_v34 = vor.u32 %v6865_v6, %v6250_v53  ;;  %v6172_v6 = vld [vmem:[#allocation8 + $0x4b8] sm:$0xf]  ;;  %v6912_v53 = vld [vmem:[#allocation10 + $0x10] sm:$0xff] }
 0x4e7   :  { %v2437_v38 = vpop.f32.mrf.mxu0 }
 0x4e8   :  { %4403 = vmatpush.bf16.msra.mxu2 %v5905_v35  ;;  %v2508_v2 = vpop.f32.mrf.mxu1  ;;  %v5848_v35 = vld [vmem:[#allocation8 + $0x230] sm:$0xf]  ;;  %v5836_v38 = vld [vmem:[#allocation8 + $0x218] sm:$0xf] }
 0x4e9   :  { %4585 = vmatpush.bf16.msrb.mxu3 %v6293_v62  ;;  %v6765_v62 = vld [vmem:[#allocation8 + $0x238] sm:$0xf0]  ;;  %v6762_v2 = vld [vmem:[#allocation8 + $0x220] sm:$0xf0] }
 0x4ea   :  { %v5849_v5 = vor.u32 %v6765_v62, %v5848_v35  ;;  %v6843_v35 = vld [vmem:[#allocation8 + $0x4a8] sm:$0xf0] }
 0x4eb   :  { %4380 = vmatmul.bf16.vlgmr.msrb.gmra.mxu2 %v7888_v54  ;;  %4534 = vmatmul.bf16.vlgmr.msra.gmra.mxu3 %v7889_v56  ;;  %v6322_v54 = vld [vmem:[#allocation8 + $0x5f4] sm:$0xf0] }
 0x4ec   :  { %4404 = vmatpush.bf16.msra.mxu2 %v5893_v23  ;;  %v6325_v33 = vor.u32 %v6883_v0, %v6322_v54  ;;  %v5837_v23 = vor.u32 %v6762_v2, %v5836_v38  ;;  %v5764_v0 = vld [vmem:[#allocation8 + $0x188] sm:$0xf]  ;;  %v6744_v54 = vld [vmem:[#allocation8 + $0x190] sm:$0xf0] }
 0x4ed   :  { %4586 = vmatpush.bf16.msrb.mxu3 %v6281_v63  ;;  %v5824_v63 = vld [vmem:[#allocation8 + $0x200] sm:$0xf]  ;;  %v7814_v38 = vld [vmem:[%s7839_s4] sm:$0x7] }
 0x4ee   :  { %v5825_v8 = vor.u32 %v6759_v55, %v5824_v63  ;;  %v3074_v55 = vperm.slane %v7814_v38, 0 }
 0x4ef   :  { %v2438_v26 = vpop.f32.mrf.mxu0 }
 0x4f0   :  { %4405 = vmatpush.bf16.msra.mxu2 %v5881_v36  ;;  %v2509_v30 = vpop.f32.mrf.mxu1  ;;  %v7802_v36 = vpop.f32.mrf.mxu2  ;;  %v5788_v26 = vld [vmem:[#allocation8 + $0x1b8] sm:$0xf] }
 0x4f1   :  { %4587 = vmatpush.bf16.msrb.mxu3 %v6269_v10  ;;  %v6750_v30 = vld [vmem:[#allocation8 + $0x1c0] sm:$0xf0] }
 0x4f4   :  { %4406 = vmatpush.bf16.msra.mxu2 %v5869_v17 }
 0x4f5   :  { %4588 = vmatpush.bf16.msrb.mxu3 %v6257_v29  ;;  %v5776_v29 = vld [vmem:[#allocation8 + $0x1a0] sm:$0xf] }
 0x4f6   :  { %v5777_v1 = vor.u32 %v6747_v49, %v5776_v29 }
 0x4f7   :  { %v2440_v15 = vpop.f32.mrf.mxu0 }
 0x4f8   :  { %4407 = vmatpush.bf16.msra.mxu2 %v5857_v50  ;;  %v2511_v51 = vpop.f32.mrf.mxu1  ;;  %v7806_v17 = vpop.f32.mrf.mxu2  ;;  %v6232_v50 = vld [vmem:[#allocation8 + $0x530] sm:$0xf] }
 0x4f9   :  { %4589 = vmatpush.bf16.msrb.mxu3 %v6245_v48  ;;  %v5765_v48 = vor.u32 %v6744_v54, %v5764_v0  ;;  %v6220_v51 = vld [vmem:[#allocation8 + $0x518] sm:$0xf] }
 0x4fb   :  { %4408 = vmatmul.bf16.vlgmr.msra.gmra.mxu2 %v7889_v56  ;;  %v6756_v56 = vld [vmem:[#allocation8 + $0x1f0] sm:$0xf0] }
 0x4fc   :  { %4456 = vmatpush.bf16.msrb.mxu2 %v6325_v33  ;;  %4590 = vmatmul.bf16.vlgmr.msrb.gmra.mxu3 %v7709_v58  ;;  %v5813_v10 = vor.u32 %v6756_v56, %v5812_v7  ;;  %v6861_v33 = vld [vmem:[#allocation8 + $0x538] sm:$0xf0]  ;;  %v4244_v7 = vadd.f32 %v7802_v36, %v3074_v55 }
 0x4fd   :  { %v6233_v4 = vor.u32 %v6861_v33, %v6232_v50 }
 0x4fe   :  { %v4258_v43 = vadd.f32 %v7804_v18, %v4244_v7 }
 0x4ff   :  { %v2441_v52 = vpop.f32.mrf.mxu0 }
 0x500   :  { %4457 = vmatpush.bf16.msrb.mxu2 %v6313_v45  ;;  %v2512_v57 = vpop.f32.mrf.mxu1  ;;  %v4271_v15 = vpop.f32.mrf.mxu2  ;;  %v6858_v45 = vld [vmem:[#allocation8 + $0x520] sm:$0xf0] }
 0x501   :  { %v6221_v24 = vor.u32 %v6858_v45, %v6220_v51  ;;  %v6196_v57 = vld [vmem:[#allocation8 + $0x4e8] sm:$0xf]  ;;  %v6922_v51 = vld [vmem:[#allocation10 + $0x60] sm:$0xff] }
 0x504   :  { %4458 = vmatpush.bf16.msrb.mxu2 %v6301_v19  ;;  %v6208_v19 = vld [vmem:[#allocation8 + $0x500] sm:$0xf] }
 0x505   :  { %v6209_v52 = vor.u32 %v6855_v12, %v6208_v19  ;;  %v6920_v19 = vld [vmem:[#allocation10 + $0x50] sm:$0xff] }
 0x507   :  { %v2443_v60 = vpop.f32.mrf.mxu0 }
 0x508   :  { %4459 = vmatpush.bf16.msrb.mxu2 %v6289_v28  ;;  %v2514_v39 = vpop.f32.mrf.mxu1  ;;  %v6852_v28 = vld [vmem:[#allocation8 + $0x4f0] sm:$0xf0]  ;;  %v4297_v13 = vpop.f32.mrf.mxu2  ;;  %v6849_v60 = vld [vmem:[#allocation8 + $0x4d8] sm:$0xf0] }
 0x509   :  { %v6197_v59 = vor.u32 %v6852_v28, %v6196_v57  ;;  %v6185_v39 = vor.u32 %v6849_v60, %v6184_v61  ;;  %v6918_v57 = vld [vmem:[#allocation10 + $0x40] sm:$0xff]  ;;  %v3075_v28 = vperm.slane %v7814_v38, 1 }
 0x50c   :  { %4460 = vmatpush.bf16.msrb.mxu2 %v6277_v47  ;;  %v6913_v47 = vld [vmem:[#allocation10 + $0x18] sm:$0xff] }
 0x50d   :  { %4813 = vmatpush.bf16.msra.mxu1 %v6913_v47 }
 0x50f   :  { %v2444_v46 = vpop.f32.mrf.mxu0 }
 0x510   :  { %4461 = vmatpush.bf16.msrb.mxu2 %v6265_v27  ;;  %v2515_v44 = vpop.f32.mrf.mxu1  ;;  %v4311_v27 = vpop.f32.mrf.mxu3  ;;  %v6160_v46 = vld [vmem:[#allocation8 + $0x4a0] sm:$0xf] }
 0x511   :  { %4814 = vmatpush.bf16.msra.mxu1 %v6912_v53  ;;  %v4299_v21 = vpop.f32.mrf.mxu2  ;;  %v6161_v62 = vor.u32 %v6843_v35, %v6160_v46  ;;  %v6148_v44 = vld [vmem:[#allocation8 + $0x488] sm:$0xf] }
 0x514   :  { %4462 = vmatpush.bf16.msrb.mxu2 %v6253_v34  ;;  %v6911_v34 = vld [vmem:[#allocation10 + $0x8] sm:$0xff] }
 0x515   :  { %4815 = vmatpush.bf16.msra.mxu1 %v6911_v34 }
 0x518   :  { %4463 = vmatpush.bf16.msrb.mxu2 %v6241_v31  ;;  %v6840_v31 = vld [vmem:[#allocation8 + $0x490] sm:$0xf0]  ;;  %v4313_v2 = vpop.f32.mrf.mxu3 }
 0x519   :  { %v4325_v63 = vpop.f32.mrf.mxu2 }
 0x51b   :  { %4464 = vmatmul.bf16.vlgmr.msrb.gmra.mxu2 %v7709_v58  ;;  %v5789_v58 = vor.u32 %v6750_v30, %v5788_v26  ;;  %v4272_v26 = vadd.f32 %v4271_v15, %v4258_v43  ;;  %v6923_v15 = vld [vmem:[#allocation10 + $0x68] sm:$0xff] }
 0x51c   :  { %4512 = vmatpush.bf16.msra.mxu2 %v5849_v5  ;;  %v6910_v5 = vld [vmem:[#allocation10] sm:$0xff] }
 0x51d   :  { %4816 = vmatpush.bf16.msra.mxu1 %v6910_v5 }
 0x520   :  { %4513 = vmatpush.bf16.msra.mxu2 %v5837_v23  ;;  %v6149_v23 = vor.u32 %v6840_v31, %v6148_v44  ;;  %v4339_v56 = vpop.f32.mrf.mxu3 }
 0x521   :  { %v4327_v40 = vpop.f32.mrf.mxu2 }
 0x524   :  { %4514 = vmatpush.bf16.msra.mxu2 %v5825_v8  ;;  %v4242_v8 = vadd.f32 %v7797_v9, %v3074_v55 }
 0x528   :  { %4515 = vmatpush.bf16.msra.mxu2 %v5813_v10  ;;  %v4256_v10 = vadd.f32 %v7799_v20, %v4242_v8  ;;  %v4341_v29 = vpop.f32.mrf.mxu3 }
 0x52c   :  { %4516 = vmatpush.bf16.msra.mxu2 %v5801_v42  ;;  %v4270_v42 = vadd.f32 %v7806_v17, %v4256_v10  ;;  %v6925_v17 = vld [vmem:[#allocation10 + $0x78] sm:$0xff] }
 0x52e   :  { %v4284_v30 = vadd.f32 %v7808_v37, %v4270_v42  ;;  %v6924_v37 = vld [vmem:[#allocation10 + $0x70] sm:$0xff] }
 0x530   :  { %4517 = vmatpush.bf16.msra.mxu2 %v5789_v58  ;;  %v4286_v58 = vadd.f32 %v4285_v22, %v4272_v26  ;;  %v4298_v49 = vadd.f32 %v4297_v13, %v4284_v30 }
 0x532   :  { %v4312_v0 = vadd.f32 %v4311_v27, %v4298_v49 }
 0x534   :  { %4518 = vmatpush.bf16.msra.mxu2 %v5777_v1  ;;  %v4300_v1 = vadd.f32 %v4299_v21, %v4286_v58  ;;  %v4326_v54 = vadd.f32 %v4325_v63, %v4312_v0  ;;  %v4451_v21 = vpop.f32.mrf.mxu1  ;;  %v6931_v58 = vld [vmem:[#allocation10 + $0xa8] sm:$0xff] }
 0x536   :  { %v4314_v36 = vadd.f32 %v4313_v2, %v4300_v1  ;;  %v4340_v50 = vadd.f32 %v4339_v56, %v4326_v54  ;;  %v6933_v56 = vld [vmem:[#allocation10 + $0xb8] sm:$0xff]  ;;  %v6927_v54 = vld [vmem:[#allocation10 + $0x88] sm:$0xff] }
 0x537   :  { %4837 = vmatpush.bf16.msra.mxu3 %v6933_v56  ;;  %v6929_v1 = vld [vmem:[#allocation10 + $0x98] sm:$0xff] }
 0x538   :  { %4519 = vmatpush.bf16.msra.mxu2 %v5765_v48  ;;  %v4328_v32 = vadd.f32 %v4327_v40, %v4314_v36  ;;  %v6932_v40 = vld [vmem:[#allocation10 + $0xb0] sm:$0xff] }
 0x53a   :  { %v4342_v20 = vadd.f32 %v4341_v29, %v4328_v32  ;;  %v6930_v29 = vld [vmem:[#allocation10 + $0xa0] sm:$0xff] }
 0x53b   :  { %4520 = vmatmul.bf16.vlgmr.msra.gmra.mxu2 %v7442_v25  ;;  %v6846_v25 = vld [vmem:[#allocation8 + $0x4c0] sm:$0xf0]  ;;  %4838 = vmatpush.bf16.msra.mxu3 %v6932_v40 }
 0x53c   :  { %4568 = vmatpush.bf16.msrb.mxu2 %v6233_v4  ;;  %v6173_v3 = vor.u32 %v6846_v25, %v6172_v6  ;;  %v4437_v6 = vpop.f32.mrf.mxu0  ;;  %v4453_v63 = vpop.f32.mrf.mxu1 }
 0x53f   :  { %4839 = vmatpush.bf16.msra.mxu3 %v6931_v58 }
 0x540   :  { %4569 = vmatpush.bf16.msrb.mxu2 %v6221_v24  ;;  %v6921_v24 = vld [vmem:[#allocation10 + $0x58] sm:$0xff] }
 0x543   :  { %4840 = vmatpush.bf16.msra.mxu3 %v6930_v29 }
 0x544   :  { %4570 = vmatpush.bf16.msrb.mxu2 %v6209_v52  ;;  %v6919_v52 = vld [vmem:[#allocation10 + $0x48] sm:$0xff]  ;;  %v4439_v5 = vpop.f32.mrf.mxu0  ;;  %v4507_v36 = vpop.f32.mrf.mxu1 }
 0x547   :  { %4841 = vmatpush.bf16.msra.mxu3 %v6929_v1 }
 0x548   :  { %4571 = vmatpush.bf16.msrb.mxu2 %v6197_v59 }
 0x54c   :  { %4572 = vmatpush.bf16.msrb.mxu2 %v6185_v39  ;;  %v4493_v49 = vpop.f32.mrf.mxu0 }
 0x550   :  { %4573 = vmatpush.bf16.msrb.mxu2 %v6173_v3 }
 0x554   :  { %4574 = vmatpush.bf16.msrb.mxu2 %v6161_v62  ;;  %v4495_v0 = vpop.f32.mrf.mxu0 }
 0x558   :  { %4575 = vmatpush.bf16.msrb.mxu2 %v6149_v23 }
 0x55b   :  { %4576 = vmatmul.bf16.vlgmr.msrb.gmra.mxu2 %v7704_v11  ;;  %v4367_v11 = vpop.f32.mrf.mxu3 }
 0x55c   :  { %4823 = vmatpush.bf16.msra.mxu2 %v6925_v17  ;;  %v4368_v47 = vadd.f32 %v4367_v11, %v3075_v28  ;;  %v3076_v11 = vperm.slane %v7814_v38, 2 }
 0x55e   :  { %v4353_v9 = vpop.f32.mrf.mxu2  ;;  %v4496_v17 = vadd.f32 %v4495_v0, %v3076_v11 }
 0x55f   :  { %v4354_v18 = vadd.f32 %v4353_v9, %v4340_v50  ;;  %v6928_v9 = vld [vmem:[#allocation10 + $0x90] sm:$0xff]  ;;  %v6926_v50 = vld [vmem:[#allocation10 + $0x80] sm:$0xff] }
 0x560   :  { %4824 = vmatpush.bf16.msra.mxu2 %v6924_v37  ;;  %4842 = vmatpush.bf16.msra.mxu3 %v6928_v9 }
 0x563   :  { %v4369_v14 = vpop.f32.mrf.mxu3 }
 0x564   :  { %4825 = vmatpush.bf16.msra.mxu2 %v6923_v15  ;;  %v4370_v59 = vadd.f32 %v4369_v14, %v3075_v28  ;;  %4843 = vmatpush.bf16.msra.mxu3 %v6927_v54 }
 0x566   :  { %v4355_v33 = vpop.f32.mrf.mxu2 }
 0x567   :  { %v4356_v48 = vadd.f32 %v4355_v33, %v4342_v20  ;;  %v4549_v33 = vpop.f32.mrf.mxu0 }
 0x568   :  { %4826 = vmatpush.bf16.msra.mxu2 %v6922_v51  ;;  %4844 = vmatpush.bf16.msra.mxu3 %v6926_v50 }
 0x569   :  { %v4610_v4 = vpack.c.bf16 %v4356_v48, %v4354_v18  ;;  %v4494_v18 = vadd.f32 %v4493_v49, %v3076_v11  ;;  %v4509_v48 = vpop.f32.mrf.mxu1 }
 0x56a   :  { %v4510_v51 = vadd.f32 %v4509_v48, %v4496_v17 }
 0x56b   :  { %4817 = vmatmul.bf16.vlgmr.msra.gmra.mxu1 %v4610_v4  ;;  %v4395_v16 = vpop.f32.mrf.mxu3  ;;  %v4508_v4 = vadd.f32 %v4507_v36, %v4494_v18 }
 0x56c   :  { %4827 = vmatpush.bf16.msra.mxu2 %v6921_v24 }
 0x56e   :  { %v4381_v45 = vpop.f32.mrf.mxu2 }
 0x56f   :  { %v4382_v61 = vadd.f32 %v4381_v45, %v4368_v47  ;;  %v4551_v45 = vpop.f32.mrf.mxu0 }
 0x570   :  { %4828 = vmatpush.bf16.msra.mxu2 %v6920_v19 }
 0x571   :  { %v4396_v27 = vadd.f32 %v4395_v16, %v4382_v61  ;;  %v4563_v19 = vpop.f32.mrf.mxu1 }
 0x573   :  { %v4397_v22 = vpop.f32.mrf.mxu3 }
 0x574   :  { %4829 = vmatpush.bf16.msra.mxu2 %v6919_v52 }
 0x576   :  { %v4383_v12 = vpop.f32.mrf.mxu2 }
 0x577   :  { %v4384_v60 = vadd.f32 %v4383_v12, %v4370_v59 }
 0x578   :  { %4830 = vmatpush.bf16.msra.mxu2 %v6918_v57  ;;  %v4605_v57 = vpop.f32.mrf.mxu0 }
 0x579   :  { %v4398_v34 = vadd.f32 %v4397_v22, %v4384_v60  ;;  %v4565_v47 = vpop.f32.mrf.mxu1 }
 0x57b   :  { %v4423_v41 = vpop.f32.mrf.mxu3 }
 0x57e   :  { %v4409_v13 = vpop.f32.mrf.mxu2 }
 0x57f   :  { %v4410_v53 = vadd.f32 %v4409_v13, %v4396_v27 }
 0x581   :  { %v4424_v46 = vadd.f32 %v4423_v41, %v4410_v53 }
 0x583   :  { %v4425_v39 = vpop.f32.mrf.mxu3  ;;  %v4438_v31 = vadd.f32 %v4437_v6, %v4424_v46  ;;  %v6948_v46 = vld [vmem:[%s7841_s6] ss:$0 sm:$0xff] }
 0x585   :  { %v4452_v23 = vadd.f32 %v4451_v21, %v4438_v31 }
 0x586   :  { %v4411_v25 = vpop.f32.mrf.mxu2 }
 0x587   :  { %v4412_v3 = vadd.f32 %v4411_v25, %v4398_v34  ;;  %v4607_v25 = vpop.f32.mrf.mxu0 }
 0x589   :  { %v4426_v35 = vadd.f32 %v4425_v39, %v4412_v3 }
 0x58b   :  { %v4479_v62 = vpop.f32.mrf.mxu3  ;;  %v4440_v2 = vadd.f32 %v4439_v5, %v4426_v35 }
 0x58d   :  { %v4454_v8 = vadd.f32 %v4453_v63, %v4440_v2 }
 0x593   :  { %v4481_v43 = vpop.f32.mrf.mxu3 }
 0x59b   :  { %v4535_v32 = vpop.f32.mrf.mxu3 }
 0x59e   :  { %v4465_v44 = vpop.f32.mrf.mxu2 }
 0x59f   :  { %v4466_v55 = vadd.f32 %v4465_v44, %v4452_v23 }
 0x5a1   :  { %v4480_v42 = vadd.f32 %v4479_v62, %v4466_v55 }
 0x5a3   :  { %v4537_v37 = vpop.f32.mrf.mxu3 }
 0x5a6   :  { %v4467_v7 = vpop.f32.mrf.mxu2 }
 0x5a7   :  { %v4468_v10 = vadd.f32 %v4467_v7, %v4454_v8 }
 0x5a9   :  { %v4482_v26 = vadd.f32 %v4481_v43, %v4468_v10 }
 0x5ab   :  { %v4611_v30 = vpack.c.bf16 %v4482_v26, %v4480_v42  ;;  %v4591_v52 = vpop.f32.mrf.mxu3 }
 0x5ad   :  { %4831 = vmatmul.bf16.vlgmr.msra.gmra.mxu2 %v4611_v30 }
 0x5b3   :  { %v4593_v27 = vpop.f32.mrf.mxu3 }
 0x5be   :  { %v4521_v20 = vpop.f32.mrf.mxu2 }
 0x5bf   :  { %v4522_v14 = vadd.f32 %v4521_v20, %v4508_v4 }
 0x5c1   :  { %v4536_v16 = vadd.f32 %v4535_v32, %v4522_v14 }
 0x5c3   :  { %v4550_v22 = vadd.f32 %v4549_v33, %v4536_v16 }
 0x5c5   :  { %v4564_v28 = vadd.f32 %v4563_v19, %v4550_v22 }
 0x5c6   :  { %v4523_v15 = vpop.f32.mrf.mxu2 }
 0x5c7   :  { %v4524_v24 = vadd.f32 %v4523_v15, %v4510_v51 }
 0x5c9   :  { %v4538_v12 = vadd.f32 %v4537_v37, %v4524_v24 }
 0x5cb   :  { %v4552_v41 = vadd.f32 %v4551_v45, %v4538_v12 }
 0x5cd   :  { %v4566_v59 = vadd.f32 %v4565_v47, %v4552_v41 }
 0x5de   :  { %v4577_v38 = vpop.f32.mrf.mxu2 }
 0x5df   :  { %v4578_v13 = vadd.f32 %v4577_v38, %v4564_v28 }
 0x5e1   :  { %v4592_v60 = vadd.f32 %v4591_v52, %v4578_v13 }
 0x5e3   :  { %v4606_v53 = vadd.f32 %v4605_v57, %v4592_v60 }
 0x5e6   :  { %v4579_v61 = vpop.f32.mrf.mxu2 }
 0x5e7   :  { %v4580_v39 = vadd.f32 %v4579_v61, %v4566_v59 }
 0x5e8   :  { %v4818_v21 = vpop.f32.mrf.mxu1 }
 0x5e9   :  { %v4594_v6 = vadd.f32 %v4593_v27, %v4580_v39  ;;  %v4819_v62 = vadd.f32 %v6948_v46, %v4818_v21 }
 0x5eb   :  { %v4608_v34 = vadd.f32 %v4607_v25, %v4594_v6 }
 0x5ed   :  { %v4612_v3 = vpack.c.bf16 %v4608_v34, %v4606_v53 }
 0x5ef   :  { %4845 = vmatmul.bf16.vlgmr.msra.gmra.mxu3 %v4612_v3 }
 0x5f0   :  { %v4820_v2 = vpop.f32.mrf.mxu1 }
 0x5f1   :  { %v4821_v63 = vadd.f32 %v6948_v46, %v4820_v2 }
 0x630   :  { %v4832_v35 = vpop.f32.mrf.mxu2 }
 0x631   :  { %v4833_v44 = vadd.f32 %v4832_v35, %v4819_v62 }
 0x638   :  { %v4834_v23 = vpop.f32.mrf.mxu2 }
 0x639   :  { %v4835_v55 = vadd.f32 %v4834_v23, %v4821_v63 }
 0x672   :  { %v4846_v31 = vpop.f32.mrf.mxu3 }
 0x673   :  { %v4847_v5 = vadd.f32 %v4846_v31, %v4833_v44 }
 0x675   :  { %4851 = vst [vmem:[#allocation11] sm:$0xff] %v4847_v5 }
 0x67a   :  { %v4848_v8 = vpop.f32.mrf.mxu3 }
 0x67b   :  { %v4849_v7 = vadd.f32 %v4848_v8, %v4835_v55 }
 0x67d   :  { %4852 = vst [vmem:[#allocation11 + $0x8] sm:$0xff] %v4849_v7 }
 0x67e   :  { %4865 = dma.vmem_to_hbm [thread:$0]  %s4858_s10, 256, %s4860_s13, [#allocation4], %s7109_s21, %s7109_s21, %s7110_s22  }
 0x67f   :  { %7100 = dma.done.wait [#allocation4], 256  }
 0x680   :  { %7101 = vsyncadd [#allocation4], 4294967040 }
 0x681   :  { %4870 = vsyncpa [#allocation3], 1 }
 0x682   :  { %4871 = vsyncpa [#allocation6], 1 }
 0x683   :  { %4872 = vsyncpa [#allocation9], 1 }
 0x684   :  { %4873 = vsyncpa [#allocation4], 1 }

</bundles_post_ra>
